<compile_context>
chip_gen: v5e
topology: v5e:2x2
jax: 0.10.0
libtpu: 0.0.40
codegen_flags: <defaults>
</compile_context>

<pallas_src>
import functools

import jax
import jax.numpy as jnp
from jax.experimental import pallas as pl
from jax.experimental.pallas import tpu as pltpu

IN_F = 257 * 5          # 1285
HID = 512
F_PAD = 1408            # 11 * 128  (lane-dense padded feature dim)


def _round_up(x, m):
    return (x + m - 1) // m * m


def mlp_kernel(x_ref, w1_ref, b1_ref, w2_ref, b2_ref, o_ref):
    # x: (TM, F_PAD) f32   w1: (F_PAD, HID) bf16   b1: (1, HID) f32
    # w2: (HID, F_PAD) bf16   b2: (1, F_PAD) f32   o: (TM, F_PAD) f32
    x = x_ref[...].astype(jnp.bfloat16)
    h = jnp.dot(x, w1_ref[...], preferred_element_type=jnp.float32) + b1_ref[...]
    h_bf = h.astype(jnp.bfloat16)  # feed MXU bf16, keep f32 accumulation
    o_ref[...] = (
        jnp.dot(h_bf, w2_ref[...], preferred_element_type=jnp.float32) + b2_ref[...]
    )


@functools.partial(jax.jit, static_argnames=("tm",))
def model_forward(aud, w1_p, b1, w2_p, b2_p, *, tm=256):
    # aud.view(-1, 257*5) equivalent
    x = aud.reshape(-1, IN_F)
    n = x.shape[0]

    # Row-tile size: cap at `tm` (VMEM-friendly on all generations incl. v5e's
    # 16 MiB scoped default), but don't over-tile tiny batches.
    tm_eff = min(tm, _round_up(n, 8))
    n_pad = _round_up(n, tm_eff)
    grid_m = n_pad // tm_eff

    # Zero-pad rows to a tile multiple and features to the lane-dense width.
    x_p = jnp.pad(x, ((0, n_pad - n), (0, F_PAD - IN_F)))

    flops = 2 * 2 * n_pad * F_PAD * HID
    bytes_accessed = (
        x_p.size * x_p.dtype.itemsize
        + w1_p.size * w1_p.dtype.itemsize
        + w2_p.size * w2_p.dtype.itemsize
        + b1.size * b1.dtype.itemsize
        + b2_p.size * b2_p.dtype.itemsize
        + n_pad * F_PAD * 4
    )

    # TODO(synk): for per-step decode use, a cross-call weight-prefetch
    # (P10 semaphore/VMEM future) could hide the weight DMA entirely.
    out_p = pl.pallas_call(
        mlp_kernel,
        out_shape=jax.ShapeDtypeStruct((n_pad, F_PAD), jnp.float32),
        grid_spec=pltpu.PrefetchScalarGridSpec(
            num_scalar_prefetch=0,
            grid=(grid_m,),
            in_specs=[
                pl.BlockSpec((tm_eff, F_PAD), lambda i: (i, 0)),  # x: row-tiled
                pl.BlockSpec((F_PAD, HID), lambda i: (0, 0)),     # w1: resident
                pl.BlockSpec((1, HID), lambda i: (0, 0)),         # b1: resident
                pl.BlockSpec((HID, F_PAD), lambda i: (0, 0)),     # w2: resident
                pl.BlockSpec((1, F_PAD), lambda i: (0, 0)),       # b2: resident
            ],
            out_specs=pl.BlockSpec((tm_eff, F_PAD), lambda i: (i, 0)),
        ),
        compiler_params=pltpu.CompilerParams(
            dimension_semantics=("parallel",),
        ),
        cost_estimate=pl.CostEstimate(
            flops=flops, transcendentals=0, bytes_accessed=bytes_accessed
        ),
    )(x_p, w1_p, b1, w2_p, b2_p)

    # Slice away the padded rows / lanes.
    return out_p[:n, :IN_F]


def init_params(key):
    # Deterministic synthetic params matching nn.Linear shapes:
    #   fc_new.weight: (512, 1285), fc_new.bias: (512,)
    #   out.weight:    (1285, 512), out.bias:    (1285,)
    # Stored transposed (in, out) so both kernel matmuls are row-major MXU dots.
    k1, k2, k3, k4 = jax.random.split(key, 4)
    s1 = 1.0 / jnp.sqrt(IN_F)
    s2 = 1.0 / jnp.sqrt(HID)
    w1_t = jax.random.uniform(k1, (IN_F, HID), jnp.float32, -s1, s1)
    b1 = jax.random.uniform(k2, (1, HID), jnp.float32, -s1, s1)
    w2_t = jax.random.uniform(k3, (HID, IN_F), jnp.float32, -s2, s2)
    b2 = jax.random.uniform(k4, (1, IN_F), jnp.float32, -s2, s2)
    return w1_t, b1, w2_t, b2


def prepare_params(w1_t, b1, w2_t, b2):
    # Zero-pad the 1285 feature dim to 1408 and cast streamed weights to bf16.
    # Padded w1 rows / w2 columns / b2 entries MUST be zero (they are, via pad).
    w1_p = jnp.pad(w1_t, ((0, F_PAD - IN_F), (0, 0))).astype(jnp.bfloat16)
    w2_p = jnp.pad(w2_t, ((0, 0), (0, F_PAD - IN_F))).astype(jnp.bfloat16)
    b2_p = jnp.pad(b2, ((0, 0), (0, F_PAD - IN_F)))
    return w1_p, b1, w2_p, b2_p


if __name__ == "__main__":
    key = jax.random.PRNGKey(0)
    k_in, k_par = jax.random.split(key)
    # small example: batch=2 spectrogram chunks of shape (5, 257) -> view(-1, 1285)
    aud = jax.random.normal(k_in, (2, 5, 257), jnp.float32)
    w1_t, b1, w2_t, b2 = init_params(k_par)
    w1_p, b1_p, w2_p, b2_p = prepare_params(w1_t, b1, w2_t, b2)

    out = model_forward(aud, w1_p, b1_p, w2_p, b2_p)
    out = jax.block_until_ready(out)
    assert out.shape == (2, IN_F)

    # Reference mirrors the kernel numerics (bf16 MXU inputs, f32 accumulation).
    x = aud.reshape(-1, IN_F)
    h_ref = (
        jnp.dot(x.astype(jnp.bfloat16), w1_t.astype(jnp.bfloat16),
                preferred_element_type=jnp.float32) + b1
    )
    ref = (
        jnp.dot(h_ref.astype(jnp.bfloat16), w2_t.astype(jnp.bfloat16),
                preferred_element_type=jnp.float32) + b2
    )
    assert jnp.allclose(out, ref, atol=1e-2, rtol=1e-2)
    print("KERNEL_OK")
</pallas_src>

<mosaic_0001>
module attributes {stable_mosaic.version = 11 : i64} {
  func.func @mlp_kernel(%arg0: i32, %arg1: memref<8x1408xf32, #tpu.memory_space<vmem>>, %arg2: memref<1408x512xbf16, #tpu.memory_space<vmem>>, %arg3: memref<1x512xf32, #tpu.memory_space<vmem>>, %arg4: memref<512x1408xbf16, #tpu.memory_space<vmem>>, %arg5: memref<1x1408xf32, #tpu.memory_space<vmem>>, %arg6: memref<8x1408xf32, #tpu.memory_space<vmem>>) attributes {dimension_semantics = [#tpu.dimension_semantics<parallel>], iteration_bounds = array<i64: 1>, scalar_prefetch = 0 : i64, scratch_operands = 0 : i64, tpu.core_type = #tpu.core_type<tc>, window_params = [{transform_indices = @transform_0, window_bounds = array<i64: 8, 1408>}, {pipeline_mode = #tpu.pipeline_mode<synchronous>, transform_indices = @transform_1, window_bounds = array<i64: 1408, 512>}, {pipeline_mode = #tpu.pipeline_mode<synchronous>, transform_indices = @transform_2, window_bounds = array<i64: 1, 512>}, {pipeline_mode = #tpu.pipeline_mode<synchronous>, transform_indices = @transform_3, window_bounds = array<i64: 512, 1408>}, {pipeline_mode = #tpu.pipeline_mode<synchronous>, transform_indices = @transform_4, window_bounds = array<i64: 1, 1408>}, {transform_indices = @transform_5, window_bounds = array<i64: 8, 1408>}]} {
    %c0 = arith.constant 0 : index
    %c0_0 = arith.constant 0 : index
    %0 = vector.load %arg1[%c0, %c0_0] : memref<8x1408xf32, #tpu.memory_space<vmem>>, vector<8x1408xf32>
    %1 = arith.truncf %0 : vector<8x1408xf32> to vector<8x1408xbf16>
    %c0_1 = arith.constant 0 : index
    %c0_2 = arith.constant 0 : index
    %2 = vector.load %arg2[%c0_1, %c0_2] : memref<1408x512xbf16, #tpu.memory_space<vmem>>, vector<1408x512xbf16>
    %cst = arith.constant dense<0.000000e+00> : vector<8x512xf32>
    %3 = tpu.matmul %1, %2, %cst {dimension_numbers = #tpu.dot_dimension_numbers<[1], [0], [0], [1], [0, 0, 1, 1], [], []>} : vector<8x1408xbf16>, vector<1408x512xbf16>, vector<8x512xf32> -> vector<8x512xf32>
    %c0_3 = arith.constant 0 : index
    %c0_4 = arith.constant 0 : index
    %4 = vector.load %arg3[%c0_3, %c0_4] : memref<1x512xf32, #tpu.memory_space<vmem>>, vector<1x512xf32>
    %5 = vector.broadcast %4 : vector<1x512xf32> to vector<8x512xf32>
    %6 = arith.addf %3, %5 : vector<8x512xf32>
    %7 = arith.truncf %6 : vector<8x512xf32> to vector<8x512xbf16>
    %c0_5 = arith.constant 0 : index
    %c0_6 = arith.constant 0 : index
    %8 = vector.load %arg4[%c0_5, %c0_6] : memref<512x1408xbf16, #tpu.memory_space<vmem>>, vector<512x1408xbf16>
    %cst_7 = arith.constant dense<0.000000e+00> : vector<8x1408xf32>
    %9 = tpu.matmul %7, %8, %cst_7 {dimension_numbers = #tpu.dot_dimension_numbers<[1], [0], [0], [1], [0, 0, 1, 1], [], []>} : vector<8x512xbf16>, vector<512x1408xbf16>, vector<8x1408xf32> -> vector<8x1408xf32>
    %c0_8 = arith.constant 0 : index
    %c0_9 = arith.constant 0 : index
    %10 = vector.load %arg5[%c0_8, %c0_9] : memref<1x1408xf32, #tpu.memory_space<vmem>>, vector<1x1408xf32>
    %11 = vector.broadcast %10 : vector<1x1408xf32> to vector<8x1408xf32>
    %12 = arith.addf %9, %11 : vector<8x1408xf32>
    %c0_10 = arith.constant 0 : index
    %c0_11 = arith.constant 0 : index
    %13 = vector.load %arg6[%c0_10, %c0_11] : memref<8x1408xf32, #tpu.memory_space<vmem>>, vector<8x1408xf32>
    tpu.vector_store %arg6[%c0_10, %c0_11], %12 {strides = array<i32>} : memref<8x1408xf32, #tpu.memory_space<vmem>>, vector<8x1408xf32>,
    return
  }
  func.func @transform_0(%arg0: i32) -> (i32, i32) {
    %c0_i32 = arith.constant 0 : i32
    %c0_i32_0 = arith.constant 0 : i32
    return %arg0, %c0_i32 : i32, i32
  }
  func.func @transform_1(%arg0: i32) -> (i32, i32) {
    %c0_i32 = arith.constant 0 : i32
    %c0_i32_0 = arith.constant 0 : i32
    %c0_i32_1 = arith.constant 0 : i32
    return %c0_i32, %c0_i32_0 : i32, i32
  }
  func.func @transform_2(%arg0: i32) -> (i32, i32) {
    %c0_i32 = arith.constant 0 : i32
    %c0_i32_0 = arith.constant 0 : i32
    %c0_i32_1 = arith.constant 0 : i32
    return %c0_i32, %c0_i32_0 : i32, i32
  }
  func.func @transform_3(%arg0: i32) -> (i32, i32) {
    %c0_i32 = arith.constant 0 : i32
    %c0_i32_0 = arith.constant 0 : i32
    %c0_i32_1 = arith.constant 0 : i32
    return %c0_i32, %c0_i32_0 : i32, i32
  }
  func.func @transform_4(%arg0: i32) -> (i32, i32) {
    %c0_i32 = arith.constant 0 : i32
    %c0_i32_0 = arith.constant 0 : i32
    %c0_i32_1 = arith.constant 0 : i32
    return %c0_i32, %c0_i32_0 : i32, i32
  }
  func.func @transform_5(%arg0: i32) -> (i32, i32) {
    %c0_i32 = arith.constant 0 : i32
    %c0_i32_0 = arith.constant 0 : i32
    return %arg0, %c0_i32 : i32, i32
  }
}

</mosaic_0001>

<bundles_post_ra>
// kernel: model_forward.1
= control target key start
LH: loop header
LB: loop body
LE: loop exit
PB: predicated region body
PF: predicated region fallthrough
CT: control target
= control target key end

     0   :  { %10 = vsyncpa [#allocation3], 0  ;;  %s9592_s0 = inlined_call_operand.vmem [shape: f32[8,1408], index: 0, kind: input, shape index: {}]   ;;  %s9593_s1 = inlined_call_operand.hbm [shape: bf16[1408,512], index: 1, kind: input, shape index: {}]   ;;  %s9594_s2 = inlined_call_operand.hbm [shape: f32[1,512], index: 2, kind: input, shape index: {}]   ;;  %s9595_s3 = inlined_call_operand.hbm [shape: bf16[512,1408], index: 3, kind: input, shape index: {}]   ;;  %s9596_s4 = inlined_call_operand.hbm [shape: f32[1,1408], index: 4, kind: input, shape index: {}]   ;;  %s9597_s5 = inlined_call_operand.vmem [shape: f32[8,1408], index: 5, kind: output, shape index: {}]  }
   0x1   :  { %11 = vsyncpa [#allocation5], 0  ;;  %s33_s20 = sshll.u32 %s9594_s2, 4  ;;  %s34_s20 = int_to_ptr.hbm [resolvable:$true] %s33_s20 }
   0x2   :  { %12 = vsyncpa [#allocation8], 0  ;;  %s9223_s21 = smov [#allocation4]   ;;  %s19_s25 = sshll.u32 %s9593_s1, 4  ;;  %s20_s25 = int_to_ptr.hbm [resolvable:$true] %s19_s25 }
   0x3   :  { %s35_s22 = sshll.u32 %s9223_s21, 4  ;;  %s9224_s26 = smov [#allocation2]   ;;  %s36_s22 = int_to_ptr.vmem [resolvable:$true] %s35_s22 }
   0x4   :  { %38 = dma.hbm_to_vmem [thread:$0]  %s34_s20, 64, %s36_s22, [#allocation5]  }
   0x5   :  { %s21_s27 = sshll.u32 %s9224_s26, 4  ;;  %s9225_s28 = smov 256   ;;  %s22_s27 = int_to_ptr.vmem [resolvable:$true] %s21_s27 }
   0x6   :  { %s9226_s29 = smov 16   ;;  %s43_s2 = sshll.u32 %s9595_s3, 4  ;;  %s44_s2 = int_to_ptr.hbm [resolvable:$true] %s43_s2 }
   0x7   :  { %27 = dma.hbm_to_vmem [thread:$0]  %s20_s25, 45056, %s22_s27, [#allocation3], %s9225_s28, %s9225_s28, %s9226_s29  }
   0x8   :  { %s9227_s7 = smov [#allocation6]   ;;  %s57_s1 = sshll.u32 %s9596_s4, 4  ;;  %s58_s1 = int_to_ptr.hbm [resolvable:$true] %s57_s1 }
   0x9   :  { %s45_s8 = sshll.u32 %s9227_s7, 4  ;;  %s9228_s11 = smov 704   ;;  %s46_s8 = int_to_ptr.vmem [resolvable:$true] %s45_s8 }
   0xa   :  { %s9229_s12 = smov 44   ;;  %s9230_s13 = smov [#allocation7]  }
   0xb   :  { %51 = dma.hbm_to_vmem [thread:$0]  %s44_s2, 45056, %s46_s8, [#allocation5], %s9228_s11, %s9228_s11, %s9229_s12  }
   0xc   :  { %s59_s14 = sshll.u32 %s9230_s13, 4  ;;  %s60_s14 = int_to_ptr.vmem [resolvable:$true] %s59_s14 }
   0xd   :  { %62 = dma.hbm_to_vmem [thread:$0]  %s58_s1, 176, %s60_s14, [#allocation8]  }
   0xe   :  { %9217 = dma.done.wait [#allocation3], 45056  }
   0xf   :  { %9218 = vsyncadd [#allocation3], 4294922240 }
  0x10   :  { %9219 = dma.done.wait [#allocation5], 45120  }
  0x11   :  { %9220 = vsyncadd [#allocation5], 4294922176 }
  0x12   :  { %9221 = dma.done.wait [#allocation8], 176  }
  0x13   :  { %9222 = vsyncadd [#allocation8], 4294967120  ;;  %v5705_v0 = vld [vmem:[#allocation2 + $0xe0] sm:$0xf]  ;;  %v8437_v1 = vld [vmem:[#allocation2 + $0xec] sm:$0xf0] }
  0x14   :  { %v5833_v2 = vld [vmem:[#allocation2 + $0x1e0] sm:$0xf]  ;;  %v5706_v3 = vor.u32 %v8437_v1, %v5705_v0  ;;  %v8469_v4 = vld [vmem:[#allocation2 + $0x1ec] sm:$0xf0] }
  0x15   :  { %v5961_v5 = vld [vmem:[#allocation2 + $0x2e0] sm:$0xf]  ;;  %v8501_v6 = vld [vmem:[#allocation2 + $0x2ec] sm:$0xf0]  ;;  %v5834_v7 = vor.u32 %v8469_v4, %v5833_v2 }
  0x16   :  { %v5962_v8 = vor.u32 %v8501_v6, %v5961_v5  ;;  %v6089_v9 = vld [vmem:[#allocation2 + $0x3e0] sm:$0xf]  ;;  %v8533_v10 = vld [vmem:[#allocation2 + $0x3ec] sm:$0xf0]  ;;  %2223 = vmatpush.bf16.msra.mxu0 %v5706_v3 }
  0x17   :  { %v5689_v11 = vld [vmem:[#allocation2 + $0xc0] sm:$0xf]  ;;  %v6090_v12 = vor.u32 %v8533_v10, %v6089_v9  ;;  %v8433_v13 = vld [vmem:[#allocation2 + $0xcc] sm:$0xf0]  ;;  %2236 = vmatpush.bf16.msra.mxu1 %v5834_v7 }
  0x18   :  { %v5817_v14 = vld [vmem:[#allocation2 + $0x1c0] sm:$0xf]  ;;  %v8465_v15 = vld [vmem:[#allocation2 + $0x1cc] sm:$0xf0]  ;;  %2249 = vmatpush.bf16.msra.mxu2 %v5962_v8  ;;  %v5690_v16 = vor.u32 %v8433_v13, %v5689_v11 }
  0x19   :  { %v5818_v17 = vor.u32 %v8465_v15, %v5817_v14  ;;  %v5945_v18 = vld [vmem:[#allocation2 + $0x2c0] sm:$0xf]  ;;  %v8497_v19 = vld [vmem:[#allocation2 + $0x2cc] sm:$0xf0]  ;;  %2262 = vmatpush.bf16.msra.mxu3 %v6090_v12 }
  0x1a   :  { %v6073_v20 = vld [vmem:[#allocation2 + $0x3c0] sm:$0xf]  ;;  %v5946_v21 = vor.u32 %v8497_v19, %v5945_v18  ;;  %v8529_v22 = vld [vmem:[#allocation2 + $0x3cc] sm:$0xf0]  ;;  %2224 = vmatpush.bf16.msra.mxu0 %v5690_v16 }
  0x1b   :  { %v5673_v23 = vld [vmem:[#allocation2 + $0xa0] sm:$0xf]  ;;  %v8429_v24 = vld [vmem:[#allocation2 + $0xac] sm:$0xf0]  ;;  %v6074_v25 = vor.u32 %v8529_v22, %v6073_v20  ;;  %2237 = vmatpush.bf16.msra.mxu1 %v5818_v17 }
  0x1c   :  { %v5801_v26 = vld [vmem:[#allocation2 + $0x1a0] sm:$0xf]  ;;  %v8461_v27 = vld [vmem:[#allocation2 + $0x1ac] sm:$0xf0]  ;;  %v5674_v29 = vor.u32 %v8429_v24, %v5673_v23  ;;  %2250 = vmatpush.bf16.msra.mxu2 %v5946_v21 }
  0x1d   :  { %v5929_v28 = vld [vmem:[#allocation2 + $0x2a0] sm:$0xf]  ;;  %v8493_v30 = vld [vmem:[#allocation2 + $0x2ac] sm:$0xf0]  ;;  %v5802_v33 = vor.u32 %v8461_v27, %v5801_v26  ;;  %2263 = vmatpush.bf16.msra.mxu3 %v6074_v25 }
  0x1e   :  { %v6057_v31 = vld [vmem:[#allocation2 + $0x3a0] sm:$0xf]  ;;  %v8525_v32 = vld [vmem:[#allocation2 + $0x3ac] sm:$0xf0]  ;;  %v5930_v34 = vor.u32 %v8493_v30, %v5929_v28  ;;  %2225 = vmatpush.bf16.msra.mxu0 %v5674_v29 }
  0x1f   :  { %v5657_v35 = vld [vmem:[#allocation2 + $0x80] sm:$0xf]  ;;  %v8425_v36 = vld [vmem:[#allocation2 + $0x8c] sm:$0xf0]  ;;  %v6058_v38 = vor.u32 %v8525_v32, %v6057_v31  ;;  %2238 = vmatpush.bf16.msra.mxu1 %v5802_v33 }
  0x20   :  { %v5785_v37 = vld [vmem:[#allocation2 + $0x180] sm:$0xf]  ;;  %v8457_v39 = vld [vmem:[#allocation2 + $0x18c] sm:$0xf0]  ;;  %v5658_v44 = vor.u32 %v8425_v36, %v5657_v35  ;;  %2251 = vmatpush.bf16.msra.mxu2 %v5930_v34 }
  0x21   :  { %v5913_v40 = vld [vmem:[#allocation2 + $0x280] sm:$0xf]  ;;  %v8489_v41 = vld [vmem:[#allocation2 + $0x28c] sm:$0xf0]  ;;  %v5786_v45 = vor.u32 %v8457_v39, %v5785_v37  ;;  %2264 = vmatpush.bf16.msra.mxu3 %v6058_v38 }
  0x22   :  { %v6041_v42 = vld [vmem:[#allocation2 + $0x380] sm:$0xf]  ;;  %v8521_v43 = vld [vmem:[#allocation2 + $0x38c] sm:$0xf0]  ;;  %v5914_v46 = vor.u32 %v8489_v41, %v5913_v40  ;;  %2226 = vmatpush.bf16.msra.mxu0 %v5658_v44 }
  0x23   :  { %v5641_v47 = vld [vmem:[#allocation2 + $0x60] sm:$0xf]  ;;  %v8421_v48 = vld [vmem:[#allocation2 + $0x6c] sm:$0xf0]  ;;  %v6042_v50 = vor.u32 %v8521_v43, %v6041_v42  ;;  %2239 = vmatpush.bf16.msra.mxu1 %v5786_v45 }
  0x24   :  { %v5769_v49 = vld [vmem:[#allocation2 + $0x160] sm:$0xf]  ;;  %v8453_v51 = vld [vmem:[#allocation2 + $0x16c] sm:$0xf0]  ;;  %v5642_v56 = vor.u32 %v8421_v48, %v5641_v47  ;;  %2252 = vmatpush.bf16.msra.mxu2 %v5914_v46 }
  0x25   :  { %v5897_v52 = vld [vmem:[#allocation2 + $0x260] sm:$0xf]  ;;  %v8485_v53 = vld [vmem:[#allocation2 + $0x26c] sm:$0xf0]  ;;  %v5770_v57 = vor.u32 %v8453_v51, %v5769_v49  ;;  %2265 = vmatpush.bf16.msra.mxu3 %v6042_v50 }
  0x26   :  { %v6025_v54 = vld [vmem:[#allocation2 + $0x360] sm:$0xf]  ;;  %v8517_v55 = vld [vmem:[#allocation2 + $0x36c] sm:$0xf0]  ;;  %v5898_v58 = vor.u32 %v8485_v53, %v5897_v52  ;;  %2227 = vmatpush.bf16.msra.mxu0 %v5642_v56 }
  0x27   :  { %v5625_v59 = vld [vmem:[#allocation2 + $0x40] sm:$0xf]  ;;  %v8417_v60 = vld [vmem:[#allocation2 + $0x4c] sm:$0xf0]  ;;  %v6026_v62 = vor.u32 %v8517_v55, %v6025_v54  ;;  %2240 = vmatpush.bf16.msra.mxu1 %v5770_v57 }
  0x28   :  { %v5753_v61 = vld [vmem:[#allocation2 + $0x140] sm:$0xf]  ;;  %v8449_v63 = vld [vmem:[#allocation2 + $0x14c] sm:$0xf0]  ;;  %v5626_v4 = vor.u32 %v8417_v60, %v5625_v59  ;;  %2253 = vmatpush.bf16.msra.mxu2 %v5898_v58 }
  0x29   :  { %v5881_v0 = vld [vmem:[#allocation2 + $0x240] sm:$0xf]  ;;  %v8481_v1 = vld [vmem:[#allocation2 + $0x24c] sm:$0xf0]  ;;  %v5754_v5 = vor.u32 %v8449_v63, %v5753_v61  ;;  %2266 = vmatpush.bf16.msra.mxu3 %v6026_v62 }
  0x2a   :  { %v6009_v2 = vld [vmem:[#allocation2 + $0x340] sm:$0xf]  ;;  %v8513_v3 = vld [vmem:[#allocation2 + $0x34c] sm:$0xf0]  ;;  %v5882_v6 = vor.u32 %v8481_v1, %v5881_v0  ;;  %2228 = vmatpush.bf16.msra.mxu0 %v5626_v4 }
  0x2b   :  { %v5609_v7 = vld [vmem:[#allocation2 + $0x20] sm:$0xf]  ;;  %v8413_v8 = vld [vmem:[#allocation2 + $0x2c] sm:$0xf0]  ;;  %v6010_v10 = vor.u32 %v8513_v3, %v6009_v2  ;;  %2241 = vmatpush.bf16.msra.mxu1 %v5754_v5 }
  0x2c   :  { %v5737_v9 = vld [vmem:[#allocation2 + $0x120] sm:$0xf]  ;;  %v8445_v11 = vld [vmem:[#allocation2 + $0x12c] sm:$0xf0]  ;;  %v5610_v16 = vor.u32 %v8413_v8, %v5609_v7  ;;  %2254 = vmatpush.bf16.msra.mxu2 %v5882_v6 }
  0x2d   :  { %v5865_v12 = vld [vmem:[#allocation2 + $0x220] sm:$0xf]  ;;  %v8477_v13 = vld [vmem:[#allocation2 + $0x22c] sm:$0xf0]  ;;  %v5738_v19 = vor.u32 %v8445_v11, %v5737_v9  ;;  %2267 = vmatpush.bf16.msra.mxu3 %v6010_v10  ;;  %v82_v10 = vld [vmem:[%s9592_s0 + $0x18] sm:$0xff] }
  0x2e   :  { %v5993_v14 = vld [vmem:[#allocation2 + $0x320] sm:$0xf]  ;;  %v8509_v15 = vld [vmem:[#allocation2 + $0x32c] sm:$0xf0]  ;;  %v5866_v20 = vor.u32 %v8477_v13, %v5865_v12  ;;  %2229 = vmatpush.bf16.msra.mxu0 %v5610_v16 }
  0x2f   :  { %v5593_v17 = vld [vmem:[#allocation2] sm:$0xf]  ;;  %v8409_v18 = vld [vmem:[#allocation2 + $0xc] sm:$0xf0]  ;;  %v5994_v24 = vor.u32 %v8509_v15, %v5993_v14  ;;  %2242 = vmatpush.bf16.msra.mxu1 %v5738_v19  ;;  %v9286_v15 = vpack.c.bf16 %v82_v10, %v82_v10  ;;  %v80_v19 = vld [vmem:[%s9592_s0 + $0x8] sm:$0xff] }
  0x30   :  { %v5721_v21 = vld [vmem:[#allocation2 + $0x100] sm:$0xf]  ;;  %v8441_v22 = vld [vmem:[#allocation2 + $0x10c] sm:$0xf0]  ;;  %v5594_v31 = vor.u32 %v8409_v18, %v5593_v17  ;;  %2255 = vmatpush.bf16.msra.mxu2 %v5866_v20 }
  0x31   :  { %v5849_v23 = vld [vmem:[#allocation2 + $0x200] sm:$0xf]  ;;  %v8473_v25 = vld [vmem:[#allocation2 + $0x20c] sm:$0xf0]  ;;  %v5722_v35 = vor.u32 %v8441_v22, %v5721_v21  ;;  %2268 = vmatpush.bf16.msra.mxu3 %v5994_v24 }
  0x32   :  { %v5977_v26 = vld [vmem:[#allocation2 + $0x300] sm:$0xf]  ;;  %v8505_v27 = vld [vmem:[#allocation2 + $0x30c] sm:$0xf0]  ;;  %v5850_v36 = vor.u32 %v8473_v25, %v5849_v23  ;;  %2230 = vmatpush.bf16.msra.mxu0 %v5594_v31  ;;  %v9294_v25 = vpack.c.bf16 %v80_v19, %v80_v19 }
  0x33   :  { %v6217_v28 = vld [vmem:[#allocation2 + $0x4e0] sm:$0xf]  ;;  %v8565_v29 = vld [vmem:[#allocation2 + $0x4ec] sm:$0xf0]  ;;  %v5978_v39 = vor.u32 %v8505_v27, %v5977_v26  ;;  %2243 = vmatpush.bf16.msra.mxu1 %v5722_v35 }
  0x34   :  { %v6345_v30 = vld [vmem:[#allocation2 + $0x5e0] sm:$0xf]  ;;  %v8597_v32 = vld [vmem:[#allocation2 + $0x5ec] sm:$0xf0]  ;;  %v6218_v40 = vor.u32 %v8565_v29, %v6217_v28  ;;  %2256 = vmatpush.bf16.msra.mxu2 %v5850_v36 }
  0x35   :  { %v6473_v33 = vld [vmem:[#allocation2 + $0x6e0] sm:$0xf]  ;;  %v8629_v34 = vld [vmem:[#allocation2 + $0x6ec] sm:$0xf0]  ;;  %v6346_v41 = vor.u32 %v8597_v32, %v6345_v30  ;;  %2269 = vmatpush.bf16.msra.mxu3 %v5978_v39 }
  0x36   :  { %v6601_v37 = vld [vmem:[#allocation2 + $0x7e0] sm:$0xf]  ;;  %v8661_v38 = vld [vmem:[#allocation2 + $0x7ec] sm:$0xf0]  ;;  %v6474_v42 = vor.u32 %v8629_v34, %v6473_v33  ;;  %2275 = vmatpush.bf16.msrb.mxu0 %v6218_v40  ;;  %2244 = vmatmul.bf16.vlgmr.msra.gmra.mxu1 %v9294_v25 }
  0x37   :  { %v6201_v43 = vld [vmem:[#allocation2 + $0x4c0] sm:$0xf]  ;;  %v8561_v44 = vld [vmem:[#allocation2 + $0x4cc] sm:$0xf0]  ;;  %v6602_v46 = vor.u32 %v8661_v38, %v6601_v37  ;;  %2288 = vmatpush.bf16.msrb.mxu1 %v6346_v41 }
  0x38   :  { %v6329_v45 = vld [vmem:[#allocation2 + $0x5c0] sm:$0xf]  ;;  %v8593_v47 = vld [vmem:[#allocation2 + $0x5cc] sm:$0xf0]  ;;  %v6202_v52 = vor.u32 %v8561_v44, %v6201_v43  ;;  %2301 = vmatpush.bf16.msrb.mxu2 %v6474_v42  ;;  %2270 = vmatmul.bf16.vlgmr.msra.gmra.mxu3 %v9286_v15 }
  0x39   :  { %v6457_v48 = vld [vmem:[#allocation2 + $0x6c0] sm:$0xf]  ;;  %v8625_v49 = vld [vmem:[#allocation2 + $0x6cc] sm:$0xf0]  ;;  %v6330_v54 = vor.u32 %v8593_v47, %v6329_v45  ;;  %2314 = vmatpush.bf16.msrb.mxu3 %v6602_v46 }
  0x3a   :  { %v6585_v50 = vld [vmem:[#allocation2 + $0x7c0] sm:$0xf]  ;;  %v8657_v51 = vld [vmem:[#allocation2 + $0x7cc] sm:$0xf0]  ;;  %v6458_v55 = vor.u32 %v8625_v49, %v6457_v48  ;;  %2276 = vmatpush.bf16.msrb.mxu0 %v6202_v52 }
  0x3b   :  { %v6185_v53 = vld [vmem:[#allocation2 + $0x4a0] sm:$0xf]  ;;  %v8557_v56 = vld [vmem:[#allocation2 + $0x4ac] sm:$0xf0]  ;;  %v6586_v59 = vor.u32 %v8657_v51, %v6585_v50  ;;  %2289 = vmatpush.bf16.msrb.mxu1 %v6330_v54 }
  0x3c   :  { %v6313_v57 = vld [vmem:[#allocation2 + $0x5a0] sm:$0xf]  ;;  %v8589_v58 = vld [vmem:[#allocation2 + $0x5ac] sm:$0xf0]  ;;  %v6186_v0 = vor.u32 %v8557_v56, %v6185_v53  ;;  %2302 = vmatpush.bf16.msrb.mxu2 %v6458_v55 }
  0x3d   :  { %v6441_v60 = vld [vmem:[#allocation2 + $0x6a0] sm:$0xf]  ;;  %v8621_v61 = vld [vmem:[#allocation2 + $0x6ac] sm:$0xf0]  ;;  %v6314_v1 = vor.u32 %v8589_v58, %v6313_v57  ;;  %2315 = vmatpush.bf16.msrb.mxu3 %v6586_v59 }
  0x3e   :  { %v6569_v62 = vld [vmem:[#allocation2 + $0x7a0] sm:$0xf]  ;;  %v8653_v63 = vld [vmem:[#allocation2 + $0x7ac] sm:$0xf0]  ;;  %v6442_v5 = vor.u32 %v8621_v61, %v6441_v60  ;;  %2277 = vmatpush.bf16.msrb.mxu0 %v6186_v0 }
  0x3f   :  { %v6169_v2 = vld [vmem:[#allocation2 + $0x480] sm:$0xf]  ;;  %v81_v3 = vld [vmem:[%s9592_s0 + $0x10] sm:$0xff]  ;;  %v6570_v11 = vor.u32 %v8653_v63, %v6569_v62  ;;  %2290 = vmatpush.bf16.msrb.mxu1 %v6314_v1 }
  0x40   :  { %v79_v4 = vld [vmem:[%s9592_s0] sm:$0xff]  ;;  %v8553_v6 = vld [vmem:[#allocation2 + $0x48c] sm:$0xf0]  ;;  %v9279_v8 = vpack.c.bf16 %v81_v3, %v81_v3  ;;  %2303 = vmatpush.bf16.msrb.mxu2 %v6442_v5 }
  0x41   :  { %v6297_v7 = vld [vmem:[#allocation2 + $0x580] sm:$0xf]  ;;  %v9281_v9 = vpack.c.bf16 %v79_v4, %v79_v4  ;;  %v8585_v12 = vld [vmem:[#allocation2 + $0x58c] sm:$0xf0]  ;;  %v6170_v18 = vor.u32 %v8553_v6, %v6169_v2  ;;  %2316 = vmatpush.bf16.msrb.mxu3 %v6570_v11 }
  0x42   :  { %v6425_v13 = vld [vmem:[#allocation2 + $0x680] sm:$0xf]  ;;  %v8617_v14 = vld [vmem:[#allocation2 + $0x68c] sm:$0xf0]  ;;  %2257 = vmatmul.bf16.vlgmr.msra.gmra.mxu2 %v9279_v8  ;;  %v6298_v20 = vor.u32 %v8585_v12, %v6297_v7 }
  0x43   :  { %v6553_v16 = vld [vmem:[#allocation2 + $0x780] sm:$0xf]  ;;  %v8649_v17 = vld [vmem:[#allocation2 + $0x78c] sm:$0xf0]  ;;  %2231 = vmatmul.bf16.vlgmr.msra.gmra.mxu0 %v9281_v9  ;;  %v6426_v21 = vor.u32 %v8617_v14, %v6425_v13 }
  0x44   :  { %v6153_v22 = vld [vmem:[#allocation2 + $0x460] sm:$0xf]  ;;  %v8549_v23 = vld [vmem:[#allocation2 + $0x46c] sm:$0xf0]  ;;  %v6554_v26 = vor.u32 %v8649_v17, %v6553_v16  ;;  %2278 = vmatpush.bf16.msrb.mxu0 %v6170_v18  ;;  %2291 = vmatpush.bf16.msrb.mxu1 %v6298_v20  ;;  %v8435_v16 = vld [vmem:[#allocation2 + $0xe4] sm:$0xf] }
  0x45   :  { %v6281_v24 = vld [vmem:[#allocation2 + $0x560] sm:$0xf]  ;;  %v8581_v27 = vld [vmem:[#allocation2 + $0x56c] sm:$0xf0]  ;;  %v6154_v32 = vor.u32 %v8549_v23, %v6153_v22  ;;  %2304 = vmatpush.bf16.msrb.mxu2 %v6426_v21  ;;  %v5707_v17 = vld [vmem:[#allocation2 + $0xf0] sm:$0xf0] }
  0x46   :  { %v6409_v28 = vld [vmem:[#allocation2 + $0x660] sm:$0xf]  ;;  %v8613_v29 = vld [vmem:[#allocation2 + $0x66c] sm:$0xf0]  ;;  %v6282_v33 = vor.u32 %v8581_v27, %v6281_v24  ;;  %2317 = vmatpush.bf16.msrb.mxu3 %v6554_v26  ;;  %v86_v23 = vld [vmem:[%s9592_s0 + $0x38] sm:$0xff] }
  0x47   :  { %v6537_v30 = vld [vmem:[#allocation2 + $0x760] sm:$0xf]  ;;  %v8645_v31 = vld [vmem:[#allocation2 + $0x76c] sm:$0xf0]  ;;  %v6410_v34 = vor.u32 %v8613_v29, %v6409_v28  ;;  %v84_v29 = vld [vmem:[%s9592_s0 + $0x28] sm:$0xff] }
  0x48   :  { %v6137_v35 = vld [vmem:[#allocation2 + $0x440] sm:$0xf]  ;;  %v8545_v36 = vld [vmem:[#allocation2 + $0x44c] sm:$0xf0]  ;;  %v6538_v38 = vor.u32 %v8645_v31, %v6537_v30  ;;  %2279 = vmatpush.bf16.msrb.mxu0 %v6154_v32  ;;  %2292 = vmatpush.bf16.msrb.mxu1 %v6282_v33  ;;  %v5710_v30 = vor.u32 %v8435_v16, %v5707_v17 }
  0x49   :  { %v6265_v37 = vld [vmem:[#allocation2 + $0x540] sm:$0xf]  ;;  %v8577_v39 = vld [vmem:[#allocation2 + $0x54c] sm:$0xf0]  ;;  %v6138_v44 = vor.u32 %v8545_v36, %v6137_v35  ;;  %2305 = vmatpush.bf16.msrb.mxu2 %v6410_v34  ;;  %v8431_v35 = vld [vmem:[#allocation2 + $0xc4] sm:$0xf] }
  0x4a   :  { %v6393_v40 = vld [vmem:[#allocation2 + $0x640] sm:$0xf]  ;;  %v8609_v41 = vld [vmem:[#allocation2 + $0x64c] sm:$0xf0]  ;;  %v6266_v45 = vor.u32 %v8577_v39, %v6265_v37  ;;  %2318 = vmatpush.bf16.msrb.mxu3 %v6538_v38  ;;  %v5691_v36 = vld [vmem:[#allocation2 + $0xd0] sm:$0xf0]  ;;  %v9313_v38 = vpack.c.bf16 %v86_v23, %v86_v23 }
  0x4b   :  { %v6521_v42 = vld [vmem:[#allocation2 + $0x740] sm:$0xf]  ;;  %v8641_v43 = vld [vmem:[#allocation2 + $0x74c] sm:$0xf0]  ;;  %v6394_v46 = vor.u32 %v8609_v41, %v6393_v40  ;;  %v9315_v40 = vpack.c.bf16 %v84_v29, %v84_v29 }
  0x4c   :  { %v6121_v47 = vld [vmem:[#allocation2 + $0x420] sm:$0xf]  ;;  %v8541_v48 = vld [vmem:[#allocation2 + $0x42c] sm:$0xf0]  ;;  %v6522_v50 = vor.u32 %v8641_v43, %v6521_v42  ;;  %2280 = vmatpush.bf16.msrb.mxu0 %v6138_v44  ;;  %2293 = vmatpush.bf16.msrb.mxu1 %v6266_v45 }
  0x4d   :  { %v6249_v49 = vld [vmem:[#allocation2 + $0x520] sm:$0xf]  ;;  %v8573_v51 = vld [vmem:[#allocation2 + $0x52c] sm:$0xf0]  ;;  %v6122_v56 = vor.u32 %v8541_v48, %v6121_v47  ;;  %2306 = vmatpush.bf16.msrb.mxu2 %v6394_v46  ;;  %v5694_v46 = vor.u32 %v8431_v35, %v5691_v36 }
  0x4e   :  { %v6377_v52 = vld [vmem:[#allocation2 + $0x620] sm:$0xf]  ;;  %v8605_v53 = vld [vmem:[#allocation2 + $0x62c] sm:$0xf0]  ;;  %v6250_v59 = vor.u32 %v8573_v51, %v6249_v49  ;;  %2319 = vmatpush.bf16.msrb.mxu3 %v6522_v50  ;;  %v8427_v50 = vld [vmem:[#allocation2 + $0xa4] sm:$0xf] }
  0x4f   :  { %v6505_v54 = vld [vmem:[#allocation2 + $0x720] sm:$0xf]  ;;  %v8637_v55 = vld [vmem:[#allocation2 + $0x72c] sm:$0xf0]  ;;  %v6378_v60 = vor.u32 %v8605_v53, %v6377_v52  ;;  %v5675_v51 = vld [vmem:[#allocation2 + $0xb0] sm:$0xf0] }
  0x50   :  { %v6105_v57 = vld [vmem:[#allocation2 + $0x400] sm:$0xf]  ;;  %v8537_v58 = vld [vmem:[#allocation2 + $0x40c] sm:$0xf0]  ;;  %v6506_v0 = vor.u32 %v8637_v55, %v6505_v54  ;;  %2281 = vmatpush.bf16.msrb.mxu0 %v6122_v56  ;;  %2294 = vmatpush.bf16.msrb.mxu1 %v6250_v59 }
  0x51   :  { %v6233_v61 = vld [vmem:[#allocation2 + $0x500] sm:$0xf]  ;;  %v8569_v62 = vld [vmem:[#allocation2 + $0x50c] sm:$0xf0]  ;;  %v6106_v7 = vor.u32 %v8537_v58, %v6105_v57  ;;  %2307 = vmatpush.bf16.msrb.mxu2 %v6378_v60  ;;  %v5678_v58 = vor.u32 %v8427_v50, %v5675_v51 }
  0x52   :  { %v6361_v63 = vld [vmem:[#allocation2 + $0x600] sm:$0xf]  ;;  %v8601_v1 = vld [vmem:[#allocation2 + $0x60c] sm:$0xf0]  ;;  %v6234_v13 = vor.u32 %v8569_v62, %v6233_v61  ;;  %2320 = vmatpush.bf16.msrb.mxu3 %v6506_v0  ;;  %v8423_v62 = vld [vmem:[#allocation2 + $0x84] sm:$0xf] }
  0x53   :  { %v6489_v2 = vld [vmem:[#allocation2 + $0x700] sm:$0xf]  ;;  %v8633_v3 = vld [vmem:[#allocation2 + $0x70c] sm:$0xf0]  ;;  %v6362_v14 = vor.u32 %v8601_v1, %v6361_v63  ;;  %v5659_v63 = vld [vmem:[#allocation2 + $0x90] sm:$0xf0] }
  0x54   :  { %v6729_v4 = vld [vmem:[#allocation2 + $0x8e0] sm:$0xf]  ;;  %v8693_v5 = vld [vmem:[#allocation2 + $0x8ec] sm:$0xf0]  ;;  %v6490_v19 = vor.u32 %v8633_v3, %v6489_v2  ;;  %2282 = vmatpush.bf16.msrb.mxu0 %v6106_v7  ;;  %2295 = vmatpush.bf16.msrb.mxu1 %v6234_v13  ;;  %v5643_v13 = vld [vmem:[#allocation2 + $0x70] sm:$0xf0] }
  0x55   :  { %v6857_v6 = vld [vmem:[#allocation2 + $0x9e0] sm:$0xf]  ;;  %v8725_v10 = vld [vmem:[#allocation2 + $0x9ec] sm:$0xf0]  ;;  %v6730_v20 = vor.u32 %v8693_v5, %v6729_v4  ;;  %2308 = vmatpush.bf16.msrb.mxu2 %v6362_v14 }
  0x56   :  { %v6985_v11 = vld [vmem:[#allocation2 + $0xae0] sm:$0xf]  ;;  %v8757_v12 = vld [vmem:[#allocation2 + $0xaec] sm:$0xf0]  ;;  %v6858_v24 = vor.u32 %v8725_v10, %v6857_v6  ;;  %2321 = vmatpush.bf16.msrb.mxu3 %v6490_v19  ;;  %v5662_v6 = vor.u32 %v8423_v62, %v5659_v63  ;;  %v6091_v62 = vld [vmem:[#allocation2 + $0x3f0] sm:$0xf0] }
  0x57   :  { %v85_v18 = vld [vmem:[%s9592_s0 + $0x30] sm:$0xff]  ;;  %v6713_v21 = vld [vmem:[#allocation2 + $0x8c0] sm:$0xf]  ;;  %v6986_v26 = vor.u32 %v8757_v12, %v6985_v11  ;;  %2296 = vmatmul.bf16.vlgmr.msrb.gmra.mxu1 %v9315_v40  ;;  %v8419_v12 = vld [vmem:[#allocation2 + $0x64] sm:$0xf] }
  0x58   :  { %v83_v22 = vld [vmem:[%s9592_s0 + $0x20] sm:$0xff]  ;;  %v8689_v27 = vld [vmem:[#allocation2 + $0x8cc] sm:$0xf0]  ;;  %v9309_v34 = vpack.c.bf16 %v85_v18, %v85_v18  ;;  %2327 = vmatpush.bf16.msra.mxu0 %v6730_v20  ;;  %2340 = vmatpush.bf16.msra.mxu1 %v6858_v24 }
  0x59   :  { %v6841_v28 = vld [vmem:[#allocation2 + $0x9c0] sm:$0xf]  ;;  %v8721_v31 = vld [vmem:[#allocation2 + $0x9cc] sm:$0xf0]  ;;  %v9311_v37 = vpack.c.bf16 %v83_v22, %v83_v22  ;;  %v6714_v39 = vor.u32 %v8689_v27, %v6713_v21  ;;  %2353 = vmatpush.bf16.msra.mxu2 %v6986_v26  ;;  %2322 = vmatmul.bf16.vlgmr.msrb.gmra.mxu3 %v9313_v38  ;;  %v5646_v21 = vor.u32 %v8419_v12, %v5643_v13  ;;  %v8415_v26 = vld [vmem:[#allocation2 + $0x44] sm:$0xf] }
  0x5a   :  { %v6969_v32 = vld [vmem:[#allocation2 + $0xac0] sm:$0xf]  ;;  %v8753_v33 = vld [vmem:[#allocation2 + $0xacc] sm:$0xf0]  ;;  %v6842_v41 = vor.u32 %v8721_v31, %v6841_v28  ;;  %2366 = vmatpush.bf16.msra.mxu3 %v5710_v30  ;;  %2309 = vmatmul.bf16.vlgmr.msrb.gmra.mxu2 %v9309_v34  ;;  %v5627_v27 = vld [vmem:[#allocation2 + $0x50] sm:$0xf0] }
  0x5b   :  { %v6970_v42 = vor.u32 %v8753_v33, %v6969_v32  ;;  %v6697_v43 = vld [vmem:[#allocation2 + $0x8a0] sm:$0xf]  ;;  %v8685_v44 = vld [vmem:[#allocation2 + $0x8ac] sm:$0xf0]  ;;  %2283 = vmatmul.bf16.vlgmr.msrb.gmra.mxu0 %v9311_v37  ;;  %v5630_v35 = vor.u32 %v8415_v26, %v5627_v27  ;;  %v8463_v12 = vld [vmem:[#allocation2 + $0x1c4] sm:$0xf] }
  0x5c   :  { %v6825_v45 = vld [vmem:[#allocation2 + $0x9a0] sm:$0xf]  ;;  %v8717_v47 = vld [vmem:[#allocation2 + $0x9ac] sm:$0xf0]  ;;  %2328 = vmatpush.bf16.msra.mxu0 %v6714_v39  ;;  %v6698_v52 = vor.u32 %v8685_v44, %v6697_v43  ;;  %2341 = vmatpush.bf16.msra.mxu1 %v6842_v41  ;;  %v5611_v43 = vld [vmem:[#allocation2 + $0x30] sm:$0xf0] }
  0x5d   :  { %v6953_v48 = vld [vmem:[#allocation2 + $0xaa0] sm:$0xf]  ;;  %v8749_v49 = vld [vmem:[#allocation2 + $0xaac] sm:$0xf0]  ;;  %2354 = vmatpush.bf16.msra.mxu2 %v6970_v42  ;;  %v6826_v53 = vor.u32 %v8717_v47, %v6825_v45  ;;  %v8411_v42 = vld [vmem:[#allocation2 + $0x24] sm:$0xf] }
  0x5e   :  { %v6954_v54 = vor.u32 %v8749_v49, %v6953_v48  ;;  %v6681_v55 = vld [vmem:[#allocation2 + $0x880] sm:$0xf]  ;;  %v8681_v56 = vld [vmem:[#allocation2 + $0x88c] sm:$0xf0]  ;;  %2367 = vmatpush.bf16.msra.mxu3 %v5694_v46  ;;  %v5819_v13 = vld [vmem:[#allocation2 + $0x1d0] sm:$0xf0] }
  0x5f   :  { %v6809_v57 = vld [vmem:[#allocation2 + $0x980] sm:$0xf]  ;;  %v8713_v59 = vld [vmem:[#allocation2 + $0x98c] sm:$0xf0]  ;;  %v6682_v0 = vor.u32 %v8681_v56, %v6681_v55  ;;  %v5595_v55 = vld [vmem:[#allocation2 + $0x10] sm:$0xf0]  ;;  %v5822_v26 = vor.u32 %v8463_v12, %v5819_v13 }
  0x60   :  { %v6937_v60 = vld [vmem:[#allocation2 + $0xa80] sm:$0xf]  ;;  %v8745_v61 = vld [vmem:[#allocation2 + $0xa8c] sm:$0xf0]  ;;  %2329 = vmatpush.bf16.msra.mxu0 %v6698_v52  ;;  %2342 = vmatpush.bf16.msra.mxu1 %v6826_v53  ;;  %v6810_v1 = vor.u32 %v8713_v59, %v6809_v57  ;;  %v5614_v52 = vor.u32 %v8411_v42, %v5611_v43  ;;  %v8467_v56 = vld [vmem:[#allocation2 + $0x1e4] sm:$0xf] }
  0x61   :  { %2355 = vmatpush.bf16.msra.mxu2 %v6954_v54  ;;  %v6938_v2 = vor.u32 %v8745_v61, %v6937_v60  ;;  %v6665_v3 = vld [vmem:[#allocation2 + $0x860] sm:$0xf]  ;;  %v8677_v4 = vld [vmem:[#allocation2 + $0x86c] sm:$0xf0]  ;;  %v8407_v54 = vld [vmem:[#allocation2 + $0x4] sm:$0xf] }
  0x62   :  { %v6793_v5 = vld [vmem:[#allocation2 + $0x960] sm:$0xf]  ;;  %2368 = vmatpush.bf16.msra.mxu3 %v5678_v58  ;;  %v8709_v7 = vld [vmem:[#allocation2 + $0x96c] sm:$0xf0]  ;;  %v6666_v14 = vor.u32 %v8677_v4, %v6665_v3  ;;  %v5835_v57 = vld [vmem:[#allocation2 + $0x1f0] sm:$0xf0]  ;;  %v5598_v4 = vor.u32 %v8407_v54, %v5595_v55 }
  0x63   :  { %v6921_v10 = vld [vmem:[#allocation2 + $0xa60] sm:$0xf]  ;;  %v8741_v11 = vld [vmem:[#allocation2 + $0xa6c] sm:$0xf0]  ;;  %v6794_v16 = vor.u32 %v8709_v7, %v6793_v5  ;;  %v8499_v58 = vld [vmem:[#allocation2 + $0x2e4] sm:$0xf]  ;;  %v5838_v5 = vor.u32 %v8467_v56, %v5835_v57 }
  0x64   :  { %2330 = vmatpush.bf16.msra.mxu0 %v6682_v0  ;;  %2343 = vmatpush.bf16.msra.mxu1 %v6810_v1  ;;  %v6922_v17 = vor.u32 %v8741_v11, %v6921_v10  ;;  %v6649_v18 = vld [vmem:[#allocation2 + $0x840] sm:$0xf]  ;;  %v8673_v19 = vld [vmem:[#allocation2 + $0x84c] sm:$0xf0]  ;;  %v5963_v60 = vld [vmem:[#allocation2 + $0x2f0] sm:$0xf0] }
  0x65   :  { %2356 = vmatpush.bf16.msra.mxu2 %v6938_v2  ;;  %v6777_v20 = vld [vmem:[#allocation2 + $0x940] sm:$0xf]  ;;  %v8705_v22 = vld [vmem:[#allocation2 + $0x94c] sm:$0xf0]  ;;  %v6650_v28 = vor.u32 %v8673_v19, %v6649_v18  ;;  %v8531_v61 = vld [vmem:[#allocation2 + $0x3e4] sm:$0xf]  ;;  %v5966_v10 = vor.u32 %v8499_v58, %v5963_v60 }
  0x66   :  { %2369 = vmatpush.bf16.msra.mxu3 %v5662_v6  ;;  %v6905_v23 = vld [vmem:[#allocation2 + $0xa40] sm:$0xf]  ;;  %v8737_v24 = vld [vmem:[#allocation2 + $0xa4c] sm:$0xf0]  ;;  %v6778_v29 = vor.u32 %v8705_v22, %v6777_v20  ;;  %v8563_v1 = vld [vmem:[#allocation2 + $0x4e4] sm:$0xf]  ;;  %v6094_v11 = vor.u32 %v8531_v61, %v6091_v62 }
  0x67   :  { %v6906_v30 = vor.u32 %v8737_v24, %v6905_v23  ;;  %v6633_v31 = vld [vmem:[#allocation2 + $0x820] sm:$0xf]  ;;  %v8669_v32 = vld [vmem:[#allocation2 + $0x82c] sm:$0xf0]  ;;  %v6219_v2 = vld [vmem:[#allocation2 + $0x4f0] sm:$0xf0] }
  0x68   :  { %2331 = vmatpush.bf16.msra.mxu0 %v6666_v14  ;;  %2344 = vmatpush.bf16.msra.mxu1 %v6794_v16  ;;  %v6761_v33 = vld [vmem:[#allocation2 + $0x920] sm:$0xf]  ;;  %v8701_v36 = vld [vmem:[#allocation2 + $0x92c] sm:$0xf0]  ;;  %v6634_v44 = vor.u32 %v8669_v32, %v6633_v31  ;;  %v88_v7 = vld [vmem:[%s9592_s0 + $0x48] sm:$0xff]  ;;  %v6222_v16 = vor.u32 %v8563_v1, %v6219_v2 }
  0x69   :  { %2357 = vmatpush.bf16.msra.mxu2 %v6922_v17  ;;  %v6889_v39 = vld [vmem:[#allocation2 + $0xa20] sm:$0xf]  ;;  %v8733_v41 = vld [vmem:[#allocation2 + $0xa2c] sm:$0xf0]  ;;  %v6762_v47 = vor.u32 %v8701_v36, %v6761_v33  ;;  %v8495_v14 = vld [vmem:[#allocation2 + $0x2c4] sm:$0xf]  ;;  %v9334_v22 = vpack.c.bf16 %v88_v7, %v88_v7 }
  0x6a   :  { %2370 = vmatpush.bf16.msra.mxu3 %v5646_v21  ;;  %v6617_v45 = vld [vmem:[#allocation2 + $0x800] sm:$0xf]  ;;  %v8665_v46 = vld [vmem:[#allocation2 + $0x80c] sm:$0xf0]  ;;  %v6890_v48 = vor.u32 %v8733_v41, %v6889_v39  ;;  %v5947_v18 = vld [vmem:[#allocation2 + $0x2d0] sm:$0xf0] }
  0x6b   :  { %v6745_v49 = vld [vmem:[#allocation2 + $0x900] sm:$0xf]  ;;  %v8697_v50 = vld [vmem:[#allocation2 + $0x90c] sm:$0xf0]  ;;  %v6618_v59 = vor.u32 %v8665_v46, %v6617_v45  ;;  %v8527_v19 = vld [vmem:[#allocation2 + $0x3c4] sm:$0xf]  ;;  %v5950_v27 = vor.u32 %v8495_v14, %v5947_v18 }
  0x6c   :  { %2332 = vmatpush.bf16.msra.mxu0 %v6650_v28  ;;  %2345 = vmatpush.bf16.msra.mxu1 %v6778_v29  ;;  %v6873_v51 = vld [vmem:[#allocation2 + $0xa00] sm:$0xf]  ;;  %v8729_v53 = vld [vmem:[#allocation2 + $0xa0c] sm:$0xf0]  ;;  %v6746_v63 = vor.u32 %v8697_v50, %v6745_v49  ;;  %v6075_v20 = vld [vmem:[#allocation2 + $0x3d0] sm:$0xf0] }
  0x6d   :  { %2358 = vmatpush.bf16.msra.mxu2 %v6906_v30  ;;  %v6874_v0 = vor.u32 %v8729_v53, %v6873_v51  ;;  %v87_v3 = vld [vmem:[%s9592_s0 + $0x40] sm:$0xff]  ;;  %v89_v6 = vld [vmem:[%s9592_s0 + $0x50] sm:$0xff]  ;;  %v6078_v28 = vor.u32 %v8527_v19, %v6075_v20 }
  0x6e   :  { %2371 = vmatpush.bf16.msra.mxu3 %v5630_v35  ;;  %v9330_v17 = vpack.c.bf16 %v87_v3, %v87_v3  ;;  %v9332_v21 = vpack.c.bf16 %v89_v6, %v89_v6  ;;  %v8559_v23 = vld [vmem:[#allocation2 + $0x4c4] sm:$0xf]  ;;  %v6203_v24 = vld [vmem:[#allocation2 + $0x4d0] sm:$0xf0] }
  0x6f   :  { %v8459_v29 = vld [vmem:[#allocation2 + $0x1a4] sm:$0xf]  ;;  %v5803_v30 = vld [vmem:[#allocation2 + $0x1b0] sm:$0xf0]  ;;  %v6206_v32 = vor.u32 %v8559_v23, %v6203_v24 }
  0x70   :  { %2333 = vmatpush.bf16.msra.mxu0 %v6634_v44  ;;  %2346 = vmatpush.bf16.msra.mxu1 %v6762_v47  ;;  %v8491_v31 = vld [vmem:[#allocation2 + $0x2a4] sm:$0xf]  ;;  %v5931_v33 = vld [vmem:[#allocation2 + $0x2b0] sm:$0xf0]  ;;  %v5806_v42 = vor.u32 %v8459_v29, %v5803_v30 }
  0x71   :  { %2359 = vmatpush.bf16.msra.mxu2 %v6890_v48  ;;  %v8523_v35 = vld [vmem:[#allocation2 + $0x3a4] sm:$0xf]  ;;  %v6059_v36 = vld [vmem:[#allocation2 + $0x3b0] sm:$0xf0]  ;;  %v5934_v43 = vor.u32 %v8491_v31, %v5931_v33 }
  0x72   :  { %2372 = vmatpush.bf16.msra.mxu3 %v5614_v52  ;;  %v8555_v39 = vld [vmem:[#allocation2 + $0x4a4] sm:$0xf]  ;;  %v6187_v41 = vld [vmem:[#allocation2 + $0x4b0] sm:$0xf0]  ;;  %v6062_v44 = vor.u32 %v8523_v35, %v6059_v36 }
  0x73   :  { %v8455_v45 = vld [vmem:[#allocation2 + $0x184] sm:$0xf]  ;;  %v5787_v46 = vld [vmem:[#allocation2 + $0x190] sm:$0xf0]  ;;  %v6190_v48 = vor.u32 %v8555_v39, %v6187_v41 }
  0x74   :  { %2334 = vmatpush.bf16.msra.mxu0 %v6618_v59  ;;  %2347 = vmatpush.bf16.msra.mxu1 %v6746_v63  ;;  %v8487_v47 = vld [vmem:[#allocation2 + $0x284] sm:$0xf]  ;;  %v5915_v49 = vld [vmem:[#allocation2 + $0x290] sm:$0xf0]  ;;  %v5790_v54 = vor.u32 %v8455_v45, %v5787_v46 }
  0x75   :  { %2360 = vmatpush.bf16.msra.mxu2 %v6874_v0  ;;  %v8519_v50 = vld [vmem:[#allocation2 + $0x384] sm:$0xf]  ;;  %v6043_v51 = vld [vmem:[#allocation2 + $0x390] sm:$0xf0]  ;;  %v5918_v55 = vor.u32 %v8487_v47, %v5915_v49 }
  0x76   :  { %2373 = vmatpush.bf16.msra.mxu3 %v5598_v4  ;;  %v8551_v52 = vld [vmem:[#allocation2 + $0x484] sm:$0xf]  ;;  %v6171_v53 = vld [vmem:[#allocation2 + $0x490] sm:$0xf0]  ;;  %v6046_v56 = vor.u32 %v8519_v50, %v6043_v51 }
  0x77   :  { %2335 = vmatmul.bf16.vlgmr.msra.gmra.mxu0 %v9330_v17  ;;  %2348 = vmatmul.bf16.vlgmr.msra.gmra.mxu1 %v9334_v22  ;;  %v8451_v57 = vld [vmem:[#allocation2 + $0x164] sm:$0xf]  ;;  %v5771_v58 = vld [vmem:[#allocation2 + $0x170] sm:$0xf0]  ;;  %v6174_v60 = vor.u32 %v8551_v52, %v6171_v53 }
  0x78   :  { %2379 = vmatpush.bf16.msrb.mxu0 %v5838_v5  ;;  %2392 = vmatpush.bf16.msrb.mxu1 %v5966_v10  ;;  %v8483_v59 = vld [vmem:[#allocation2 + $0x264] sm:$0xf]  ;;  %v5899_v61 = vld [vmem:[#allocation2 + $0x270] sm:$0xf0]  ;;  %v5774_v2 = vor.u32 %v8451_v57, %v5771_v58 }
  0x79   :  { %2405 = vmatpush.bf16.msrb.mxu2 %v6094_v11  ;;  %2374 = vmatmul.bf16.vlgmr.msra.gmra.mxu3 %v9281_v9  ;;  %v8515_v62 = vld [vmem:[#allocation2 + $0x364] sm:$0xf]  ;;  %v6027_v63 = vld [vmem:[#allocation2 + $0x370] sm:$0xf0]  ;;  %v5902_v3 = vor.u32 %v8483_v59, %v5899_v61 }
  0x7a   :  { %2418 = vmatpush.bf16.msrb.mxu3 %v6222_v16  ;;  %2361 = vmatmul.bf16.vlgmr.msra.gmra.mxu2 %v9332_v21  ;;  %v8547_v0 = vld [vmem:[#allocation2 + $0x464] sm:$0xf]  ;;  %v6155_v1 = vld [vmem:[#allocation2 + $0x470] sm:$0xf0]  ;;  %v6030_v4 = vor.u32 %v8515_v62, %v6027_v63 }
  0x7b   :  { %v8447_v5 = vld [vmem:[#allocation2 + $0x144] sm:$0xf]  ;;  %v5755_v6 = vld [vmem:[#allocation2 + $0x150] sm:$0xf0]  ;;  %v6158_v10 = vor.u32 %v8547_v0, %v6155_v1 }
  0x7c   :  { %2380 = vmatpush.bf16.msrb.mxu0 %v5822_v26  ;;  %2393 = vmatpush.bf16.msrb.mxu1 %v5950_v27  ;;  %v8479_v7 = vld [vmem:[#allocation2 + $0x244] sm:$0xf]  ;;  %v5883_v11 = vld [vmem:[#allocation2 + $0x250] sm:$0xf0]  ;;  %v5758_v18 = vor.u32 %v8447_v5, %v5755_v6 }
  0x7d   :  { %2406 = vmatpush.bf16.msrb.mxu2 %v6078_v28  ;;  %v8511_v12 = vld [vmem:[#allocation2 + $0x344] sm:$0xf]  ;;  %v6011_v13 = vld [vmem:[#allocation2 + $0x350] sm:$0xf0]  ;;  %v5886_v19 = vor.u32 %v8479_v7, %v5883_v11 }
  0x7e   :  { %2419 = vmatpush.bf16.msrb.mxu3 %v6206_v32  ;;  %v8543_v14 = vld [vmem:[#allocation2 + $0x444] sm:$0xf]  ;;  %v6139_v16 = vld [vmem:[#allocation2 + $0x450] sm:$0xf0]  ;;  %v6014_v20 = vor.u32 %v8511_v12, %v6011_v13 }
  0x7f   :  { %v8443_v23 = vld [vmem:[#allocation2 + $0x124] sm:$0xf]  ;;  %v5739_v24 = vld [vmem:[#allocation2 + $0x130] sm:$0xf0]  ;;  %v6142_v27 = vor.u32 %v8543_v14, %v6139_v16 }
  0x80   :  { %2381 = vmatpush.bf16.msrb.mxu0 %v5806_v42  ;;  %2394 = vmatpush.bf16.msrb.mxu1 %v5934_v43  ;;  %v8475_v26 = vld [vmem:[#allocation2 + $0x224] sm:$0xf]  ;;  %v5867_v28 = vld [vmem:[#allocation2 + $0x230] sm:$0xf0]  ;;  %v5742_v33 = vor.u32 %v8443_v23, %v5739_v24 }
  0x81   :  { %2407 = vmatpush.bf16.msrb.mxu2 %v6062_v44  ;;  %v8507_v29 = vld [vmem:[#allocation2 + $0x324] sm:$0xf]  ;;  %v5995_v30 = vld [vmem:[#allocation2 + $0x330] sm:$0xf0]  ;;  %v5870_v39 = vor.u32 %v8475_v26, %v5867_v28 }
  0x82   :  { %2420 = vmatpush.bf16.msrb.mxu3 %v6190_v48  ;;  %v8539_v31 = vld [vmem:[#allocation2 + $0x424] sm:$0xf]  ;;  %v6123_v32 = vld [vmem:[#allocation2 + $0x430] sm:$0xf0]  ;;  %v5998_v41 = vor.u32 %v8507_v29, %v5995_v30 }
  0x83   :  { %v8439_v35 = vld [vmem:[#allocation2 + $0x104] sm:$0xf]  ;;  %v5723_v36 = vld [vmem:[#allocation2 + $0x110] sm:$0xf0]  ;;  %v6126_v45 = vor.u32 %v8539_v31, %v6123_v32 }
  0x84   :  { %2382 = vmatpush.bf16.msrb.mxu0 %v5790_v54  ;;  %2395 = vmatpush.bf16.msrb.mxu1 %v5918_v55  ;;  %v8471_v42 = vld [vmem:[#allocation2 + $0x204] sm:$0xf]  ;;  %v5851_v43 = vld [vmem:[#allocation2 + $0x210] sm:$0xf0]  ;;  %v5726_v52 = vor.u32 %v8439_v35, %v5723_v36 }
  0x85   :  { %2408 = vmatpush.bf16.msrb.mxu2 %v6046_v56  ;;  %v8503_v44 = vld [vmem:[#allocation2 + $0x304] sm:$0xf]  ;;  %v5979_v46 = vld [vmem:[#allocation2 + $0x310] sm:$0xf0]  ;;  %v5854_v56 = vor.u32 %v8471_v42, %v5851_v43 }
  0x86   :  { %2421 = vmatpush.bf16.msrb.mxu3 %v6174_v60  ;;  %v8535_v47 = vld [vmem:[#allocation2 + $0x404] sm:$0xf]  ;;  %v6107_v48 = vld [vmem:[#allocation2 + $0x410] sm:$0xf0]  ;;  %v5982_v57 = vor.u32 %v8503_v44, %v5979_v46 }
  0x87   :  { %v8595_v49 = vld [vmem:[#allocation2 + $0x5e4] sm:$0xf]  ;;  %v6347_v50 = vld [vmem:[#allocation2 + $0x5f0] sm:$0xf0]  ;;  %v6110_v60 = vor.u32 %v8535_v47, %v6107_v48 }
  0x88   :  { %2383 = vmatpush.bf16.msrb.mxu0 %v5774_v2  ;;  %2396 = vmatpush.bf16.msrb.mxu1 %v5902_v3  ;;  %v8627_v51 = vld [vmem:[#allocation2 + $0x6e4] sm:$0xf]  ;;  %v6475_v53 = vld [vmem:[#allocation2 + $0x6f0] sm:$0xf0]  ;;  %v6350_v61 = vor.u32 %v8595_v49, %v6347_v50 }
  0x89   :  { %2409 = vmatpush.bf16.msrb.mxu2 %v6030_v4  ;;  %v8659_v54 = vld [vmem:[#allocation2 + $0x7e4] sm:$0xf]  ;;  %v6603_v55 = vld [vmem:[#allocation2 + $0x7f0] sm:$0xf0]  ;;  %v6478_v62 = vor.u32 %v8627_v51, %v6475_v53 }
  0x8a   :  { %2422 = vmatpush.bf16.msrb.mxu3 %v6158_v10  ;;  %v8691_v58 = vld [vmem:[#allocation2 + $0x8e4] sm:$0xf]  ;;  %v6731_v59 = vld [vmem:[#allocation2 + $0x8f0] sm:$0xf0]  ;;  %v6606_v63 = vor.u32 %v8659_v54, %v6603_v55 }
  0x8b   :  { %v8591_v0 = vld [vmem:[#allocation2 + $0x5c4] sm:$0xf]  ;;  %v6331_v1 = vld [vmem:[#allocation2 + $0x5d0] sm:$0xf0]  ;;  %v6734_v3 = vor.u32 %v8691_v58, %v6731_v59 }
  0x8c   :  { %2384 = vmatpush.bf16.msrb.mxu0 %v5758_v18  ;;  %2397 = vmatpush.bf16.msrb.mxu1 %v5886_v19  ;;  %v8623_v2 = vld [vmem:[#allocation2 + $0x6c4] sm:$0xf]  ;;  %v6459_v4 = vld [vmem:[#allocation2 + $0x6d0] sm:$0xf0]  ;;  %v6334_v11 = vor.u32 %v8591_v0, %v6331_v1 }
  0x8d   :  { %2410 = vmatpush.bf16.msrb.mxu2 %v6014_v20  ;;  %v8655_v5 = vld [vmem:[#allocation2 + $0x7c4] sm:$0xf]  ;;  %v6587_v6 = vld [vmem:[#allocation2 + $0x7d0] sm:$0xf0]  ;;  %v6462_v12 = vor.u32 %v8623_v2, %v6459_v4 }
  0x8e   :  { %2423 = vmatpush.bf16.msrb.mxu3 %v6142_v27  ;;  %v8687_v7 = vld [vmem:[#allocation2 + $0x8c4] sm:$0xf]  ;;  %v6715_v10 = vld [vmem:[#allocation2 + $0x8d0] sm:$0xf0]  ;;  %v6590_v13 = vor.u32 %v8655_v5, %v6587_v6 }
  0x8f   :  { %v8587_v14 = vld [vmem:[#allocation2 + $0x5a4] sm:$0xf]  ;;  %v6315_v16 = vld [vmem:[#allocation2 + $0x5b0] sm:$0xf0]  ;;  %v6718_v19 = vor.u32 %v8687_v7, %v6715_v10 }
  0x90   :  { %2385 = vmatpush.bf16.msrb.mxu0 %v5742_v33  ;;  %2398 = vmatpush.bf16.msrb.mxu1 %v5870_v39  ;;  %v8619_v18 = vld [vmem:[#allocation2 + $0x6a4] sm:$0xf]  ;;  %v6443_v20 = vld [vmem:[#allocation2 + $0x6b0] sm:$0xf0]  ;;  %v6318_v28 = vor.u32 %v8587_v14, %v6315_v16 }
  0x91   :  { %2411 = vmatpush.bf16.msrb.mxu2 %v5998_v41  ;;  %v8651_v23 = vld [vmem:[#allocation2 + $0x7a4] sm:$0xf]  ;;  %v6571_v24 = vld [vmem:[#allocation2 + $0x7b0] sm:$0xf0]  ;;  %v6446_v29 = vor.u32 %v8619_v18, %v6443_v20 }
  0x92   :  { %2424 = vmatpush.bf16.msrb.mxu3 %v6126_v45  ;;  %v8683_v26 = vld [vmem:[#allocation2 + $0x8a4] sm:$0xf]  ;;  %v6699_v27 = vld [vmem:[#allocation2 + $0x8b0] sm:$0xf0]  ;;  %v6574_v30 = vor.u32 %v8651_v23, %v6571_v24 }
  0x93   :  { %v8583_v31 = vld [vmem:[#allocation2 + $0x584] sm:$0xf]  ;;  %v6299_v32 = vld [vmem:[#allocation2 + $0x590] sm:$0xf0]  ;;  %v6702_v35 = vor.u32 %v8683_v26, %v6699_v27 }
  0x94   :  { %2386 = vmatpush.bf16.msrb.mxu0 %v5726_v52  ;;  %2399 = vmatpush.bf16.msrb.mxu1 %v5854_v56  ;;  %v8615_v33 = vld [vmem:[#allocation2 + $0x684] sm:$0xf]  ;;  %v6427_v36 = vld [vmem:[#allocation2 + $0x690] sm:$0xf0]  ;;  %v6302_v44 = vor.u32 %v8583_v31, %v6299_v32 }
  0x95   :  { %2412 = vmatpush.bf16.msrb.mxu2 %v5982_v57  ;;  %v8647_v39 = vld [vmem:[#allocation2 + $0x784] sm:$0xf]  ;;  %v6555_v41 = vld [vmem:[#allocation2 + $0x790] sm:$0xf0]  ;;  %v6430_v45 = vor.u32 %v8615_v33, %v6427_v36 }
  0x96   :  { %2425 = vmatpush.bf16.msrb.mxu3 %v6110_v60  ;;  %v8679_v42 = vld [vmem:[#allocation2 + $0x884] sm:$0xf]  ;;  %v6683_v43 = vld [vmem:[#allocation2 + $0x890] sm:$0xf0]  ;;  %v6558_v46 = vor.u32 %v8647_v39, %v6555_v41 }
  0x97   :  { %2387 = vmatmul.bf16.vlgmr.msrb.gmra.mxu0 %v9294_v25  ;;  %2400 = vmatmul.bf16.vlgmr.msrb.gmra.mxu1 %v9279_v8  ;;  %v8579_v47 = vld [vmem:[#allocation2 + $0x564] sm:$0xf]  ;;  %v6283_v48 = vld [vmem:[#allocation2 + $0x570] sm:$0xf0]  ;;  %v6686_v50 = vor.u32 %v8679_v42, %v6683_v43 }
  0x98   :  { %2431 = vmatpush.bf16.msra.mxu0 %v6350_v61  ;;  %2444 = vmatpush.bf16.msra.mxu1 %v6478_v62  ;;  %v8611_v49 = vld [vmem:[#allocation2 + $0x664] sm:$0xf]  ;;  %v6411_v51 = vld [vmem:[#allocation2 + $0x670] sm:$0xf0]  ;;  %v6286_v56 = vor.u32 %v8579_v47, %v6283_v48  ;;  %v5841_v48 = vld [vmem:[#allocation2 + $0x1e8] sm:$0xf] }
  0x99   :  { %2457 = vmatpush.bf16.msra.mxu2 %v6606_v63  ;;  %2426 = vmatmul.bf16.vlgmr.msrb.gmra.mxu3 %v9311_v37  ;;  %v8643_v52 = vld [vmem:[#allocation2 + $0x764] sm:$0xf]  ;;  %v6539_v53 = vld [vmem:[#allocation2 + $0x770] sm:$0xf0]  ;;  %v6414_v57 = vor.u32 %v8611_v49, %v6411_v51  ;;  %v8470_v49 = vld [vmem:[#allocation2 + $0x1f4] sm:$0xf0] }
  0x9a   :  { %2470 = vmatpush.bf16.msra.mxu3 %v6734_v3  ;;  %2413 = vmatmul.bf16.vlgmr.msrb.gmra.mxu2 %v9286_v15  ;;  %v8675_v54 = vld [vmem:[#allocation2 + $0x864] sm:$0xf]  ;;  %v6667_v55 = vld [vmem:[#allocation2 + $0x870] sm:$0xf0]  ;;  %v6542_v58 = vor.u32 %v8643_v52, %v6539_v53 }
  0x9b   :  { %v8575_v59 = vld [vmem:[#allocation2 + $0x544] sm:$0xf]  ;;  %v6267_v60 = vld [vmem:[#allocation2 + $0x550] sm:$0xf0]  ;;  %v6670_v62 = vor.u32 %v8675_v54, %v6667_v55 }
  0x9c   :  { %2432 = vmatpush.bf16.msra.mxu0 %v6334_v11  ;;  %2445 = vmatpush.bf16.msra.mxu1 %v6462_v12  ;;  %v8607_v61 = vld [vmem:[#allocation2 + $0x644] sm:$0xf]  ;;  %v6395_v63 = vld [vmem:[#allocation2 + $0x650] sm:$0xf0]  ;;  %v6270_v4 = vor.u32 %v8575_v59, %v6267_v60  ;;  %v5697_v59 = vld [vmem:[#allocation2 + $0xc8] sm:$0xf] }
  0x9d   :  { %2458 = vmatpush.bf16.msra.mxu2 %v6590_v13  ;;  %v8639_v0 = vld [vmem:[#allocation2 + $0x744] sm:$0xf]  ;;  %v6523_v1 = vld [vmem:[#allocation2 + $0x750] sm:$0xf0]  ;;  %v6398_v5 = vor.u32 %v8607_v61, %v6395_v63  ;;  %v8434_v60 = vld [vmem:[#allocation2 + $0xd4] sm:$0xf0] }
  0x9e   :  { %2471 = vmatpush.bf16.msra.mxu3 %v6718_v19  ;;  %v8671_v2 = vld [vmem:[#allocation2 + $0x844] sm:$0xf]  ;;  %v6651_v3 = vld [vmem:[#allocation2 + $0x850] sm:$0xf0]  ;;  %v6526_v6 = vor.u32 %v8639_v0, %v6523_v1  ;;  %v5825_v61 = vld [vmem:[#allocation2 + $0x1c8] sm:$0xf]  ;;  %v5698_v1 = vor.u32 %v8434_v60, %v5697_v59 }
  0x9f   :  { %v8571_v7 = vld [vmem:[#allocation2 + $0x524] sm:$0xf]  ;;  %v6251_v10 = vld [vmem:[#allocation2 + $0x530] sm:$0xf0]  ;;  %v6654_v12 = vor.u32 %v8671_v2, %v6651_v3  ;;  %v8418_v59 = vld [vmem:[#allocation2 + $0x54] sm:$0xf0] }
  0xa0   :  { %2433 = vmatpush.bf16.msra.mxu0 %v6318_v28  ;;  %2446 = vmatpush.bf16.msra.mxu1 %v6446_v29  ;;  %v8603_v11 = vld [vmem:[#allocation2 + $0x624] sm:$0xf]  ;;  %v6379_v13 = vld [vmem:[#allocation2 + $0x630] sm:$0xf0]  ;;  %v6254_v20 = vor.u32 %v8571_v7, %v6251_v10  ;;  %v5681_v7 = vld [vmem:[#allocation2 + $0xa8] sm:$0xf] }
  0xa1   :  { %2459 = vmatpush.bf16.msra.mxu2 %v6574_v30  ;;  %v8635_v14 = vld [vmem:[#allocation2 + $0x724] sm:$0xf]  ;;  %v6507_v16 = vld [vmem:[#allocation2 + $0x730] sm:$0xf0]  ;;  %v6382_v26 = vor.u32 %v8603_v11, %v6379_v13  ;;  %v8430_v10 = vld [vmem:[#allocation2 + $0xb4] sm:$0xf0] }
  0xa2   :  { %2472 = vmatpush.bf16.msra.mxu3 %v6702_v35  ;;  %v8667_v18 = vld [vmem:[#allocation2 + $0x824] sm:$0xf]  ;;  %v6635_v19 = vld [vmem:[#allocation2 + $0x830] sm:$0xf0]  ;;  %v6510_v27 = vor.u32 %v8635_v14, %v6507_v16  ;;  %v5809_v11 = vld [vmem:[#allocation2 + $0x1a8] sm:$0xf] }
  0xa3   :  { %v8567_v23 = vld [vmem:[#allocation2 + $0x504] sm:$0xf]  ;;  %v6235_v24 = vld [vmem:[#allocation2 + $0x510] sm:$0xf0]  ;;  %v6638_v31 = vor.u32 %v8667_v18, %v6635_v19  ;;  %v5682_v18 = vor.u32 %v8430_v10, %v5681_v7  ;;  %v5761_v60 = vld [vmem:[#allocation2 + $0x148] sm:$0xf] }
  0xa4   :  { %2434 = vmatpush.bf16.msra.mxu0 %v6302_v44  ;;  %2447 = vmatpush.bf16.msra.mxu1 %v6430_v45  ;;  %v8599_v28 = vld [vmem:[#allocation2 + $0x604] sm:$0xf]  ;;  %v6363_v29 = vld [vmem:[#allocation2 + $0x610] sm:$0xf0]  ;;  %v6238_v42 = vor.u32 %v8567_v23, %v6235_v24  ;;  %v5713_v44 = vld [vmem:[#allocation2 + $0xe8] sm:$0xf] }
  0xa5   :  { %2460 = vmatpush.bf16.msra.mxu2 %v6558_v46  ;;  %v8631_v30 = vld [vmem:[#allocation2 + $0x704] sm:$0xf]  ;;  %v6491_v32 = vld [vmem:[#allocation2 + $0x710] sm:$0xf0]  ;;  %v8438_v45 = vld [vmem:[#allocation2 + $0xf4] sm:$0xf0]  ;;  %v6366_v46 = vor.u32 %v8599_v28, %v6363_v29 }
  0xa6   :  { %2473 = vmatpush.bf16.msra.mxu3 %v6686_v50  ;;  %v8663_v33 = vld [vmem:[#allocation2 + $0x804] sm:$0xf]  ;;  %v6619_v35 = vld [vmem:[#allocation2 + $0x810] sm:$0xf0]  ;;  %v6494_v47 = vor.u32 %v8631_v30, %v6491_v32  ;;  %v5714_v53 = vor.u32 %v8438_v45, %v5713_v44  ;;  %v9348_v28 = vld [vmem:[#allocation4] sm:$0xf] }
  0xa7   :  { %v8723_v36 = vld [vmem:[#allocation2 + $0x9e4] sm:$0xf]  ;;  %v6859_v39 = vld [vmem:[#allocation2 + $0x9f0] sm:$0xf0]  ;;  %v6622_v50 = vor.u32 %v8663_v33, %v6619_v35  ;;  %v5793_v29 = vld [vmem:[#allocation2 + $0x188] sm:$0xf] }
  0xa8   :  { %2435 = vmatpush.bf16.msra.mxu0 %v6286_v56  ;;  %2448 = vmatpush.bf16.msra.mxu1 %v6414_v57  ;;  %v8755_v41 = vld [vmem:[#allocation2 + $0xae4] sm:$0xf]  ;;  %v6987_v43 = vld [vmem:[#allocation2 + $0xaf0] sm:$0xf0]  ;;  %v6862_v51 = vor.u32 %v8723_v36, %v6859_v39  ;;  %v5842_v57 = vor.u32 %v8470_v49, %v5841_v48  ;;  %v8458_v30 = vld [vmem:[#allocation2 + $0x194] sm:$0xf0] }
  0xa9   :  { %2461 = vmatpush.bf16.msra.mxu2 %v6542_v58  ;;  %v6990_v52 = vor.u32 %v8755_v41, %v6987_v43  ;;  %v8719_v54 = vld [vmem:[#allocation2 + $0x9c4] sm:$0xf]  ;;  %v6843_v55 = vld [vmem:[#allocation2 + $0x9d0] sm:$0xf0]  ;;  %v455_v41 = vperm.slane %v9348_v28, 0 }
  0xaa   :  { %2474 = vmatpush.bf16.msra.mxu3 %v6670_v62  ;;  %v8751_v56 = vld [vmem:[#allocation2 + $0xac4] sm:$0xf]  ;;  %v6971_v58 = vld [vmem:[#allocation2 + $0xad0] sm:$0xf0]  ;;  %v8466_v62 = vld [vmem:[#allocation2 + $0x1d4] sm:$0xf0]  ;;  %v6846_v63 = vor.u32 %v8719_v54, %v6843_v55 }
  0xab   :  { %v6974_v0 = vor.u32 %v8751_v56, %v6971_v58  ;;  %v8715_v2 = vld [vmem:[#allocation2 + $0x9a4] sm:$0xf]  ;;  %v6827_v3 = vld [vmem:[#allocation2 + $0x9b0] sm:$0xf0]  ;;  %v5649_v44 = vld [vmem:[#allocation2 + $0x68] sm:$0xf] }
  0xac   :  { %2436 = vmatpush.bf16.msra.mxu0 %v6270_v4  ;;  %2449 = vmatpush.bf16.msra.mxu1 %v6398_v5  ;;  %v8747_v4 = vld [vmem:[#allocation2 + $0xaa4] sm:$0xf]  ;;  %v5826_v5 = vor.u32 %v8466_v62, %v5825_v61  ;;  %v6830_v13 = vor.u32 %v8715_v2, %v6827_v3  ;;  %v6811_v19 = vld [vmem:[#allocation2 + $0x990] sm:$0xf0]  ;;  %v8422_v45 = vld [vmem:[#allocation2 + $0x74] sm:$0xf0] }
  0xad   :  { %2462 = vmatpush.bf16.msra.mxu2 %v6526_v6  ;;  %v6955_v6 = vld [vmem:[#allocation2 + $0xab0] sm:$0xf0]  ;;  %v8711_v14 = vld [vmem:[#allocation2 + $0x984] sm:$0xf]  ;;  %v5633_v58 = vld [vmem:[#allocation2 + $0x48] sm:$0xf] }
  0xae   :  { %2475 = vmatpush.bf16.msra.mxu3 %v6654_v12  ;;  %v8462_v12 = vld [vmem:[#allocation2 + $0x1b4] sm:$0xf0]  ;;  %v6958_v16 = vor.u32 %v8747_v4, %v6955_v6  ;;  %v6939_v23 = vld [vmem:[#allocation2 + $0xa90] sm:$0xf0]  ;;  %v8707_v32 = vld [vmem:[#allocation2 + $0x964] sm:$0xf] }
  0xaf   :  { %v5810_v24 = vor.u32 %v8462_v12, %v5809_v11  ;;  %v6795_v36 = vld [vmem:[#allocation2 + $0x970] sm:$0xf0]  ;;  %v8739_v39 = vld [vmem:[#allocation2 + $0xa64] sm:$0xf]  ;;  %v8450_v61 = vld [vmem:[#allocation2 + $0x154] sm:$0xf0] }
  0xb0   :  { %2437 = vmatpush.bf16.msra.mxu0 %v6254_v20  ;;  %2450 = vmatpush.bf16.msra.mxu1 %v6382_v26  ;;  %v8743_v20 = vld [vmem:[#allocation2 + $0xa84] sm:$0xf]  ;;  %v5665_v26 = vld [vmem:[#allocation2 + $0x88] sm:$0xf]  ;;  %v6923_v43 = vld [vmem:[#allocation2 + $0xa70] sm:$0xf0]  ;;  %v6798_v48 = vor.u32 %v8707_v32, %v6795_v36  ;;  %v5762_v6 = vor.u32 %v8450_v61, %v5761_v60 }
  0xb1   :  { %2463 = vmatpush.bf16.msra.mxu2 %v6510_v27  ;;  %v8426_v27 = vld [vmem:[#allocation2 + $0x94] sm:$0xf0]  ;;  %v6942_v33 = vor.u32 %v8743_v20, %v6939_v23  ;;  %v8735_v54 = vld [vmem:[#allocation2 + $0xa44] sm:$0xf]  ;;  %v6763_v3 = vld [vmem:[#allocation2 + $0x930] sm:$0xf0] }
  0xb2   :  { %2476 = vmatpush.bf16.msra.mxu3 %v6638_v31  ;;  %v6814_v31 = vor.u32 %v8711_v14, %v6811_v19  ;;  %v5666_v35 = vor.u32 %v8426_v27, %v5665_v26  ;;  %v8699_v2 = vld [vmem:[#allocation2 + $0x924] sm:$0xf]  ;;  %v6891_v7 = vld [vmem:[#allocation2 + $0xa30] sm:$0xf0]  ;;  %v5617_v10 = vld [vmem:[#allocation2 + $0x28] sm:$0xf] }
  0xb3   :  { %v8731_v4 = vld [vmem:[#allocation2 + $0xa24] sm:$0xf]  ;;  %v8414_v11 = vld [vmem:[#allocation2 + $0x34] sm:$0xf0]  ;;  %v6766_v19 = vor.u32 %v8699_v2, %v6763_v3  ;;  %v6747_v23 = vld [vmem:[#allocation2 + $0x910] sm:$0xf0] }
  0xb4   :  { %2438 = vmatpush.bf16.msra.mxu0 %v6238_v42  ;;  %2451 = vmatpush.bf16.msra.mxu1 %v6366_v46  ;;  %v5794_v42 = vor.u32 %v8458_v30, %v5793_v29  ;;  %v5777_v46 = vld [vmem:[#allocation2 + $0x168] sm:$0xf]  ;;  %v8446_v14 = vld [vmem:[#allocation2 + $0x134] sm:$0xf0]  ;;  %v8695_v20 = vld [vmem:[#allocation2 + $0x904] sm:$0xf]  ;;  %v6894_v26 = vor.u32 %v8731_v4, %v6891_v7  ;;  %v5618_v27 = vor.u32 %v8414_v11, %v5617_v10 }
  0xb5   :  { %2464 = vmatpush.bf16.msra.mxu2 %v6494_v47  ;;  %v8454_v47 = vld [vmem:[#allocation2 + $0x174] sm:$0xf0]  ;;  %v8727_v29 = vld [vmem:[#allocation2 + $0xa04] sm:$0xf]  ;;  %v6875_v30 = vld [vmem:[#allocation2 + $0xa10] sm:$0xf0] }
  0xb6   :  { %2477 = vmatpush.bf16.msra.mxu3 %v6622_v50  ;;  %v6926_v50 = vor.u32 %v8739_v39, %v6923_v43  ;;  %v5778_v56 = vor.u32 %v8454_v47, %v5777_v46  ;;  %v5729_v36 = vld [vmem:[#allocation2 + $0x108] sm:$0xf]  ;;  %v8442_v39 = vld [vmem:[#allocation2 + $0x114] sm:$0xf0] }
  0xb7   :  { %2439 = vmatmul.bf16.vlgmr.msra.gmra.mxu0 %v9315_v40  ;;  %2452 = vmatmul.bf16.vlgmr.msra.gmra.mxu1 %v9309_v34  ;;  %v6097_v43 = vld [vmem:[#allocation2 + $0x3e8] sm:$0xf]  ;;  %v8566_v47 = vld [vmem:[#allocation2 + $0x4f4] sm:$0xf0] }
  0xb8   :  { %2483 = vmatpush.bf16.msrb.mxu0 %v6862_v51  ;;  %2496 = vmatpush.bf16.msrb.mxu1 %v6990_v52  ;;  %v5650_v51 = vor.u32 %v8422_v45, %v5649_v44  ;;  %v8703_v52 = vld [vmem:[#allocation2 + $0x944] sm:$0xf]  ;;  %v6750_v44 = vor.u32 %v8695_v20, %v6747_v23  ;;  %v8534_v45 = vld [vmem:[#allocation2 + $0x3f4] sm:$0xf0]  ;;  %v6225_v46 = vld [vmem:[#allocation2 + $0x4e8] sm:$0xf] }
  0xb9   :  { %2509 = vmatpush.bf16.msrb.mxu2 %v5714_v53  ;;  %2478 = vmatmul.bf16.vlgmr.msra.gmra.mxu3 %v9330_v17  ;;  %v6779_v53 = vld [vmem:[#allocation2 + $0x950] sm:$0xf0]  ;;  %v6081_v60 = vld [vmem:[#allocation2 + $0x3c8] sm:$0xf]  ;;  %v8594_v3 = vld [vmem:[#allocation2 + $0x5d4] sm:$0xf0] }
  0xba   :  { %2522 = vmatpush.bf16.msrb.mxu3 %v5842_v57  ;;  %2465 = vmatmul.bf16.vlgmr.msra.gmra.mxu2 %v9313_v38  ;;  %v6907_v57 = vld [vmem:[#allocation2 + $0xa50] sm:$0xf0]  ;;  %v6782_v62 = vor.u32 %v8703_v52, %v6779_v53  ;;  %v8598_v52 = vld [vmem:[#allocation2 + $0x5f4] sm:$0xf0]  ;;  %v5730_v53 = vor.u32 %v8442_v39, %v5729_v36  ;;  %v6337_v2 = vld [vmem:[#allocation2 + $0x5c8] sm:$0xf] }
  0xbb   :  { %v5937_v7 = vld [vmem:[#allocation2 + $0x2a8] sm:$0xf]  ;;  %v8494_v10 = vld [vmem:[#allocation2 + $0x2b4] sm:$0xf0] }
  0xbc   :  { %2484 = vmatpush.bf16.msrb.mxu0 %v6846_v63  ;;  %2497 = vmatpush.bf16.msrb.mxu1 %v6974_v0  ;;  %v2245_v63 = vpop.f32.mrf.mxu1  ;;  %v6910_v0 = vor.u32 %v8735_v54, %v6907_v57  ;;  %v6226_v57 = vor.u32 %v8566_v47, %v6225_v46  ;;  %v6065_v11 = vld [vmem:[#allocation2 + $0x3a8] sm:$0xf]  ;;  %v5938_v20 = vor.u32 %v8494_v10, %v5937_v7  ;;  %v8586_v39 = vld [vmem:[#allocation2 + $0x594] sm:$0xf0] }
  0xbd   :  { %2510 = vmatpush.bf16.msrb.mxu2 %v5698_v1  ;;  %v5634_v1 = vor.u32 %v8418_v59, %v5633_v58  ;;  %v5953_v58 = vld [vmem:[#allocation2 + $0x2c8] sm:$0xf]  ;;  %v8498_v59 = vld [vmem:[#allocation2 + $0x2d4] sm:$0xf0] }
  0xbe   :  { %2523 = vmatpush.bf16.msrb.mxu3 %v5826_v5  ;;  %v5954_v4 = vor.u32 %v8498_v59, %v5953_v58  ;;  %v6305_v36 = vld [vmem:[#allocation2 + $0x588] sm:$0xf]  ;;  %v8486_v46 = vld [vmem:[#allocation2 + $0x274] sm:$0xf0] }
  0xbf   :  { %v6033_v47 = vld [vmem:[#allocation2 + $0x368] sm:$0xf] }
  0xc0   :  { %2485 = vmatpush.bf16.msrb.mxu0 %v6830_v13  ;;  %2498 = vmatpush.bf16.msrb.mxu1 %v6958_v16  ;;  %v2232_v49 = vpop.f32.mrf.mxu0  ;;  %v5745_v13 = vld [vmem:[#allocation2 + $0x128] sm:$0xf] }
  0xc1   :  { %2511 = vmatpush.bf16.msrb.mxu2 %v5682_v18  ;;  %v2233_v55 = vadd.f32 %v2232_v49, %v455_v41  ;;  %v2271_v18 = vpop.f32.mrf.mxu3  ;;  %v5969_v41 = vld [vmem:[#allocation2 + $0x2e8] sm:$0xf]  ;;  %v6878_v49 = vor.u32 %v8727_v29, %v6875_v30 }
  0xc2   :  { %2524 = vmatpush.bf16.msrb.mxu3 %v5810_v24  ;;  %v6049_v29 = vld [vmem:[#allocation2 + $0x388] sm:$0xf] }
  0xc3   :  { %v2246_v5 = vadd.f32 %v2245_v63, %v2233_v55  ;;  %v8530_v63 = vld [vmem:[#allocation2 + $0x3d4] sm:$0xf0] }
  0xc4   :  { %2486 = vmatpush.bf16.msrb.mxu0 %v6814_v31  ;;  %2499 = vmatpush.bf16.msrb.mxu1 %v6942_v33  ;;  %v5601_v31 = vld [vmem:[#allocation2 + $0x8] sm:$0xf]  ;;  %v5746_v33 = vor.u32 %v8446_v14, %v5745_v13  ;;  %v8526_v13 = vld [vmem:[#allocation2 + $0x3b4] sm:$0xf0] }
  0xc5   :  { %2512 = vmatpush.bf16.msrb.mxu2 %v5666_v35  ;;  %v2258_v12 = vpop.f32.mrf.mxu2  ;;  %v8410_v35 = vld [vmem:[#allocation2 + $0x14] sm:$0xf0]  ;;  %v6193_v14 = vld [vmem:[#allocation2 + $0x4a8] sm:$0xf]  ;;  %v6066_v23 = vor.u32 %v8526_v13, %v6065_v11 }
  0xc6   :  { %2525 = vmatpush.bf16.msrb.mxu3 %v5794_v42  ;;  %v2259_v16 = vadd.f32 %v2258_v12, %v2246_v5  ;;  %v8502_v42 = vld [vmem:[#allocation2 + $0x2f4] sm:$0xf0]  ;;  %v6082_v5 = vor.u32 %v8530_v63, %v6081_v60  ;;  %v6338_v12 = vor.u32 %v8594_v3, %v6337_v2  ;;  %v5889_v60 = vld [vmem:[#allocation2 + $0x248] sm:$0xf] }
  0xc7   :  { %v5970_v54 = vor.u32 %v8502_v42, %v5969_v41  ;;  %v8546_v2 = vld [vmem:[#allocation2 + $0x454] sm:$0xf0] }
  0xc8   :  { %2487 = vmatpush.bf16.msrb.mxu0 %v6798_v48  ;;  %2500 = vmatpush.bf16.msrb.mxu1 %v6926_v50  ;;  %v2234_v24 = vpop.f32.mrf.mxu0  ;;  %v9351_v32 = vadd.f32 %v2271_v18, %v2259_v16  ;;  %v2247_v48 = vpop.f32.mrf.mxu1  ;;  %v5602_v50 = vor.u32 %v8410_v35, %v5601_v31  ;;  %v8558_v16 = vld [vmem:[#allocation2 + $0x4b4] sm:$0xf0]  ;;  %v6321_v18 = vld [vmem:[#allocation2 + $0x5a8] sm:$0xf] }
  0xc9   :  { %2513 = vmatpush.bf16.msrb.mxu2 %v5650_v51  ;;  %v6353_v51 = vld [vmem:[#allocation2 + $0x5e8] sm:$0xf]  ;;  %v2273_v61 = vpop.f32.mrf.mxu3  ;;  %v6194_v24 = vor.u32 %v8558_v16, %v6193_v14  ;;  %v8522_v31 = vld [vmem:[#allocation2 + $0x394] sm:$0xf0] }
  0xca   :  { %2526 = vmatpush.bf16.msrb.mxu3 %v5778_v56  ;;  %v6098_v56 = vor.u32 %v8534_v45, %v6097_v43  ;;  %v8554_v35 = vld [vmem:[#allocation2 + $0x494] sm:$0xf0]  ;;  %v6050_v43 = vor.u32 %v8522_v31, %v6049_v29  ;;  %v5905_v45 = vld [vmem:[#allocation2 + $0x268] sm:$0xf] }
  0xcb   :  { %v8482_v61 = vld [vmem:[#allocation2 + $0x254] sm:$0xf0]  ;;  %v5873_v14 = vld [vmem:[#allocation2 + $0x228] sm:$0xf] }
  0xcc   :  { %2488 = vmatpush.bf16.msrb.mxu0 %v6782_v62  ;;  %2501 = vmatpush.bf16.msrb.mxu1 %v6910_v0  ;;  %v6354_v62 = vor.u32 %v8598_v52, %v6353_v51  ;;  %v6209_v0 = vld [vmem:[#allocation2 + $0x4c8] sm:$0xf]  ;;  %v8518_v51 = vld [vmem:[#allocation2 + $0x374] sm:$0xf0]  ;;  %v5890_v7 = vor.u32 %v8482_v61, %v5889_v60 }
  0xcd   :  { %2514 = vmatpush.bf16.msrb.mxu2 %v5634_v1  ;;  %v2260_v55 = vpop.f32.mrf.mxu2  ;;  %v8562_v1 = vld [vmem:[#allocation2 + $0x4d4] sm:$0xf0]  ;;  %v6161_v52 = vld [vmem:[#allocation2 + $0x468] sm:$0xf]  ;;  %v6034_v58 = vor.u32 %v8518_v51, %v6033_v47 }
  0xce   :  { %2527 = vmatpush.bf16.msrb.mxu3 %v5762_v6  ;;  %v6210_v6 = vor.u32 %v8562_v1, %v6209_v0  ;;  %v8582_v55 = vld [vmem:[#allocation2 + $0x574] sm:$0xf0]  ;;  %v6145_v1 = vld [vmem:[#allocation2 + $0x448] sm:$0xf] }
  0xcf   :  { %v8514_v0 = vld [vmem:[#allocation2 + $0x354] sm:$0xf0]  ;;  %v6146_v13 = vor.u32 %v8546_v2, %v6145_v1  ;;  %v5857_v31 = vld [vmem:[#allocation2 + $0x208] sm:$0xf] }
  0xd0   :  { %2489 = vmatpush.bf16.msrb.mxu0 %v6766_v19  ;;  %2502 = vmatpush.bf16.msrb.mxu1 %v6894_v26  ;;  %v8590_v19 = vld [vmem:[#allocation2 + $0x5b4] sm:$0xf0]  ;;  %v5921_v26 = vld [vmem:[#allocation2 + $0x288] sm:$0xf] }
  0xd1   :  { %2515 = vmatpush.bf16.msrb.mxu2 %v5618_v27  ;;  %v8490_v27 = vld [vmem:[#allocation2 + $0x294] sm:$0xf0]  ;;  %v6322_v30 = vor.u32 %v8590_v19, %v6321_v18  ;;  %v6001_v18 = vld [vmem:[#allocation2 + $0x328] sm:$0xf] }
  0xd2   :  { %2528 = vmatpush.bf16.msrb.mxu3 %v5746_v33  ;;  %v6177_v33 = vld [vmem:[#allocation2 + $0x488] sm:$0xf]  ;;  %v5922_v41 = vor.u32 %v8490_v27, %v5921_v26  ;;  %v8478_v16 = vld [vmem:[#allocation2 + $0x234] sm:$0xf0] }
  0xd3   :  { %v8542_v26 = vld [vmem:[#allocation2 + $0x434] sm:$0xf0]  ;;  %v6257_v27 = vld [vmem:[#allocation2 + $0x528] sm:$0xf] }
  0xd4   :  { %2490 = vmatpush.bf16.msrb.mxu0 %v6750_v44  ;;  %2503 = vmatpush.bf16.msrb.mxu1 %v6878_v49  ;;  %v6178_v44 = vor.u32 %v8554_v35, %v6177_v33  ;;  %v2297_v49 = vpop.f32.mrf.mxu1  ;;  %v8574_v29 = vld [vmem:[#allocation2 + $0x534] sm:$0xf0]  ;;  %v6609_v51 = vld [vmem:[#allocation2 + $0x7e8] sm:$0xf] }
  0xd5   :  { %2516 = vmatpush.bf16.msrb.mxu2 %v5602_v50  ;;  %v6306_v50 = vor.u32 %v8586_v39, %v6305_v36  ;;  %v8474_v33 = vld [vmem:[#allocation2 + $0x214] sm:$0xf0]  ;;  %v5985_v39 = vld [vmem:[#allocation2 + $0x308] sm:$0xf] }
  0xd6   :  { %2529 = vmatpush.bf16.msrb.mxu3 %v5730_v53  ;;  %v8550_v53 = vld [vmem:[#allocation2 + $0x474] sm:$0xf0]  ;;  %v6593_v1 = vld [vmem:[#allocation2 + $0x7c8] sm:$0xf] }
  0xd7   :  { %2491 = vmatmul.bf16.vlgmr.msrb.gmra.mxu0 %v9334_v22  ;;  %2504 = vmatmul.bf16.vlgmr.msrb.gmra.mxu1 %v9332_v21  ;;  %v6162_v59 = vor.u32 %v8550_v53, %v6161_v52  ;;  %v8570_v47 = vld [vmem:[#allocation2 + $0x514] sm:$0xf0]  ;;  %v5858_v52 = vor.u32 %v8474_v33, %v5857_v31  ;;  %v6433_v33 = vld [vmem:[#allocation2 + $0x688] sm:$0xf] }
  0xd8   :  { %2535 = vmatpush.bf16.msra.mxu0 %v5970_v54  ;;  %2548 = vmatpush.bf16.msra.mxu1 %v6098_v56  ;;  %v2284_v42 = vpop.f32.mrf.mxu0  ;;  %v6289_v54 = vld [vmem:[#allocation2 + $0x568] sm:$0xf]  ;;  %v8662_v53 = vld [vmem:[#allocation2 + $0x7f4] sm:$0xf0] }
  0xd9   :  { %2561 = vmatpush.bf16.msra.mxu2 %v6226_v57  ;;  %2530 = vmatmul.bf16.vlgmr.msrb.gmra.mxu3 %v9294_v25  ;;  %v2285_v48 = vadd.f32 %v2284_v42, %v9351_v32  ;;  %v5906_v57 = vor.u32 %v8486_v46, %v5905_v45  ;;  %v6290_v32 = vor.u32 %v8582_v55, %v6289_v54  ;;  %v6113_v42 = vld [vmem:[#allocation2 + $0x408] sm:$0xf]  ;;  %v8538_v45 = vld [vmem:[#allocation2 + $0x414] sm:$0xf0] }
  0xda   :  { %2574 = vmatpush.bf16.msra.mxu3 %v6354_v62  ;;  %2517 = vmatmul.bf16.vlgmr.msrb.gmra.mxu2 %v9281_v9  ;;  %v6017_v62 = vld [vmem:[#allocation2 + $0x348] sm:$0xf]  ;;  %v8694_v55 = vld [vmem:[#allocation2 + $0x8f4] sm:$0xf0] }
  0xdb   :  { %v2298_v56 = vadd.f32 %v2297_v49, %v2285_v48  ;;  %v6241_v46 = vld [vmem:[#allocation2 + $0x508] sm:$0xf] }
  0xdc   :  { %2536 = vmatpush.bf16.msra.mxu0 %v5954_v4  ;;  %2549 = vmatpush.bf16.msra.mxu1 %v6082_v5  ;;  %v2323_v4 = vpop.f32.mrf.mxu3  ;;  %v6273_v5 = vld [vmem:[#allocation2 + $0x548] sm:$0xf]  ;;  %v2299_v19 = vpop.f32.mrf.mxu1  ;;  %v6242_v60 = vor.u32 %v8570_v47, %v6241_v46  ;;  %v8714_v46 = vld [vmem:[#allocation2 + $0x994] sm:$0xf0] }
  0xdd   :  { %2562 = vmatpush.bf16.msra.mxu2 %v6210_v6  ;;  %v2310_v63 = vpop.f32.mrf.mxu2  ;;  %v8578_v6 = vld [vmem:[#allocation2 + $0x554] sm:$0xf0]  ;;  %v6481_v49 = vld [vmem:[#allocation2 + $0x6e8] sm:$0xf] }
  0xde   :  { %2575 = vmatpush.bf16.msra.mxu3 %v6338_v12  ;;  %v2311_v3 = vadd.f32 %v2310_v63, %v2298_v56  ;;  %v6018_v12 = vor.u32 %v8514_v0, %v6017_v62  ;;  %v6737_v54 = vld [vmem:[#allocation2 + $0x8e8] sm:$0xf]  ;;  %v6610_v62 = vor.u32 %v8662_v53, %v6609_v51  ;;  %v8626_v0 = vld [vmem:[#allocation2 + $0x6d4] sm:$0xf0] }
  0xdf   :  { %v6738_v63 = vor.u32 %v8694_v55, %v6737_v54  ;;  %v8614_v53 = vld [vmem:[#allocation2 + $0x674] sm:$0xf0]  ;;  %v6545_v54 = vld [vmem:[#allocation2 + $0x768] sm:$0xf] }
  0xe0   :  { %2537 = vmatpush.bf16.msra.mxu0 %v5938_v20  ;;  %2550 = vmatpush.bf16.msra.mxu1 %v6066_v23  ;;  %v9358_v10 = vadd.f32 %v2323_v4, %v2311_v3  ;;  %v2286_v11 = vpop.f32.mrf.mxu0  ;;  %v6274_v20 = vor.u32 %v8578_v6, %v6273_v5  ;;  %v8510_v23 = vld [vmem:[#allocation2 + $0x334] sm:$0xf0]  ;;  %v6721_v4 = vld [vmem:[#allocation2 + $0x8c8] sm:$0xf] }
  0xe1   :  { %2563 = vmatpush.bf16.msra.mxu2 %v6194_v24  ;;  %v6129_v24 = vld [vmem:[#allocation2 + $0x428] sm:$0xf]  ;;  %v6002_v35 = vor.u32 %v8510_v23, %v6001_v18  ;;  %v8658_v3 = vld [vmem:[#allocation2 + $0x7d4] sm:$0xf0] }
  0xe2   :  { %2576 = vmatpush.bf16.msra.mxu3 %v6322_v30  ;;  %v5874_v30 = vor.u32 %v8478_v16, %v5873_v14  ;;  %v6130_v36 = vor.u32 %v8542_v26, %v6129_v24  ;;  %v8690_v5 = vld [vmem:[#allocation2 + $0x8d4] sm:$0xf0]  ;;  %v6849_v6 = vld [vmem:[#allocation2 + $0x9c8] sm:$0xf] }
  0xe3   :  { %v6449_v14 = vld [vmem:[#allocation2 + $0x6a8] sm:$0xf]  ;;  %v8622_v16 = vld [vmem:[#allocation2 + $0x6b4] sm:$0xf0] }
  0xe4   :  { %2538 = vmatpush.bf16.msra.mxu0 %v5922_v41  ;;  %2551 = vmatpush.bf16.msra.mxu1 %v6050_v43  ;;  %v8506_v41 = vld [vmem:[#allocation2 + $0x314] sm:$0xf0]  ;;  %v2325_v48 = vpop.f32.mrf.mxu3  ;;  %v6577_v18 = vld [vmem:[#allocation2 + $0x7a8] sm:$0xf] }
  0xe5   :  { %2564 = vmatpush.bf16.msra.mxu2 %v6178_v44  ;;  %v2312_v43 = vpop.f32.mrf.mxu2  ;;  %v6258_v44 = vor.u32 %v8574_v29, %v6257_v27  ;;  %v5986_v56 = vor.u32 %v8506_v41, %v5985_v39  ;;  %v6705_v23 = vld [vmem:[#allocation2 + $0x8a8] sm:$0xf]  ;;  %v8686_v24 = vld [vmem:[#allocation2 + $0x8b4] sm:$0xf0]  ;;  %v6450_v29 = vor.u32 %v8622_v16, %v6449_v14 }
  0xe6   :  { %2577 = vmatpush.bf16.msra.mxu3 %v6306_v50  ;;  %v8630_v50 = vld [vmem:[#allocation2 + $0x6f4] sm:$0xf0]  ;;  %v6833_v26 = vld [vmem:[#allocation2 + $0x9a8] sm:$0xf]  ;;  %v6706_v31 = vor.u32 %v8686_v24, %v6705_v23 }
  0xe7   :  { %v6482_v61 = vor.u32 %v8630_v50, %v6481_v49  ;;  %v8718_v27 = vld [vmem:[#allocation2 + $0x9b4] sm:$0xf0]  ;;  %v6385_v23 = vld [vmem:[#allocation2 + $0x628] sm:$0xf] }
  0xe8   :  { %2539 = vmatpush.bf16.msra.mxu0 %v5906_v57  ;;  %2552 = vmatpush.bf16.msra.mxu1 %v6034_v58  ;;  %v6114_v57 = vor.u32 %v8538_v45, %v6113_v42  ;;  %v6865_v58 = vld [vmem:[#allocation2 + $0x9e8] sm:$0xf]  ;;  %v6834_v39 = vor.u32 %v8718_v27, %v6833_v26  ;;  %v8650_v41 = vld [vmem:[#allocation2 + $0x794] sm:$0xf0] }
  0xe9   :  { %2565 = vmatpush.bf16.msra.mxu2 %v6162_v59  ;;  %v8726_v59 = vld [vmem:[#allocation2 + $0x9f4] sm:$0xf0]  ;;  %v6689_v42 = vld [vmem:[#allocation2 + $0x888] sm:$0xf] }
  0xea   :  { %2578 = vmatpush.bf16.msra.mxu3 %v6290_v32  ;;  %v6465_v32 = vld [vmem:[#allocation2 + $0x6c8] sm:$0xf]  ;;  %v6866_v2 = vor.u32 %v8726_v59, %v6865_v58  ;;  %v8682_v43 = vld [vmem:[#allocation2 + $0x894] sm:$0xf0] }
  0xeb   :  { %v6466_v11 = vor.u32 %v8626_v0, %v6465_v32  ;;  %v6817_v45 = vld [vmem:[#allocation2 + $0x988] sm:$0xf]  ;;  %v6690_v51 = vor.u32 %v8682_v43, %v6689_v42  ;;  %v8678_v59 = vld [vmem:[#allocation2 + $0x874] sm:$0xf0] }
  0xec   :  { %2540 = vmatpush.bf16.msra.mxu0 %v5890_v7  ;;  %2553 = vmatpush.bf16.msra.mxu1 %v6018_v12  ;;  %v8722_v7 = vld [vmem:[#allocation2 + $0x9d4] sm:$0xf0]  ;;  %v6594_v12 = vor.u32 %v8658_v3, %v6593_v1  ;;  %v6818_v55 = vor.u32 %v8714_v46, %v6817_v45  ;;  %v6673_v58 = vld [vmem:[#allocation2 + $0x868] sm:$0xf] }
  0xed   :  { %2566 = vmatpush.bf16.msra.mxu2 %v6146_v13  ;;  %v6722_v13 = vor.u32 %v8690_v5, %v6721_v4  ;;  %v6850_v19 = vor.u32 %v8722_v7, %v6849_v6  ;;  %v6401_v32 = vld [vmem:[#allocation2 + $0x648] sm:$0xf]  ;;  %v8610_v0 = vld [vmem:[#allocation2 + $0x654] sm:$0xf0] }
  0xee   :  { %2579 = vmatpush.bf16.msra.mxu3 %v6274_v20  ;;  %v8654_v20 = vld [vmem:[#allocation2 + $0x7b4] sm:$0xf0]  ;;  %v6529_v1 = vld [vmem:[#allocation2 + $0x748] sm:$0xf]  ;;  %v6402_v16 = vor.u32 %v8610_v0, %v6401_v32 }
  0xef   :  { %v8642_v4 = vld [vmem:[#allocation2 + $0x754] sm:$0xf0]  ;;  %v6657_v5 = vld [vmem:[#allocation2 + $0x848] sm:$0xf] }
  0xf0   :  { %2541 = vmatpush.bf16.msra.mxu0 %v5874_v30  ;;  %2554 = vmatpush.bf16.msra.mxu1 %v6002_v35  ;;  %v6578_v30 = vor.u32 %v8654_v20, %v6577_v18  ;;  %v8618_v35 = vld [vmem:[#allocation2 + $0x694] sm:$0xf0]  ;;  %v6513_v26 = vld [vmem:[#allocation2 + $0x728] sm:$0xf] }
  0xf1   :  { %2567 = vmatpush.bf16.msra.mxu2 %v6130_v36  ;;  %v6561_v36 = vld [vmem:[#allocation2 + $0x788] sm:$0xf]  ;;  %v6434_v48 = vor.u32 %v8618_v35, %v6433_v33  ;;  %v8674_v6 = vld [vmem:[#allocation2 + $0x854] sm:$0xf0] }
  0xf2   :  { %2580 = vmatpush.bf16.msra.mxu3 %v6258_v44  ;;  %v6562_v50 = vor.u32 %v8650_v41, %v6561_v36  ;;  %v6658_v20 = vor.u32 %v8674_v6, %v6657_v5  ;;  %v8606_v24 = vld [vmem:[#allocation2 + $0x634] sm:$0xf0]  ;;  %v6769_v33 = vld [vmem:[#allocation2 + $0x928] sm:$0xf]  ;;  %v5699_v6 = vld [vmem:[#allocation2 + $0xd8] sm:$0xf0] }
  0xf3   :  { %v8702_v35 = vld [vmem:[#allocation2 + $0x934] sm:$0xf0]  ;;  %v6386_v36 = vor.u32 %v8606_v24, %v6385_v23  ;;  %v6625_v46 = vld [vmem:[#allocation2 + $0x808] sm:$0xf] }
  0xf4   :  { %2542 = vmatpush.bf16.msra.mxu0 %v5858_v52  ;;  %2555 = vmatpush.bf16.msra.mxu1 %v5986_v56  ;;  %v2336_v44 = vpop.f32.mrf.mxu0  ;;  %v2349_v49 = vpop.f32.mrf.mxu1  ;;  %v6417_v52 = vld [vmem:[#allocation2 + $0x668] sm:$0xf]  ;;  %v8602_v41 = vld [vmem:[#allocation2 + $0x614] sm:$0xf0] }
  0xf5   :  { %2568 = vmatpush.bf16.msra.mxu2 %v6114_v57  ;;  %v2337_v47 = vadd.f32 %v2336_v44, %v9358_v10  ;;  %v8646_v57 = vld [vmem:[#allocation2 + $0x774] sm:$0xf0]  ;;  %v6497_v44 = vld [vmem:[#allocation2 + $0x708] sm:$0xf] }
  0xf6   :  { %2581 = vmatpush.bf16.msra.mxu3 %v6242_v60  ;;  %v6801_v60 = vld [vmem:[#allocation2 + $0x968] sm:$0xf]  ;;  %v6546_v10 = vor.u32 %v8646_v57, %v6545_v54  ;;  %v8634_v45 = vld [vmem:[#allocation2 + $0x714] sm:$0xf0]  ;;  %v8436_v54 = vld [vmem:[#allocation2 + $0xec] sm:$0xf] }
  0xf7   :  { %2543 = vmatmul.bf16.vlgmr.msra.gmra.mxu0 %v9279_v8  ;;  %2556 = vmatmul.bf16.vlgmr.msra.gmra.mxu1 %v9286_v15  ;;  %v2350_v56 = vadd.f32 %v2349_v49, %v2337_v47  ;;  %v6770_v47 = vor.u32 %v8702_v35, %v6769_v33  ;;  %v6753_v49 = vld [vmem:[#allocation2 + $0x908] sm:$0xf]  ;;  %v5715_v57 = vld [vmem:[#allocation2 + $0xf8] sm:$0xf0]  ;;  %v8750_v24 = vld [vmem:[#allocation2 + $0xab4] sm:$0xf0] }
  0xf8   :  { %2587 = vmatpush.bf16.msrb.mxu0 %v6482_v61  ;;  %2600 = vmatpush.bf16.msrb.mxu1 %v6610_v62  ;;  %v8710_v61 = vld [vmem:[#allocation2 + $0x974] sm:$0xf0]  ;;  %v6418_v62 = vor.u32 %v8614_v53, %v6417_v52  ;;  %v6993_v52 = vld [vmem:[#allocation2 + $0xae8] sm:$0xf]  ;;  %v5718_v0 = vor.u32 %v8436_v54, %v5715_v57  ;;  %v5811_v33 = vld [vmem:[#allocation2 + $0x1b8] sm:$0xf0] }
  0xf9   :  { %2613 = vmatpush.bf16.msrb.mxu2 %v6738_v63  ;;  %2582 = vmatmul.bf16.vlgmr.msra.gmra.mxu3 %v9315_v40  ;;  %v6674_v63 = vor.u32 %v8678_v59, %v6673_v58  ;;  %v8758_v53 = vld [vmem:[#allocation2 + $0xaf4] sm:$0xf0]  ;;  %v8468_v58 = vld [vmem:[#allocation2 + $0x1ec] sm:$0xf]  ;;  %v5843_v59 = vld [vmem:[#allocation2 + $0x1f8] sm:$0xf0] }
  0xfa   :  { %2626 = vmatpush.bf16.msrb.mxu3 %v6866_v2  ;;  %2569 = vmatmul.bf16.vlgmr.msra.gmra.mxu2 %v9311_v37  ;;  %v6802_v2 = vor.u32 %v8710_v61, %v6801_v60  ;;  %v6498_v60 = vor.u32 %v8634_v45, %v6497_v44  ;;  %v6994_v32 = vor.u32 %v8758_v53, %v6993_v52  ;;  %v8492_v35 = vld [vmem:[#allocation2 + $0x2ac] sm:$0xf]  ;;  %v8746_v44 = vld [vmem:[#allocation2 + $0xa94] sm:$0xf0] }
  0xfb   :  { %v8424_v45 = vld [vmem:[#allocation2 + $0x8c] sm:$0xf]  ;;  %v8742_v57 = vld [vmem:[#allocation2 + $0xa74] sm:$0xf0] }
  0xfc   :  { %2588 = vmatpush.bf16.msrb.mxu0 %v6466_v11  ;;  %2601 = vmatpush.bf16.msrb.mxu1 %v6594_v12  ;;  %v6785_v11 = vld [vmem:[#allocation2 + $0x948] sm:$0xf]  ;;  %v8706_v12 = vld [vmem:[#allocation2 + $0x954] sm:$0xf0]  ;;  %v2338_v14 = vpop.f32.mrf.mxu0  ;;  %v2351_v18 = vpop.f32.mrf.mxu1 }
  0xfd   :  { %2614 = vmatpush.bf16.msrb.mxu2 %v6722_v13  ;;  %v2362_v3 = vpop.f32.mrf.mxu2  ;;  %v9367_v13 = vpop.f32.mrf.mxu3  ;;  %v6786_v27 = vor.u32 %v8706_v12, %v6785_v11  ;;  %v8464_v11 = vld [vmem:[#allocation2 + $0x1cc] sm:$0xf]  ;;  %v5827_v12 = vld [vmem:[#allocation2 + $0x1d8] sm:$0xf0] }
  0xfe   :  { %2627 = vmatpush.bf16.msrb.mxu3 %v6850_v19  ;;  %v9365_v7 = vadd.f32 %v2362_v3, %v2350_v56  ;;  %v6530_v19 = vor.u32 %v8642_v4, %v6529_v1  ;;  %v5846_v1 = vor.u32 %v8468_v58, %v5843_v59  ;;  %v8754_v3 = vld [vmem:[#allocation2 + $0xad4] sm:$0xf0]  ;;  %v8432_v4 = vld [vmem:[#allocation2 + $0xcc] sm:$0xf]  ;;  %v5830_v23 = vor.u32 %v8464_v11, %v5827_v12 }
  0xff   :  { %v8496_v14 = vld [vmem:[#allocation2 + $0x2cc] sm:$0xf] }
 0x100   :  { %2589 = vmatpush.bf16.msrb.mxu0 %v6450_v29  ;;  %2602 = vmatpush.bf16.msrb.mxu1 %v6578_v30  ;;  %v8638_v29 = vld [vmem:[#allocation2 + $0x734] sm:$0xf0]  ;;  %v6641_v30 = vld [vmem:[#allocation2 + $0x828] sm:$0xf] }
 0x101   :  { %2615 = vmatpush.bf16.msrb.mxu2 %v6706_v31  ;;  %v8670_v31 = vld [vmem:[#allocation2 + $0x834] sm:$0xf0]  ;;  %v6514_v42 = vor.u32 %v8638_v29, %v6513_v26  ;;  %v8428_v26 = vld [vmem:[#allocation2 + $0xac] sm:$0xf] }
 0x102   :  { %2628 = vmatpush.bf16.msrb.mxu3 %v6834_v39  ;;  %v6369_v39 = vld [vmem:[#allocation2 + $0x608] sm:$0xf]  ;;  %v6642_v43 = vor.u32 %v8670_v31, %v6641_v30  ;;  %v5683_v30 = vld [vmem:[#allocation2 + $0xb8] sm:$0xf0]  ;;  %v8460_v31 = vld [vmem:[#allocation2 + $0x1ac] sm:$0xf] }
 0x103   :  { %v6370_v56 = vor.u32 %v8602_v41, %v6369_v39  ;;  %v5814_v41 = vor.u32 %v8460_v31, %v5811_v33  ;;  %v6897_v33 = vld [vmem:[#allocation2 + $0xa28] sm:$0xf] }
 0x104   :  { %2590 = vmatpush.bf16.msrb.mxu0 %v6434_v48  ;;  %2603 = vmatpush.bf16.msrb.mxu1 %v6562_v50  ;;  %v8666_v48 = vld [vmem:[#allocation2 + $0x814] sm:$0xf0] }
 0x105   :  { %2616 = vmatpush.bf16.msrb.mxu2 %v6690_v51  ;;  %v8698_v50 = vld [vmem:[#allocation2 + $0x914] sm:$0xf0]  ;;  %v2364_v51 = vpop.f32.mrf.mxu2  ;;  %v6626_v61 = vor.u32 %v8666_v48, %v6625_v46  ;;  %v8456_v48 = vld [vmem:[#allocation2 + $0x18c] sm:$0xf] }
 0x106   :  { %2629 = vmatpush.bf16.msrb.mxu3 %v6818_v55  ;;  %v2377_v55 = vpop.f32.mrf.mxu3  ;;  %v5923_v51 = vld [vmem:[#allocation2 + $0x298] sm:$0xf0] }
 0x108   :  { %2591 = vmatpush.bf16.msrb.mxu0 %v6418_v62  ;;  %2604 = vmatpush.bf16.msrb.mxu1 %v6546_v10  ;;  %v8500_v62 = vld [vmem:[#allocation2 + $0x2ec] sm:$0xf]  ;;  %v5971_v10 = vld [vmem:[#allocation2 + $0x2f8] sm:$0xf0] }
 0x109   :  { %2617 = vmatpush.bf16.msrb.mxu2 %v6674_v63  ;;  %v6754_v63 = vor.u32 %v8698_v50, %v6753_v49  ;;  %v5974_v5 = vor.u32 %v8500_v62, %v5971_v10  ;;  %v5795_v49 = vld [vmem:[#allocation2 + $0x198] sm:$0xf0]  ;;  %v8488_v50 = vld [vmem:[#allocation2 + $0x28c] sm:$0xf] }
 0x10a   :  { %2630 = vmatpush.bf16.msrb.mxu3 %v6802_v2  ;;  %v6977_v2 = vld [vmem:[#allocation2 + $0xac8] sm:$0xf]  ;;  %v5798_v55 = vor.u32 %v8456_v48, %v5795_v49  ;;  %v8452_v62 = vld [vmem:[#allocation2 + $0x16c] sm:$0xf]  ;;  %v5779_v10 = vld [vmem:[#allocation2 + $0x178] sm:$0xf0] }
 0x10b   :  { %v6978_v18 = vor.u32 %v8754_v3, %v6977_v2  ;;  %v5782_v3 = vor.u32 %v8452_v62, %v5779_v10  ;;  %v8730_v48 = vld [vmem:[#allocation2 + $0xa14] sm:$0xf0]  ;;  %v6227_v10 = vld [vmem:[#allocation2 + $0x4f8] sm:$0xf0] }
 0x10c   :  { %2592 = vmatpush.bf16.msrb.mxu0 %v6402_v16  ;;  %2605 = vmatpush.bf16.msrb.mxu1 %v6530_v19  ;;  %v5955_v16 = vld [vmem:[#allocation2 + $0x2d8] sm:$0xf0]  ;;  %v6961_v19 = vld [vmem:[#allocation2 + $0xaa8] sm:$0xf] }
 0x10d   :  { %2618 = vmatpush.bf16.msrb.mxu2 %v6658_v20  ;;  %v5702_v20 = vor.u32 %v8432_v4, %v5699_v6  ;;  %v5958_v29 = vor.u32 %v8496_v14, %v5955_v16  ;;  %v6962_v39 = vor.u32 %v8750_v24, %v6961_v19  ;;  %v6913_v4 = vld [vmem:[#allocation2 + $0xa48] sm:$0xf]  ;;  %v8416_v6 = vld [vmem:[#allocation2 + $0x4c] sm:$0xf]  ;;  %v5635_v14 = vld [vmem:[#allocation2 + $0x58] sm:$0xf0] }
 0x10e   :  { %2631 = vmatpush.bf16.msrb.mxu3 %v6786_v27  ;;  %v456_v27 = vperm.slane %v9348_v28, 1  ;;  %v5686_v28 = vor.u32 %v8428_v26, %v5683_v30  ;;  %v8448_v16 = vld [vmem:[#allocation2 + $0x14c] sm:$0xf]  ;;  %v5891_v24 = vld [vmem:[#allocation2 + $0x258] sm:$0xf0]  ;;  %v5638_v30 = vor.u32 %v8416_v6, %v5635_v14 }
 0x10f   :  { %v6083_v14 = vld [vmem:[#allocation2 + $0x3d8] sm:$0xf0] }
 0x110   :  { %2593 = vmatpush.bf16.msrb.mxu0 %v6386_v36  ;;  %2606 = vmatpush.bf16.msrb.mxu1 %v6514_v42  ;;  %v5939_v36 = vld [vmem:[#allocation2 + $0x2b8] sm:$0xf0]  ;;  %v2376_v42 = vadd.f32 %v9367_v13, %v456_v27  ;;  %v8420_v13 = vld [vmem:[#allocation2 + $0x6c] sm:$0xf] }
 0x111   :  { %2619 = vmatpush.bf16.msrb.mxu2 %v6642_v43  ;;  %v6945_v43 = vld [vmem:[#allocation2 + $0xa88] sm:$0xf]  ;;  %v5942_v46 = vor.u32 %v8492_v35, %v5939_v36  ;;  %v8734_v35 = vld [vmem:[#allocation2 + $0xa34] sm:$0xf0]  ;;  %v8412_v36 = vld [vmem:[#allocation2 + $0x2c] sm:$0xf] }
 0x112   :  { %2632 = vmatpush.bf16.msrb.mxu3 %v6770_v47  ;;  %v5667_v47 = vld [vmem:[#allocation2 + $0x98] sm:$0xf0]  ;;  %v6946_v52 = vor.u32 %v8746_v44, %v6945_v43  ;;  %v8476_v44 = vld [vmem:[#allocation2 + $0x22c] sm:$0xf] }
 0x113   :  { %v5670_v54 = vor.u32 %v8424_v45, %v5667_v47  ;;  %v5747_v43 = vld [vmem:[#allocation2 + $0x138] sm:$0xf0]  ;;  %v6881_v47 = vld [vmem:[#allocation2 + $0xa08] sm:$0xf] }
 0x114   :  { %2594 = vmatpush.bf16.msrb.mxu0 %v6370_v56  ;;  %2607 = vmatpush.bf16.msrb.mxu1 %v6498_v60  ;;  %v2388_v53 = vpop.f32.mrf.mxu0  ;;  %v6929_v56 = vld [vmem:[#allocation2 + $0xa68] sm:$0xf]  ;;  %v2401_v59 = vpop.f32.mrf.mxu1  ;;  %v5926_v60 = vor.u32 %v8488_v50, %v5923_v51  ;;  %v5875_v45 = vld [vmem:[#allocation2 + $0x238] sm:$0xf0]  ;;  %v8408_v51 = vld [vmem:[#allocation2 + $0xc] sm:$0xf]  ;;  %v6882_v62 = vor.u32 %v8730_v48, %v6881_v47 }
 0x115   :  { %2620 = vmatpush.bf16.msrb.mxu2 %v6626_v61  ;;  %v2389_v58 = vadd.f32 %v2388_v53, %v2376_v42  ;;  %v5651_v61 = vld [vmem:[#allocation2 + $0x78] sm:$0xf0]  ;;  %v8444_v42 = vld [vmem:[#allocation2 + $0x12c] sm:$0xf] }
 0x116   :  { %2633 = vmatpush.bf16.msrb.mxu3 %v6754_v63  ;;  %v8484_v63 = vld [vmem:[#allocation2 + $0x26c] sm:$0xf]  ;;  %v5654_v2 = vor.u32 %v8420_v13, %v5651_v61  ;;  %v5750_v50 = vor.u32 %v8444_v42, %v5747_v43  ;;  %v5859_v13 = vld [vmem:[#allocation2 + $0x218] sm:$0xf0] }
 0x117   :  { %2595 = vmatmul.bf16.vlgmr.msrb.gmra.mxu0 %v9309_v34  ;;  %2608 = vmatmul.bf16.vlgmr.msrb.gmra.mxu1 %v9313_v38  ;;  %v8440_v53 = vld [vmem:[#allocation2 + $0x10c] sm:$0xf]  ;;  %v6323_v42 = vld [vmem:[#allocation2 + $0x5b8] sm:$0xf0] }
 0x118   :  { %2639 = vmatpush.bf16.msra.mxu0 %v6994_v32  ;;  %2652 = vmatpush.bf16.msra.mxu1 %v5718_v0  ;;  %v5907_v32 = vld [vmem:[#allocation2 + $0x278] sm:$0xf0]  ;;  %v2402_v0 = vadd.f32 %v2401_v59, %v2389_v58  ;;  %v8532_v59 = vld [vmem:[#allocation2 + $0x3ec] sm:$0xf] }
 0x119   :  { %2665 = vmatpush.bf16.msra.mxu2 %v5846_v1  ;;  %2634 = vmatmul.bf16.vlgmr.msrb.gmra.mxu3 %v9334_v22  ;;  %v6930_v1 = vor.u32 %v8742_v57, %v6929_v56  ;;  %v5910_v12 = vor.u32 %v8484_v63, %v5907_v32  ;;  %v5731_v56 = vld [vmem:[#allocation2 + $0x118] sm:$0xf0]  ;;  %v8472_v57 = vld [vmem:[#allocation2 + $0x20c] sm:$0xf] }
 0x11a   :  { %2678 = vmatpush.bf16.msra.mxu3 %v5974_v5  ;;  %2621 = vmatmul.bf16.vlgmr.msrb.gmra.mxu2 %v9330_v17  ;;  %v8738_v5 = vld [vmem:[#allocation2 + $0xa54] sm:$0xf0]  ;;  %v8564_v61 = vld [vmem:[#allocation2 + $0x4ec] sm:$0xf]  ;;  %v6355_v32 = vld [vmem:[#allocation2 + $0x5f8] sm:$0xf0] }
 0x11b   :  { %v6914_v26 = vor.u32 %v8738_v5, %v6913_v4  ;;  %v8596_v63 = vld [vmem:[#allocation2 + $0x5ec] sm:$0xf]  ;;  %v5862_v4 = vor.u32 %v8472_v57, %v5859_v13  ;;  %v6230_v6 = vor.u32 %v8564_v61, %v6227_v10 }
 0x11c   :  { %2640 = vmatpush.bf16.msra.mxu0 %v6978_v18  ;;  %2653 = vmatpush.bf16.msra.mxu1 %v5702_v20  ;;  %v5763_v18 = vld [vmem:[#allocation2 + $0x158] sm:$0xf0]  ;;  %v2427_v20 = vpop.f32.mrf.mxu3  ;;  %v8620_v43 = vld [vmem:[#allocation2 + $0x6ac] sm:$0xf] }
 0x11d   :  { %2666 = vmatpush.bf16.msra.mxu2 %v5830_v23  ;;  %v2414_v11 = vpop.f32.mrf.mxu2  ;;  %v8480_v23 = vld [vmem:[#allocation2 + $0x24c] sm:$0xf]  ;;  %v5766_v31 = vor.u32 %v8448_v16, %v5763_v18 }
 0x11e   :  { %2679 = vmatpush.bf16.msra.mxu3 %v5958_v29  ;;  %v2415_v19 = vadd.f32 %v2414_v11, %v2402_v0  ;;  %v2390_v29 = vpop.f32.mrf.mxu0  ;;  %v6358_v11 = vor.u32 %v8596_v63, %v6355_v32  ;;  %v8560_v16 = vld [vmem:[#allocation2 + $0x4cc] sm:$0xf]  ;;  %v6163_v63 = vld [vmem:[#allocation2 + $0x478] sm:$0xf0] }
 0x11f   :  { %v8520_v48 = vld [vmem:[#allocation2 + $0x38c] sm:$0xf] }
 0x120   :  { %2641 = vmatpush.bf16.msra.mxu0 %v6962_v39  ;;  %2654 = vmatpush.bf16.msra.mxu1 %v5686_v28  ;;  %v9375_v27 = vadd.f32 %v2427_v20, %v2415_v19  ;;  %v2403_v39 = vpop.f32.mrf.mxu1  ;;  %v5894_v28 = vor.u32 %v8480_v23, %v5891_v24  ;;  %v6211_v19 = vld [vmem:[#allocation2 + $0x4d8] sm:$0xf0]  ;;  %v8592_v20 = vld [vmem:[#allocation2 + $0x5cc] sm:$0xf] }
 0x121   :  { %2667 = vmatpush.bf16.msra.mxu2 %v5814_v41  ;;  %v5619_v41 = vld [vmem:[#allocation2 + $0x38] sm:$0xf0]  ;;  %v8624_v24 = vld [vmem:[#allocation2 + $0x6cc] sm:$0xf] }
 0x122   :  { %2680 = vmatpush.bf16.msra.mxu3 %v5942_v46  ;;  %v6898_v46 = vor.u32 %v8734_v35, %v6897_v33  ;;  %v5622_v49 = vor.u32 %v8412_v36, %v5619_v41  ;;  %v6339_v23 = vld [vmem:[#allocation2 + $0x5d8] sm:$0xf0]  ;;  %v8524_v33 = vld [vmem:[#allocation2 + $0x3ac] sm:$0xf] }
 0x123   :  { %v6067_v35 = vld [vmem:[#allocation2 + $0x3b8] sm:$0xf0]  ;;  %v8556_v36 = vld [vmem:[#allocation2 + $0x4ac] sm:$0xf] }
 0x124   :  { %2642 = vmatpush.bf16.msra.mxu0 %v6946_v52  ;;  %2655 = vmatpush.bf16.msra.mxu1 %v5670_v54  ;;  %v5603_v52 = vld [vmem:[#allocation2 + $0x18] sm:$0xf0]  ;;  %v2429_v58 = vpop.f32.mrf.mxu3  ;;  %v8588_v41 = vld [vmem:[#allocation2 + $0x5ac] sm:$0xf] }
 0x125   :  { %2668 = vmatpush.bf16.msra.mxu2 %v5798_v55  ;;  %v2416_v54 = vpop.f32.mrf.mxu2  ;;  %v5878_v55 = vor.u32 %v8476_v44, %v5875_v45  ;;  %v5606_v0 = vor.u32 %v8408_v51, %v5603_v52  ;;  %v6451_v44 = vld [vmem:[#allocation2 + $0x6b8] sm:$0xf0]  ;;  %v6070_v45 = vor.u32 %v8524_v33, %v6067_v35  ;;  %v6326_v47 = vor.u32 %v8588_v41, %v6323_v42  ;;  %v8548_v61 = vld [vmem:[#allocation2 + $0x46c] sm:$0xf] }
 0x126   :  { %2681 = vmatpush.bf16.msra.mxu3 %v5926_v60  ;;  %v6099_v60 = vld [vmem:[#allocation2 + $0x3f8] sm:$0xf0]  ;;  %v6454_v51 = vor.u32 %v8620_v43, %v6451_v44  ;;  %v8580_v32 = vld [vmem:[#allocation2 + $0x56c] sm:$0xf] }
 0x127   :  { %v6102_v5 = vor.u32 %v8532_v59, %v6099_v60  ;;  %v6179_v52 = vld [vmem:[#allocation2 + $0x498] sm:$0xf0]  ;;  %v8516_v59 = vld [vmem:[#allocation2 + $0x36c] sm:$0xf] }
 0x128   :  { %2643 = vmatpush.bf16.msra.mxu0 %v6930_v1  ;;  %2656 = vmatpush.bf16.msra.mxu1 %v5654_v2  ;;  %v5734_v1 = vor.u32 %v8440_v53, %v5731_v56  ;;  %v8628_v2 = vld [vmem:[#allocation2 + $0x6ec] sm:$0xf]  ;;  %v6307_v54 = vld [vmem:[#allocation2 + $0x598] sm:$0xf0] }
 0x129   :  { %2669 = vmatpush.bf16.msra.mxu2 %v5782_v3  ;;  %v6483_v3 = vld [vmem:[#allocation2 + $0x6f8] sm:$0xf0]  ;;  %v8584_v53 = vld [vmem:[#allocation2 + $0x58c] sm:$0xf] }
 0x12a   :  { %2682 = vmatpush.bf16.msra.mxu3 %v5910_v12  ;;  %v8528_v12 = vld [vmem:[#allocation2 + $0x3cc] sm:$0xf]  ;;  %v6486_v18 = vor.u32 %v8628_v2, %v6483_v3  ;;  %v6435_v56 = vld [vmem:[#allocation2 + $0x698] sm:$0xf0]  ;;  %v6310_v58 = vor.u32 %v8584_v53, %v6307_v54 }
 0x12b   :  { %v6086_v29 = vor.u32 %v8528_v12, %v6083_v14  ;;  %v6035_v60 = vld [vmem:[#allocation2 + $0x378] sm:$0xf0]  ;;  %v8540_v41 = vld [vmem:[#allocation2 + $0x42c] sm:$0xf] }
 0x12c   :  { %2644 = vmatpush.bf16.msra.mxu0 %v6914_v26  ;;  %2657 = vmatpush.bf16.msra.mxu1 %v5638_v30  ;;  %v6467_v26 = vld [vmem:[#allocation2 + $0x6d8] sm:$0xf0]  ;;  %v6214_v30 = vor.u32 %v8560_v16, %v6211_v19  ;;  %v6038_v3 = vor.u32 %v8516_v59, %v6035_v60  ;;  %v8572_v44 = vld [vmem:[#allocation2 + $0x52c] sm:$0xf] }
 0x12d   :  { %2670 = vmatpush.bf16.msra.mxu2 %v5766_v31  ;;  %v6342_v31 = vor.u32 %v8592_v20, %v6339_v23  ;;  %v6470_v39 = vor.u32 %v8624_v24, %v6467_v26  ;;  %v6419_v2 = vld [vmem:[#allocation2 + $0x678] sm:$0xf0]  ;;  %v8608_v24 = vld [vmem:[#allocation2 + $0x64c] sm:$0xf] }
 0x12e   :  { %2683 = vmatpush.bf16.msra.mxu3 %v5894_v28  ;;  %v6195_v28 = vld [vmem:[#allocation2 + $0x4b8] sm:$0xf0]  ;;  %v8536_v53 = vld [vmem:[#allocation2 + $0x40c] sm:$0xf] }
 0x12f   :  { %v6147_v16 = vld [vmem:[#allocation2 + $0x458] sm:$0xf0]  ;;  %v8692_v59 = vld [vmem:[#allocation2 + $0x8ec] sm:$0xf] }
 0x130   :  { %2645 = vmatpush.bf16.msra.mxu0 %v6898_v46  ;;  %2658 = vmatpush.bf16.msra.mxu1 %v5622_v49  ;;  %v6198_v46 = vor.u32 %v8556_v36, %v6195_v28  ;;  %v6051_v49 = vld [vmem:[#allocation2 + $0x398] sm:$0xf0] }
 0x131   :  { %2671 = vmatpush.bf16.msra.mxu2 %v5750_v50  ;;  %v8552_v50 = vld [vmem:[#allocation2 + $0x48c] sm:$0xf]  ;;  %v6054_v57 = vor.u32 %v8520_v48, %v6051_v49  ;;  %v6275_v19 = vld [vmem:[#allocation2 + $0x558] sm:$0xf0] }
 0x132   :  { %2684 = vmatpush.bf16.msra.mxu3 %v5878_v55  ;;  %v6182_v13 = vor.u32 %v8552_v50, %v6179_v52  ;;  %v6403_v26 = vld [vmem:[#allocation2 + $0x658] sm:$0xf0]  ;;  %v8504_v49 = vld [vmem:[#allocation2 + $0x30c] sm:$0xf] }
 0x133   :  { %v6003_v28 = vld [vmem:[#allocation2 + $0x338] sm:$0xf0]  ;;  %v6406_v42 = vor.u32 %v8608_v24, %v6403_v26 }
 0x134   :  { %2646 = vmatpush.bf16.msra.mxu0 %v6882_v62  ;;  %2659 = vmatpush.bf16.msra.mxu1 %v5606_v0  ;;  %v2440_v55 = vpop.f32.mrf.mxu0  ;;  %v6291_v0 = vld [vmem:[#allocation2 + $0x578] sm:$0xf0] }
 0x135   :  { %2672 = vmatpush.bf16.msra.mxu2 %v5734_v1  ;;  %v8612_v1 = vld [vmem:[#allocation2 + $0x66c] sm:$0xf]  ;;  %v6131_v43 = vld [vmem:[#allocation2 + $0x438] sm:$0xf0] }
 0x136   :  { %2685 = vmatpush.bf16.msra.mxu3 %v5862_v4  ;;  %v6294_v4 = vor.u32 %v8580_v32, %v6291_v0  ;;  %v6422_v12 = vor.u32 %v8612_v1, %v6419_v2  ;;  %v5987_v50 = vld [vmem:[#allocation2 + $0x318] sm:$0xf0]  ;;  %v8756_v1 = vld [vmem:[#allocation2 + $0xaec] sm:$0xf] }
 0x137   :  { %2647 = vmatmul.bf16.vlgmr.msra.gmra.mxu0 %v9332_v21  ;;  %2660 = vmatmul.bf16.vlgmr.msra.gmra.mxu1 %v9281_v9  ;;  %v2453_v9 = vpop.f32.mrf.mxu1  ;;  %v6115_v54 = vld [vmem:[#allocation2 + $0x418] sm:$0xf0] }
 0x138   :  { %2691 = vmatpush.bf16.msrb.mxu0 %v6102_v5  ;;  %2704 = vmatpush.bf16.msrb.mxu1 %v6230_v6  ;;  %v8512_v5 = vld [vmem:[#allocation2 + $0x34c] sm:$0xf]  ;;  %v6019_v6 = vld [vmem:[#allocation2 + $0x358] sm:$0xf0]  ;;  %v6118_v32 = vor.u32 %v8536_v53, %v6115_v54 }
 0x139   :  { %2717 = vmatpush.bf16.msrb.mxu2 %v6358_v11  ;;  %2686 = vmatmul.bf16.vlgmr.msra.gmra.mxu3 %v9279_v8  ;;  %v2441_v8 = vadd.f32 %v2440_v55, %v9375_v27  ;;  %v6166_v27 = vor.u32 %v8548_v61, %v6163_v63  ;;  %v8544_v11 = vld [vmem:[#allocation2 + $0x44c] sm:$0xf]  ;;  %v5990_v61 = vor.u32 %v8504_v49, %v5987_v50  ;;  %v6867_v63 = vld [vmem:[#allocation2 + $0x9f8] sm:$0xf0] }
 0x13a   :  { %2730 = vmatpush.bf16.msrb.mxu3 %v6486_v18  ;;  %2673 = vmatmul.bf16.vlgmr.msra.gmra.mxu2 %v9294_v25  ;;  %v8616_v25 = vld [vmem:[#allocation2 + $0x68c] sm:$0xf]  ;;  %v6150_v35 = vor.u32 %v8544_v11, %v6147_v16  ;;  %v6995_v2 = vld [vmem:[#allocation2 + $0xaf8] sm:$0xf0] }
 0x13b   :  { %v6438_v62 = vor.u32 %v8616_v25, %v6435_v56  ;;  %v2454_v10 = vadd.f32 %v2453_v9, %v2441_v8  ;;  %v8576_v18 = vld [vmem:[#allocation2 + $0x54c] sm:$0xf]  ;;  %v6243_v56 = vld [vmem:[#allocation2 + $0x518] sm:$0xf0] }
 0x13c   :  { %2692 = vmatpush.bf16.msrb.mxu0 %v6086_v29  ;;  %2705 = vmatpush.bf16.msrb.mxu1 %v6214_v30  ;;  %v2479_v23 = vpop.f32.mrf.mxu3  ;;  %v2442_v29 = vpop.f32.mrf.mxu0  ;;  %v6022_v30 = vor.u32 %v8512_v5, %v6019_v6  ;;  %v6278_v36 = vor.u32 %v8576_v18, %v6275_v19  ;;  %v8568_v55 = vld [vmem:[#allocation2 + $0x50c] sm:$0xf]  ;;  %v6595_v11 = vld [vmem:[#allocation2 + $0x7d8] sm:$0xf0] }
 0x13d   :  { %2718 = vmatpush.bf16.msrb.mxu2 %v6342_v31  ;;  %v2466_v14 = vpop.f32.mrf.mxu2  ;;  %v8600_v8 = vld [vmem:[#allocation2 + $0x60c] sm:$0xf]  ;;  %v6246_v0 = vor.u32 %v8568_v55, %v6243_v56  ;;  %v6723_v16 = vld [vmem:[#allocation2 + $0x8d8] sm:$0xf0] }
 0x13e   :  { %2731 = vmatpush.bf16.msrb.mxu3 %v6470_v39  ;;  %v2467_v20 = vadd.f32 %v2466_v14, %v2454_v10  ;;  %v8508_v39 = vld [vmem:[#allocation2 + $0x32c] sm:$0xf]  ;;  %v6998_v14 = vor.u32 %v8756_v1, %v6995_v2  ;;  %v6851_v19 = vld [vmem:[#allocation2 + $0x9d8] sm:$0xf0] }
 0x13f   :  { %v2455_v31 = vpop.f32.mrf.mxu1  ;;  %v6006_v48 = vor.u32 %v8508_v39, %v6003_v28  ;;  %v8724_v10 = vld [vmem:[#allocation2 + $0x9ec] sm:$0xf]  ;;  %v6707_v39 = vld [vmem:[#allocation2 + $0x8b8] sm:$0xf0] }
 0x140   :  { %2693 = vmatpush.bf16.msrb.mxu0 %v6070_v45  ;;  %2706 = vmatpush.bf16.msrb.mxu1 %v6198_v46  ;;  %v9382_v33 = vadd.f32 %v2479_v23, %v2467_v20  ;;  %v6259_v45 = vld [vmem:[#allocation2 + $0x538] sm:$0xf0]  ;;  %v8604_v46 = vld [vmem:[#allocation2 + $0x62c] sm:$0xf]  ;;  %v6870_v5 = vor.u32 %v8724_v10, %v6867_v63 }
 0x141   :  { %2719 = vmatpush.bf16.msrb.mxu2 %v6326_v47  ;;  %v6387_v47 = vld [vmem:[#allocation2 + $0x638] sm:$0xf0]  ;;  %v6262_v52 = vor.u32 %v8572_v44, %v6259_v45  ;;  %v8656_v6 = vld [vmem:[#allocation2 + $0x7cc] sm:$0xf] }
 0x142   :  { %2732 = vmatpush.bf16.msrb.mxu3 %v6454_v51  ;;  %v6134_v51 = vor.u32 %v8540_v41, %v6131_v43  ;;  %v6390_v25 = vor.u32 %v8604_v46, %v6387_v47  ;;  %v8720_v18 = vld [vmem:[#allocation2 + $0x9cc] sm:$0xf]  ;;  %v6979_v23 = vld [vmem:[#allocation2 + $0xad8] sm:$0xf0]  ;;  %v6598_v24 = vor.u32 %v8656_v6, %v6595_v11 }
 0x143   :  { %v8752_v20 = vld [vmem:[#allocation2 + $0xacc] sm:$0xf]  ;;  %v6854_v29 = vor.u32 %v8720_v18, %v6851_v19  ;;  %v6579_v31 = vld [vmem:[#allocation2 + $0x7b8] sm:$0xf0] }
 0x144   :  { %2694 = vmatpush.bf16.msrb.mxu0 %v6054_v57  ;;  %2707 = vmatpush.bf16.msrb.mxu1 %v6182_v13  ;;  %v6371_v57 = vld [vmem:[#allocation2 + $0x618] sm:$0xf0]  ;;  %v8660_v13 = vld [vmem:[#allocation2 + $0x7ec] sm:$0xf]  ;;  %v2481_v60 = vpop.f32.mrf.mxu3 }
 0x145   :  { %2720 = vmatpush.bf16.msrb.mxu2 %v6310_v58  ;;  %v2468_v9 = vpop.f32.mrf.mxu2  ;;  %v6611_v58 = vld [vmem:[#allocation2 + $0x7f8] sm:$0xf0]  ;;  %v8716_v28 = vld [vmem:[#allocation2 + $0x9ac] sm:$0xf] }
 0x146   :  { %2733 = vmatpush.bf16.msrb.mxu3 %v6438_v62  ;;  %v6739_v62 = vld [vmem:[#allocation2 + $0x8f8] sm:$0xf0]  ;;  %v8648_v47 = vld [vmem:[#allocation2 + $0x78c] sm:$0xf] }
 0x147   :  { %v6835_v41 = vld [vmem:[#allocation2 + $0x9b8] sm:$0xf0]  ;;  %v8644_v56 = vld [vmem:[#allocation2 + $0x76c] sm:$0xf] }
 0x148   :  { %2695 = vmatpush.bf16.msrb.mxu0 %v6038_v3  ;;  %2708 = vmatpush.bf16.msrb.mxu1 %v6166_v27  ;;  %v6374_v3 = vor.u32 %v8600_v8, %v6371_v57  ;;  %v6614_v27 = vor.u32 %v8660_v13, %v6611_v58  ;;  %v6963_v43 = vld [vmem:[#allocation2 + $0xab8] sm:$0xf0]  ;;  %v6838_v46 = vor.u32 %v8716_v28, %v6835_v41  ;;  %v8676_v57 = vld [vmem:[#allocation2 + $0x86c] sm:$0xf] }
 0x149   :  { %2721 = vmatpush.bf16.msrb.mxu2 %v6294_v4  ;;  %v6742_v4 = vor.u32 %v8692_v59, %v6739_v62  ;;  %v6691_v50 = vld [vmem:[#allocation2 + $0x898] sm:$0xf0]  ;;  %v8708_v58 = vld [vmem:[#allocation2 + $0x96c] sm:$0xf] }
 0x14a   :  { %2734 = vmatpush.bf16.msrb.mxu3 %v6422_v12  ;;  %v8688_v12 = vld [vmem:[#allocation2 + $0x8cc] sm:$0xf]  ;;  %v6547_v8 = vld [vmem:[#allocation2 + $0x778] sm:$0xf0] }
 0x14b   :  { %v6726_v26 = vor.u32 %v8688_v12, %v6723_v16  ;;  %v6675_v13 = vld [vmem:[#allocation2 + $0x878] sm:$0xf0]  ;;  %v8740_v60 = vld [vmem:[#allocation2 + $0xa6c] sm:$0xf]  ;;  %v6550_v62 = vor.u32 %v8644_v56, %v6547_v8 }
 0x14c   :  { %2696 = vmatpush.bf16.msrb.mxu0 %v6022_v30  ;;  %2709 = vmatpush.bf16.msrb.mxu1 %v6150_v35  ;;  %v8652_v30 = vld [vmem:[#allocation2 + $0x7ac] sm:$0xf]  ;;  %v6803_v59 = vld [vmem:[#allocation2 + $0x978] sm:$0xf0]  ;;  %v6678_v10 = vor.u32 %v8676_v57, %v6675_v13 }
 0x14d   :  { %2722 = vmatpush.bf16.msrb.mxu2 %v6278_v36  ;;  %v8684_v35 = vld [vmem:[#allocation2 + $0x8ac] sm:$0xf]  ;;  %v6982_v36 = vor.u32 %v8752_v20, %v6979_v23  ;;  %v6582_v44 = vor.u32 %v8652_v30, %v6579_v31  ;;  %v6806_v63 = vor.u32 %v8708_v58, %v6803_v59  ;;  %v6915_v11 = vld [vmem:[#allocation2 + $0xa58] sm:$0xf0]  ;;  %v9017_v58 = vld [vmem:[#allocation6 + $0x810] sm:$0xf0] }
 0x14e   :  { %2735 = vmatpush.bf16.msrb.mxu3 %v6406_v42  ;;  %v8748_v42 = vld [vmem:[#allocation2 + $0xaac] sm:$0xf]  ;;  %v6710_v45 = vor.u32 %v8684_v35, %v6707_v39  ;;  %v6643_v30 = vld [vmem:[#allocation2 + $0x838] sm:$0xf0] }
 0x14f   :  { %v6966_v49 = vor.u32 %v8748_v42, %v6963_v43  ;;  %v8672_v1 = vld [vmem:[#allocation2 + $0x84c] sm:$0xf]  ;;  %v6771_v35 = vld [vmem:[#allocation2 + $0x938] sm:$0xf0] }
 0x150   :  { %2697 = vmatpush.bf16.msrb.mxu0 %v6006_v48  ;;  %2710 = vmatpush.bf16.msrb.mxu1 %v6134_v51  ;;  %v6563_v48 = vld [vmem:[#allocation2 + $0x798] sm:$0xf0]  ;;  %v8712_v51 = vld [vmem:[#allocation2 + $0x98c] sm:$0xf] }
 0x151   :  { %2723 = vmatpush.bf16.msrb.mxu2 %v6262_v52  ;;  %v6819_v52 = vld [vmem:[#allocation2 + $0x998] sm:$0xf0]  ;;  %v6566_v54 = vor.u32 %v8648_v47, %v6563_v48  ;;  %v8736_v6 = vld [vmem:[#allocation2 + $0xa4c] sm:$0xf] }
 0x152   :  { %2736 = vmatpush.bf16.msrb.mxu3 %v6390_v25  ;;  %v6822_v25 = vor.u32 %v8712_v51, %v6819_v52  ;;  %v8636_v23 = vld [vmem:[#allocation2 + $0x72c] sm:$0xf]  ;;  %v6899_v39 = vld [vmem:[#allocation2 + $0xa38] sm:$0xf0] }
 0x153   :  { %v8700_v31 = vld [vmem:[#allocation2 + $0x92c] sm:$0xf]  ;;  %v6883_v51 = vld [vmem:[#allocation2 + $0xa18] sm:$0xf0] }
 0x154   :  { %2698 = vmatpush.bf16.msrb.mxu0 %v5990_v61  ;;  %2711 = vmatpush.bf16.msrb.mxu1 %v6118_v32  ;;  %v9388_v53 = vpop.f32.mrf.mxu0  ;;  %v9390_v55 = vpop.f32.mrf.mxu1  ;;  %v6931_v61 = vld [vmem:[#allocation2 + $0xa78] sm:$0xf0]  ;;  %v8640_v32 = vld [vmem:[#allocation2 + $0x74c] sm:$0xf]  ;;  %v6774_v43 = vor.u32 %v8700_v31, %v6771_v35  ;;  %v8797_v35 = vld [vmem:[#allocation6 + $0x130] sm:$0xf0] }
 0x155   :  { %2724 = vmatpush.bf16.msrb.mxu2 %v6246_v0  ;;  %v6531_v0 = vld [vmem:[#allocation2 + $0x758] sm:$0xf0]  ;;  %v6934_v2 = vor.u32 %v8740_v60, %v6931_v61  ;;  %v8632_v41 = vld [vmem:[#allocation2 + $0x70c] sm:$0xf]  ;;  %v7265_v60 = vld [vmem:[#allocation6 + $0x210] sm:$0xf] }
 0x156   :  { %2737 = vmatpush.bf16.msrb.mxu3 %v6374_v3  ;;  %v6659_v3 = vld [vmem:[#allocation2 + $0x858] sm:$0xf0]  ;;  %v6534_v16 = vor.u32 %v8640_v32, %v6531_v0  ;;  %v8696_v48 = vld [vmem:[#allocation2 + $0x90c] sm:$0xf]  ;;  %v8830_v61 = vld [vmem:[#allocation6 + $0x238] sm:$0xf0] }
 0x157   :  { %2699 = vmatmul.bf16.vlgmr.msrb.gmra.mxu0 %v9286_v15  ;;  %2712 = vmatmul.bf16.vlgmr.msrb.gmra.mxu1 %v9311_v37  ;;  %v8744_v15 = vld [vmem:[#allocation2 + $0xa8c] sm:$0xf]  ;;  %v6662_v19 = vor.u32 %v8672_v1, %v6659_v3  ;;  %v7266_v32 = vor.u32 %v8830_v61, %v7265_v60  ;;  %v7969_v0 = vld [vmem:[#allocation6 + $0x790] sm:$0xf]  ;;  %v9006_v1 = vld [vmem:[#allocation6 + $0x7b8] sm:$0xf0] }
 0x158   :  { %2743 = vmatpush.bf16.msra.mxu0 %v6614_v27  ;;  %2756 = vmatpush.bf16.msra.mxu1 %v6742_v4  ;;  %v8704_v27 = vld [vmem:[#allocation2 + $0x94c] sm:$0xf]  ;;  %v6787_v4 = vld [vmem:[#allocation2 + $0x958] sm:$0xf0]  ;;  %v8951_v60 = vld [vmem:[#allocation6 + $0x600] sm:$0xf0] }
 0x159   :  { %2769 = vmatpush.bf16.msra.mxu2 %v6870_v5  ;;  %2738 = vmatmul.bf16.vlgmr.msrb.gmra.mxu3 %v9309_v34  ;;  %v6947_v34 = vld [vmem:[#allocation2 + $0xa98] sm:$0xf0]  ;;  %v6790_v20 = vor.u32 %v8704_v27, %v6787_v4  ;;  %v7309_v52 = vld [vmem:[#allocation6 + $0x268] sm:$0xf]  ;;  %v8819_v27 = vld [vmem:[#allocation6 + $0x1e0] sm:$0xf0] }
 0x15a   :  { %2782 = vmatpush.bf16.msra.mxu3 %v6998_v14  ;;  %2725 = vmatmul.bf16.vlgmr.msrb.gmra.mxu2 %v9315_v40  ;;  %v8680_v40 = vld [vmem:[#allocation2 + $0x88c] sm:$0xf]  ;;  %v6950_v9 = vor.u32 %v8744_v15, %v6947_v34  ;;  %v8841_v15 = vld [vmem:[#allocation6 + $0x290] sm:$0xf0]  ;;  %v7221_v3 = vld [vmem:[#allocation6 + $0x1b8] sm:$0xf] }
 0x15b   :  { %v6694_v37 = vor.u32 %v8680_v40, %v6691_v50  ;;  %v6755_v40 = vld [vmem:[#allocation2 + $0x918] sm:$0xf0]  ;;  %v8013_v13 = vld [vmem:[#allocation6 + $0x7e8] sm:$0xf] }
 0x15c   :  { %2744 = vmatpush.bf16.msra.mxu0 %v6598_v24  ;;  %2757 = vmatpush.bf16.msra.mxu1 %v6726_v26  ;;  %v9394_v12 = vpop.f32.mrf.mxu3  ;;  %v2494_v14 = vpop.f32.mrf.mxu0  ;;  %v6515_v24 = vld [vmem:[#allocation2 + $0x738] sm:$0xf0]  ;;  %v8668_v26 = vld [vmem:[#allocation2 + $0x82c] sm:$0xf]  ;;  %v6758_v8 = vor.u32 %v8696_v48, %v6755_v40  ;;  %v7441_v40 = vld [vmem:[#allocation6 + $0x370] sm:$0xf] }
 0x15d   :  { %2770 = vmatpush.bf16.msra.mxu2 %v6854_v29  ;;  %v9392_v5 = vpop.f32.mrf.mxu2  ;;  %v2507_v18 = vpop.f32.mrf.mxu1  ;;  %v6918_v29 = vor.u32 %v8736_v6, %v6915_v11  ;;  %v6518_v28 = vor.u32 %v8636_v23, %v6515_v24  ;;  %v6646_v42 = vor.u32 %v8668_v26, %v6643_v30  ;;  %v7573_v4 = vld [vmem:[#allocation6 + $0x478] sm:$0xf]  ;;  %v8907_v6 = vld [vmem:[#allocation6 + $0x4a0] sm:$0xf0]  ;;  %v7970_v11 = vor.u32 %v9006_v1, %v7969_v0  ;;  %v7529_v23 = vld [vmem:[#allocation6 + $0x420] sm:$0xf] }
 0x15e   :  { %2783 = vmatpush.bf16.msra.mxu3 %v6982_v36  ;;  %v8732_v36 = vld [vmem:[#allocation2 + $0xa2c] sm:$0xf]  ;;  %v7222_v14 = vor.u32 %v8819_v27, %v7221_v3  ;;  %v8995_v18 = vld [vmem:[#allocation6 + $0x760] sm:$0xf0]  ;;  %v8896_v24 = vld [vmem:[#allocation6 + $0x448] sm:$0xf0]  ;;  %v2493_v0 = vadd.f32 %v9388_v53, %v9382_v33 }
 0x15f   :  { %v6902_v47 = vor.u32 %v8732_v36, %v6899_v39  ;;  %v7530_v30 = vor.u32 %v8896_v24, %v7529_v23  ;;  %v7133_v31 = vld [vmem:[#allocation6 + $0x108] sm:$0xf]  ;;  %v8852_v1 = vld [vmem:[#allocation6 + $0x2e8] sm:$0xf0]  ;;  %v7311_v3 = vld [vmem:[#allocation6 + $0x294] sm:$0xf0] }
 0x160   :  { %2745 = vmatpush.bf16.msra.mxu0 %v6582_v44  ;;  %2758 = vmatpush.bf16.msra.mxu1 %v6710_v45  ;;  %v6499_v44 = vld [vmem:[#allocation2 + $0x718] sm:$0xf0]  ;;  %v8664_v45 = vld [vmem:[#allocation2 + $0x80c] sm:$0xf]  ;;  %v2506_v24 = vadd.f32 %v9390_v55, %v2493_v0  ;;  %v8825_v53 = vld [vmem:[#allocation6 + $0x214] sm:$0xf] }
 0x161   :  { %2771 = vmatpush.bf16.msra.mxu2 %v6838_v46  ;;  %v6627_v46 = vld [vmem:[#allocation2 + $0x818] sm:$0xf0]  ;;  %v7485_v39 = vld [vmem:[#allocation6 + $0x3c8] sm:$0xf]  ;;  %v9417_v55 = vld [vmem:[#allocation4] sm:$0xf] }
 0x162   :  { %2784 = vmatpush.bf16.msra.mxu3 %v6966_v49  ;;  %v8728_v49 = vld [vmem:[#allocation2 + $0xa0c] sm:$0xf]  ;;  %v6630_v56 = vor.u32 %v8664_v45, %v6627_v46  ;;  %v7089_v46 = vld [vmem:[#allocation6 + $0xb0] sm:$0xf]  ;;  %v8015_v23 = vld [vmem:[#allocation6 + $0x814] sm:$0xf0] }
 0x163   :  { %v6886_v57 = vor.u32 %v8728_v49, %v6883_v51  ;;  %v8874_v49 = vld [vmem:[#allocation6 + $0x398] sm:$0xf0]  ;;  %v8968_v0 = vld [vmem:[#allocation6 + $0x68c] sm:$0xf] }
 0x164   :  { %2746 = vmatpush.bf16.msra.mxu0 %v6566_v54  ;;  %2759 = vmatpush.bf16.msra.mxu1 %v6694_v37  ;;  %v2533_v34 = vpop.f32.mrf.mxu3  ;;  %v6502_v54 = vor.u32 %v8632_v41, %v6499_v44  ;;  %v7661_v37 = vld [vmem:[#allocation6 + $0x528] sm:$0xf]  ;;  %v8973_v44 = vld [vmem:[#allocation6 + $0x6b0] sm:$0xf0] }
 0x165   :  { %2772 = vmatpush.bf16.msra.mxu2 %v6822_v25  ;;  %v2520_v50 = vpop.f32.mrf.mxu2  ;;  %v8929_v25 = vld [vmem:[#allocation6 + $0x550] sm:$0xf0]  ;;  %v7793_v34 = vld [vmem:[#allocation6 + $0x630] sm:$0xf] }
 0x166   :  { %2785 = vmatpush.bf16.msra.mxu3 %v6950_v9  ;;  %v7310_v9 = vor.u32 %v8841_v15, %v7309_v52  ;;  %v7662_v59 = vor.u32 %v8929_v25, %v7661_v37  ;;  %v7442_v37 = vor.u32 %v8874_v49, %v7441_v40  ;;  %v7045_v25 = vld [vmem:[#allocation6 + $0x58] sm:$0xf]  ;;  %v8990_v49 = vld [vmem:[#allocation6 + $0x73c] sm:$0xf] }
 0x168   :  { %2747 = vmatpush.bf16.msra.mxu0 %v6550_v62  ;;  %2760 = vmatpush.bf16.msra.mxu1 %v6678_v10  ;;  %v7617_v62 = vld [vmem:[#allocation6 + $0x4d0] sm:$0xf]  ;;  %v8918_v10 = vld [vmem:[#allocation6 + $0x4f8] sm:$0xf0] }
 0x169   :  { %2773 = vmatpush.bf16.msra.mxu2 %v6806_v63  ;;  %v8014_v63 = vor.u32 %v9017_v58, %v8013_v13 }
 0x16a   :  { %2786 = vmatpush.bf16.msra.mxu3 %v6934_v2  ;;  %v7618_v2 = vor.u32 %v8918_v10, %v7617_v62  ;;  %v7001_v62 = vld [vmem:[#allocation6] sm:$0xf]  ;;  %v8764_v10 = vld [vmem:[#allocation6 + $0x28] sm:$0xf0] }
 0x16c   :  { %2748 = vmatpush.bf16.msra.mxu0 %v6534_v16  ;;  %2761 = vmatpush.bf16.msra.mxu1 %v6662_v19  ;;  %v7925_v16 = vld [vmem:[#allocation6 + $0x738] sm:$0xf]  ;;  %v7574_v19 = vor.u32 %v8907_v6, %v7573_v4  ;;  %v8924_v4 = vld [vmem:[#allocation6 + $0x52c] sm:$0xf] }
 0x16d   :  { %2774 = vmatpush.bf16.msra.mxu2 %v6790_v20  ;;  %v8808_v20 = vld [vmem:[#allocation6 + $0x188] sm:$0xf0]  ;;  %v7663_v6 = vld [vmem:[#allocation6 + $0x554] sm:$0xf0] }
 0x16e   :  { %2787 = vmatpush.bf16.msra.mxu3 %v6918_v29  ;;  %v7881_v29 = vld [vmem:[#allocation6 + $0x6e0] sm:$0xf]  ;;  %v7666_v33 = vor.u32 %v8924_v4, %v7663_v6  ;;  %v8869_v4 = vld [vmem:[#allocation6 + $0x374] sm:$0xf] }
 0x16f   :  { %v7443_v6 = vld [vmem:[#allocation6 + $0x39c] sm:$0xf0] }
 0x170   :  { %2749 = vmatpush.bf16.msra.mxu0 %v6518_v28  ;;  %2762 = vmatpush.bf16.msra.mxu1 %v6646_v42  ;;  %v8885_v28 = vld [vmem:[#allocation6 + $0x3f0] sm:$0xf0]  ;;  %v7134_v42 = vor.u32 %v8797_v35, %v7133_v31  ;;  %v9413_v31 = vpack.c.bf16 %v9365_v7, %v9365_v7  ;;  %v7575_v7 = vld [vmem:[#allocation6 + $0x4a4] sm:$0xf0] }
 0x171   :  { %2775 = vmatpush.bf16.msra.mxu2 %v6774_v43  ;;  %v7837_v43 = vld [vmem:[#allocation6 + $0x688] sm:$0xf]  ;;  %v7486_v45 = vor.u32 %v8885_v28, %v7485_v39  ;;  %v9001_v39 = vld [vmem:[#allocation6 + $0x794] sm:$0xf]  ;;  %v7971_v28 = vld [vmem:[#allocation6 + $0x7bc] sm:$0xf0] }
 0x172   :  { %2788 = vmatpush.bf16.msra.mxu3 %v6902_v47  ;;  %v8786_v47 = vld [vmem:[#allocation6 + $0xd8] sm:$0xf0]  ;;  %v7838_v51 = vor.u32 %v8973_v44, %v7837_v43 }
 0x173   :  { %v7090_v52 = vor.u32 %v8786_v47, %v7089_v46  ;;  %v8814_v44 = vld [vmem:[#allocation6 + $0x1bc] sm:$0xf]  ;;  %v7974_v47 = vor.u32 %v9001_v39, %v7971_v28 }
 0x174   :  { %2750 = vmatpush.bf16.msra.mxu0 %v6502_v54  ;;  %2763 = vmatpush.bf16.msra.mxu1 %v6630_v56  ;;  %v9400_v26 = vpop.f32.mrf.mxu0  ;;  %v9402_v36 = vpop.f32.mrf.mxu1  ;;  %v8962_v54 = vld [vmem:[#allocation6 + $0x658] sm:$0xf0]  ;;  %v8775_v56 = vld [vmem:[#allocation6 + $0x80] sm:$0xf0] }
 0x175   :  { %2776 = vmatpush.bf16.msra.mxu2 %v6758_v8  ;;  %v7794_v13 = vor.u32 %v8962_v54, %v7793_v34  ;;  %v7046_v58 = vor.u32 %v8775_v56, %v7045_v25  ;;  %v8902_v46 = vld [vmem:[#allocation6 + $0x47c] sm:$0xf]  ;;  %v8803_v34 = vld [vmem:[#allocation6 + $0x164] sm:$0xf]  ;;  %v7179_v54 = vld [vmem:[#allocation6 + $0x18c] sm:$0xf0] }
 0x176   :  { %2789 = vmatpush.bf16.msra.mxu3 %v6886_v57  ;;  %v7397_v57 = vld [vmem:[#allocation6 + $0x318] sm:$0xf]  ;;  %v7531_v25 = vld [vmem:[#allocation6 + $0x44c] sm:$0xf0] }
 0x177   :  { %2751 = vmatmul.bf16.vlgmr.msra.gmra.mxu0 %v9313_v38  ;;  %2764 = vmatmul.bf16.vlgmr.msra.gmra.mxu1 %v9330_v17  ;;  %v7177_v38 = vld [vmem:[#allocation6 + $0x160] sm:$0xf]  ;;  %v7926_v17 = vor.u32 %v8995_v18, %v7925_v16  ;;  %v8940_v18 = vld [vmem:[#allocation6 + $0x5a8] sm:$0xf0] }
 0x178   :  { %5001 = vmatpush.bf16.msrb.mxu0 %v7310_v9  ;;  %5014 = vmatpush.bf16.msrb.mxu1 %v7662_v59  ;;  %v8863_v9 = vld [vmem:[#allocation6 + $0x340] sm:$0xf0]  ;;  %v7749_v59 = vld [vmem:[#allocation6 + $0x5d8] sm:$0xf]  ;;  %v7705_v16 = vld [vmem:[#allocation6 + $0x580] sm:$0xf] }
 0x179   :  { %2777 = vmatmul.bf16.vlgmr.msra.gmra.mxu2 %v9334_v22  ;;  %2790 = vmatmul.bf16.vlgmr.msra.gmra.mxu3 %v9332_v21  ;;  %v7178_v22 = vor.u32 %v8808_v20, %v7177_v38  ;;  %v8984_v21 = vld [vmem:[#allocation6 + $0x708] sm:$0xf0]  ;;  %v7398_v61 = vor.u32 %v8863_v9, %v7397_v57  ;;  %v7182_v57 = vor.u32 %v8803_v34, %v7179_v54  ;;  %v8979_v9 = vld [vmem:[#allocation6 + $0x6e4] sm:$0xf] }
 0x17a   :  { %5027 = vmatpush.bf16.msrb.mxu2 %v8014_v63  ;;  %v7882_v41 = vor.u32 %v8984_v21, %v7881_v29  ;;  %v7353_v63 = vld [vmem:[#allocation6 + $0x2c0] sm:$0xf]  ;;  %v9012_v20 = vld [vmem:[#allocation6 + $0x7ec] sm:$0xf]  ;;  %v7706_v21 = vor.u32 %v8940_v18, %v7705_v16 }
 0x17b   :  { %v7619_v29 = vld [vmem:[#allocation6 + $0x4fc] sm:$0xf0] }
 0x17c   :  { %5002 = vmatpush.bf16.msrb.mxu0 %v7266_v32  ;;  %5015 = vmatpush.bf16.msrb.mxu1 %v7618_v2  ;;  %v9406_v50 = vpop.f32.mrf.mxu3  ;;  %v2546_v15 = vpop.f32.mrf.mxu0  ;;  %v8836_v2 = vld [vmem:[#allocation6 + $0x26c] sm:$0xf] }
 0x17d   :  { %v9404_v48 = vpop.f32.mrf.mxu2  ;;  %v2559_v8 = vpop.f32.mrf.mxu1  ;;  %v7314_v38 = vor.u32 %v8836_v2, %v7311_v3  ;;  %v7578_v15 = vor.u32 %v8902_v46, %v7575_v7  ;;  %v8847_v46 = vld [vmem:[#allocation6 + $0x2c4] sm:$0xf]  ;;  %v7355_v7 = vld [vmem:[#allocation6 + $0x2ec] sm:$0xf0] }
 0x17e   :  { %5028 = vmatpush.bf16.msrb.mxu2 %v7970_v11  ;;  %v7750_v11 = vor.u32 %v8951_v60, %v7749_v59 }
 0x180   :  { %5003 = vmatpush.bf16.msrb.mxu0 %v7222_v14  ;;  %5016 = vmatpush.bf16.msrb.mxu1 %v7574_v19  ;;  %v7002_v14 = vor.u32 %v8764_v10, %v7001_v62  ;;  %v7354_v19 = vor.u32 %v8852_v1, %v7353_v63  ;;  %v8880_v62 = vld [vmem:[#allocation6 + $0x3cc] sm:$0xf]  ;;  %v7487_v10 = vld [vmem:[#allocation6 + $0x3f4] sm:$0xf0] }
 0x181   :  { %v7839_v1 = vld [vmem:[#allocation6 + $0x6b4] sm:$0xf0]  ;;  %v7490_v3 = vor.u32 %v8880_v62, %v7487_v10 }
 0x182   :  { %5029 = vmatpush.bf16.msrb.mxu2 %v7926_v17  ;;  %v7267_v17 = vld [vmem:[#allocation6 + $0x23c] sm:$0xf0]  ;;  %v7625_v62 = vld [vmem:[#allocation6 + $0x4d8] sm:$0xf] }
 0x183   :  { %v7270_v35 = vor.u32 %v8825_v53, %v7267_v17  ;;  %v8858_v53 = vld [vmem:[#allocation6 + $0x31c] sm:$0xf] }
 0x184   :  { %5004 = vmatpush.bf16.msrb.mxu0 %v7178_v22  ;;  %5017 = vmatpush.bf16.msrb.mxu1 %v7530_v30  ;;  %v2585_v27 = vpop.f32.mrf.mxu3  ;;  %v8913_v22 = vld [vmem:[#allocation6 + $0x4d4] sm:$0xf]  ;;  %v8018_v30 = vor.u32 %v9012_v20, %v8015_v23  ;;  %v7795_v20 = vld [vmem:[#allocation6 + $0x65c] sm:$0xf0] }
 0x185   :  { %v2572_v32 = vpop.f32.mrf.mxu2  ;;  %v7622_v43 = vor.u32 %v8913_v22, %v7619_v29  ;;  %v8781_v27 = vld [vmem:[#allocation6 + $0xb4] sm:$0xf]  ;;  %v7399_v22 = vld [vmem:[#allocation6 + $0x344] sm:$0xf0] }
 0x186   :  { %5030 = vmatpush.bf16.msrb.mxu2 %v7882_v41  ;;  %v9415_v41 = vpack.c.bf16 %v2506_v24, %v2506_v24  ;;  %v8770_v24 = vld [vmem:[#allocation6 + $0x5c] sm:$0xf]  ;;  %v8365_v29 = vld [vmem:[#allocation6 + $0xaa8] sm:$0xf] }
 0x188   :  { %5005 = vmatpush.bf16.msrb.mxu0 %v7134_v42  ;;  %5018 = vmatpush.bf16.msrb.mxu1 %v7486_v45  ;;  %v457_v42 = vperm.slane %v9417_v55, 2  ;;  %v7223_v45 = vld [vmem:[#allocation6 + $0x1e4] sm:$0xf0] }
 0x189   :  { %v7226_v40 = vor.u32 %v8814_v44, %v7223_v45  ;;  %v7751_v44 = vld [vmem:[#allocation6 + $0x604] sm:$0xf0]  ;;  %v7402_v45 = vor.u32 %v8858_v53, %v7399_v22 }
 0x18a   :  { %5031 = vmatpush.bf16.msrb.mxu2 %v7838_v51  ;;  %v7927_v51 = vld [vmem:[#allocation6 + $0x764] sm:$0xf0] }
 0x18b   :  { %v7930_v56 = vor.u32 %v8990_v49, %v7927_v51  ;;  %v8321_v49 = vld [vmem:[#allocation6 + $0xa50] sm:$0xf]  ;;  %v9094_v51 = vld [vmem:[#allocation6 + $0xa78] sm:$0xf0]  ;;  %v8189_v53 = vld [vmem:[#allocation6 + $0x948] sm:$0xf] }
 0x18c   :  { %5006 = vmatpush.bf16.msrb.mxu0 %v7090_v52  ;;  %5019 = vmatpush.bf16.msrb.mxu1 %v7442_v37  ;;  %v2519_v52 = vadd.f32 %v9392_v5, %v457_v42  ;;  %v8891_v37 = vld [vmem:[#allocation6 + $0x424] sm:$0xf]  ;;  %v8792_v5 = vld [vmem:[#allocation6 + $0x10c] sm:$0xf]  ;;  %v7003_v42 = vld [vmem:[#allocation6 + $0x2c] sm:$0xf0] }
 0x18d   :  { %v7534_v59 = vor.u32 %v8891_v37, %v7531_v25  ;;  %v8322_v37 = vor.u32 %v9094_v51, %v8321_v49  ;;  %v7977_v51 = vld [vmem:[#allocation6 + $0x798] sm:$0xf] }
 0x18e   :  { %5032 = vmatpush.bf16.msrb.mxu2 %v7794_v13  ;;  %v7883_v13 = vld [vmem:[#allocation6 + $0x70c] sm:$0xf0] }
 0x18f   :  { %v7886_v63 = vor.u32 %v8979_v9, %v7883_v13  ;;  %v7358_v13 = vor.u32 %v8847_v46, %v7355_v7  ;;  %v9050_v46 = vld [vmem:[#allocation6 + $0x918] sm:$0xf0] }
 0x190   :  { %5007 = vmatpush.bf16.msrb.mxu0 %v7046_v58  ;;  %5020 = vmatpush.bf16.msrb.mxu1 %v7398_v61  ;;  %v2532_v58 = vadd.f32 %v9394_v12, %v2519_v52  ;;  %v7135_v61 = vld [vmem:[#allocation6 + $0x134] sm:$0xf0]  ;;  %v7091_v12 = vld [vmem:[#allocation6 + $0xdc] sm:$0xf0]  ;;  %v7669_v52 = vld [vmem:[#allocation6 + $0x530] sm:$0xf] }
 0x191   :  { %v7138_v32 = vor.u32 %v8792_v5, %v7135_v61  ;;  %v7094_v18 = vor.u32 %v8781_v27, %v7091_v12  ;;  %v7273_v5 = vld [vmem:[#allocation6 + $0x218] sm:$0xf]  ;;  %v8831_v61 = vld [vmem:[#allocation6 + $0x240] sm:$0xf0]  ;;  %v7229_v27 = vld [vmem:[#allocation6 + $0x1c0] sm:$0xf] }
 0x192   :  { %5033 = vmatpush.bf16.msrb.mxu2 %v7750_v11  ;;  %v2545_v2 = vadd.f32 %v9400_v26, %v2532_v58  ;;  %v7446_v26 = vor.u32 %v8869_v4, %v7443_v6  ;;  %v8820_v12 = vld [vmem:[#allocation6 + $0x1e8] sm:$0xf0]  ;;  %v7581_v4 = vld [vmem:[#allocation6 + $0x480] sm:$0xf] }
 0x194   :  { %5008 = vmatpush.bf16.msrb.mxu0 %v7002_v14  ;;  %5021 = vmatpush.bf16.msrb.mxu1 %v7354_v19  ;;  %v9423_v8 = vpop.f32.mrf.mxu0  ;;  %v9426_v60 = vpop.f32.mrf.mxu1  ;;  %v7842_v14 = vor.u32 %v8968_v0, %v7839_v1  ;;  %v2558_v23 = vadd.f32 %v9402_v36, %v2545_v2  ;;  %v8277_v0 = vld [vmem:[#allocation6 + $0x9f8] sm:$0xf]  ;;  %v9083_v1 = vld [vmem:[#allocation6 + $0xa20] sm:$0xf0] }
 0x195   :  { %v8278_v2 = vor.u32 %v9083_v1, %v8277_v0  ;;  %v8864_v0 = vld [vmem:[#allocation6 + $0x348] sm:$0xf0] }
 0x196   :  { %5034 = vmatpush.bf16.msrb.mxu2 %v7706_v21  ;;  %v9105_v21 = vld [vmem:[#allocation6 + $0xad0] sm:$0xf0]  ;;  %v2571_v36 = vadd.f32 %v9404_v48, %v2558_v23 }
 0x197   :  { %5009 = vmatmul.bf16.vlgmr.msrb.gmra.mxu0 %v9413_v31  ;;  %5022 = vmatmul.bf16.vlgmr.msrb.gmra.mxu1 %v9415_v41  ;;  %v8366_v39 = vor.u32 %v9105_v21, %v8365_v29 }
 0x198   :  { %5053 = vmatpush.bf16.msra.mxu0 %v7314_v38  ;;  %5066 = vmatpush.bf16.msra.mxu1 %v7666_v33  ;;  %v8957_v38 = vld [vmem:[#allocation6 + $0x634] sm:$0xf]  ;;  %v7047_v33 = vld [vmem:[#allocation6 + $0x84] sm:$0xf0]  ;;  %v2584_v9 = vadd.f32 %v9406_v50, %v2571_v36  ;;  %v7274_v50 = vor.u32 %v8831_v61, %v7273_v5  ;;  %v8886_v36 = vld [vmem:[#allocation6 + $0x3f8] sm:$0xf0] }
 0x199   :  { %v7050_v28 = vor.u32 %v8770_v24, %v7047_v33  ;;  %5040 = vmatpush.bf16.msrb.mxu3 %v8366_v39  ;;  %v8809_v24 = vld [vmem:[#allocation6 + $0x190] sm:$0xf0]  ;;  %v7537_v33 = vld [vmem:[#allocation6 + $0x428] sm:$0xf]  ;;  %v8996_v5 = vld [vmem:[#allocation6 + $0x768] sm:$0xf0] }
 0x19a   :  { %5079 = vmatpush.bf16.msra.mxu2 %v8018_v30  ;;  %v8759_v30 = vld [vmem:[#allocation6 + $0x4] sm:$0xf]  ;;  %v2597_v10 = vadd.f32 %v9423_v8, %v2584_v9  ;;  %v8908_v8 = vld [vmem:[#allocation6 + $0x4a8] sm:$0xf0] }
 0x19b   :  { %v7006_v25 = vor.u32 %v8759_v30, %v7003_v42  ;;  %v7582_v23 = vor.u32 %v8908_v8, %v7581_v4  ;;  %v8021_v30 = vld [vmem:[#allocation6 + $0x7f0] sm:$0xf]  ;;  %v8798_v42 = vld [vmem:[#allocation6 + $0x138] sm:$0xf0]  ;;  %v8367_v8 = vld [vmem:[#allocation6 + $0xad4] sm:$0xf0] }
 0x19c   :  { %5054 = vmatpush.bf16.msra.mxu0 %v7270_v35  ;;  %5067 = vmatpush.bf16.msra.mxu1 %v7622_v43  ;;  %v9431_v16 = vpop.f32.mrf.mxu3  ;;  %v2598_v19 = vpop.f32.mrf.mxu0  ;;  %v7798_v35 = vor.u32 %v8957_v38, %v7795_v20  ;;  %v8946_v43 = vld [vmem:[#allocation6 + $0x5dc] sm:$0xf]  ;;  %v2610_v6 = vadd.f32 %v9426_v60, %v2597_v10  ;;  %v7230_v20 = vor.u32 %v8820_v12, %v7229_v27  ;;  %v8897_v60 = vld [vmem:[#allocation6 + $0x450] sm:$0xf0]  ;;  %v7009_v12 = vld [vmem:[#allocation6 + $0x8] sm:$0xf] }
 0x19d   :  { %v9429_v11 = vpop.f32.mrf.mxu2  ;;  %v2611_v17 = vpop.f32.mrf.mxu1  ;;  %v7754_v34 = vor.u32 %v8946_v43, %v7751_v44  ;;  %5041 = vmatpush.bf16.msrb.mxu3 %v8322_v37  ;;  %v7538_v39 = vor.u32 %v8897_v60, %v7537_v33  ;;  %v7493_v43 = vld [vmem:[#allocation6 + $0x3d0] sm:$0xf]  ;;  %v7449_v37 = vld [vmem:[#allocation6 + $0x378] sm:$0xf]  ;;  %v8837_v33 = vld [vmem:[#allocation6 + $0x274] sm:$0xf] }
 0x19e   :  { %5080 = vmatpush.bf16.msra.mxu2 %v7974_v47  ;;  %v7317_v47 = vld [vmem:[#allocation6 + $0x270] sm:$0xf]  ;;  %v2623_v38 = vadd.f32 %v9429_v11, %v2610_v6  ;;  %v9061_v17 = vld [vmem:[#allocation6 + $0x970] sm:$0xf0]  ;;  %v7319_v60 = vld [vmem:[#allocation6 + $0x29c] sm:$0xf0] }
 0x19f   :  { %v8190_v22 = vor.u32 %v9061_v17, %v8189_v53  ;;  %v9089_v53 = vld [vmem:[#allocation6 + $0xa54] sm:$0xf]  ;;  %v8323_v17 = vld [vmem:[#allocation6 + $0xa7c] sm:$0xf0] }
 0x1a0   :  { %5055 = vmatpush.bf16.msra.mxu0 %v7226_v40  ;;  %5068 = vmatpush.bf16.msra.mxu1 %v7578_v15  ;;  %v8842_v40 = vld [vmem:[#allocation6 + $0x298] sm:$0xf0]  ;;  %v2636_v29 = vadd.f32 %v9431_v16, %v2623_v38  ;;  %v8985_v38 = vld [vmem:[#allocation6 + $0x710] sm:$0xf0] }
 0x1a1   :  { %v8930_v15 = vld [vmem:[#allocation6 + $0x558] sm:$0xf0]  ;;  %v7318_v58 = vor.u32 %v8842_v40, %v7317_v47  ;;  %5042 = vmatpush.bf16.msrb.mxu3 %v8278_v2  ;;  %v8057_v2 = vld [vmem:[#allocation6 + $0x840] sm:$0xf] }
 0x1a2   :  { %5081 = vmatpush.bf16.msra.mxu2 %v7930_v56  ;;  %v8935_v56 = vld [vmem:[#allocation6 + $0x584] sm:$0xf] }
 0x1a4   :  { %5056 = vmatpush.bf16.msra.mxu0 %v7182_v57  ;;  %5069 = vmatpush.bf16.msra.mxu1 %v7534_v59  ;;  %v7707_v57 = vld [vmem:[#allocation6 + $0x5ac] sm:$0xf0]  ;;  %v2637_v48 = vpop.f32.mrf.mxu3  ;;  %v7670_v59 = vor.u32 %v8930_v15, %v7669_v52  ;;  %v9007_v52 = vld [vmem:[#allocation6 + $0x7c0] sm:$0xf0]  ;;  %v7494_v15 = vor.u32 %v8886_v36, %v7493_v43 }
 0x1a5   :  { %v2624_v54 = vpop.f32.mrf.mxu2  ;;  %v7978_v48 = vor.u32 %v9007_v52, %v7977_v51  ;;  %v9078_v51 = vld [vmem:[#allocation6 + $0x9fc] sm:$0xf]  ;;  %v8279_v52 = vld [vmem:[#allocation6 + $0xa24] sm:$0xf0] }
 0x1a6   :  { %5082 = vmatpush.bf16.msra.mxu2 %v7886_v63  ;;  %v8919_v63 = vld [vmem:[#allocation6 + $0x500] sm:$0xf0] }
 0x1a7   :  { %v8787_v54 = vld [vmem:[#allocation6 + $0xe0] sm:$0xf0] }
 0x1a8   :  { %5057 = vmatpush.bf16.msra.mxu0 %v7138_v32  ;;  %5070 = vmatpush.bf16.msra.mxu1 %v7490_v3  ;;  %v7710_v32 = vor.u32 %v8935_v56, %v7707_v57  ;;  %v7626_v3 = vor.u32 %v8919_v63, %v7625_v62  ;;  %v8101_v56 = vld [vmem:[#allocation6 + $0x898] sm:$0xf]  ;;  %v9039_v57 = vld [vmem:[#allocation6 + $0x8c0] sm:$0xf0]  ;;  %v8776_v63 = vld [vmem:[#allocation6 + $0x88] sm:$0xf0] }
 0x1a9   :  { %v8102_v9 = vor.u32 %v9039_v57, %v8101_v56  ;;  %v8815_v56 = vld [vmem:[#allocation6 + $0x1c4] sm:$0xf]  ;;  %v7231_v57 = vld [vmem:[#allocation6 + $0x1ec] sm:$0xf0] }
 0x1aa   :  { %5083 = vmatpush.bf16.msra.mxu2 %v7842_v14  ;;  %v8233_v14 = vld [vmem:[#allocation6 + $0x9a0] sm:$0xf] }
 0x1ac   :  { %5058 = vmatpush.bf16.msra.mxu0 %v7094_v18  ;;  %5071 = vmatpush.bf16.msra.mxu1 %v7446_v26  ;;  %v9072_v18 = vld [vmem:[#allocation6 + $0x9c8] sm:$0xf0]  ;;  %v7185_v26 = vld [vmem:[#allocation6 + $0x168] sm:$0xf] }
 0x1ad   :  { %v8234_v19 = vor.u32 %v9072_v18, %v8233_v14  ;;  %v7186_v21 = vor.u32 %v8809_v24, %v7185_v26  ;;  %v8765_v18 = vld [vmem:[#allocation6 + $0x30] sm:$0xf0]  ;;  %v7361_v26 = vld [vmem:[#allocation6 + $0x2c8] sm:$0xf] }
 0x1ae   :  { %5084 = vmatpush.bf16.msra.mxu2 %v7798_v35  ;;  %v9018_v35 = vld [vmem:[#allocation6 + $0x818] sm:$0xf0]  ;;  %v8853_v24 = vld [vmem:[#allocation6 + $0x2f0] sm:$0xf0] }
 0x1af   :  { %5043 = vmatpush.bf16.msrb.mxu3 %v8234_v19  ;;  %v8022_v7 = vor.u32 %v9018_v35, %v8021_v30  ;;  %v7889_v19 = vld [vmem:[#allocation6 + $0x6e8] sm:$0xf]  ;;  %v8326_v30 = vor.u32 %v9089_v53, %v8323_v17  ;;  %v7010_v35 = vor.u32 %v8765_v18, %v7009_v12  ;;  %v7362_v43 = vor.u32 %v8853_v24, %v7361_v26  ;;  %v9056_v12 = vld [vmem:[#allocation6 + $0x94c] sm:$0xf]  ;;  %v7143_v26 = vld [vmem:[#allocation6 + $0x13c] sm:$0xf0] }
 0x1b0   :  { %5059 = vmatpush.bf16.msra.mxu0 %v7050_v28  ;;  %5072 = vmatpush.bf16.msra.mxu1 %v7402_v45  ;;  %v7141_v28 = vld [vmem:[#allocation6 + $0x110] sm:$0xf]  ;;  %v8881_v24 = vld [vmem:[#allocation6 + $0x3d4] sm:$0xf]  ;;  %v8147_v17 = vld [vmem:[#allocation6 + $0x91c] sm:$0xf0] }
 0x1b1   :  { %v8145_v45 = vld [vmem:[#allocation6 + $0x8f0] sm:$0xf]  ;;  %v7142_v49 = vor.u32 %v8798_v42, %v7141_v28  ;;  %v9045_v53 = vld [vmem:[#allocation6 + $0x8f4] sm:$0xf] }
 0x1b2   :  { %5085 = vmatpush.bf16.msra.mxu2 %v7754_v34  ;;  %v8146_v40 = vor.u32 %v9050_v46, %v8145_v45  ;;  %v7097_v34 = vld [vmem:[#allocation6 + $0xb8] sm:$0xf]  ;;  %v8826_v45 = vld [vmem:[#allocation6 + $0x21c] sm:$0xf]  ;;  %v7275_v46 = vld [vmem:[#allocation6 + $0x244] sm:$0xf0] }
 0x1b3   :  { %5044 = vmatpush.bf16.msrb.mxu3 %v8190_v22  ;;  %v7890_v22 = vor.u32 %v8985_v38, %v7889_v19  ;;  %v9013_v19 = vld [vmem:[#allocation6 + $0x7f4] sm:$0xf]  ;;  %v8023_v38 = vld [vmem:[#allocation6 + $0x81c] sm:$0xf0] }
 0x1b4   :  { %5060 = vmatpush.bf16.msra.mxu0 %v7006_v25  ;;  %5073 = vmatpush.bf16.msra.mxu1 %v7358_v13  ;;  %v2648_v11 = vpop.f32.mrf.mxu0  ;;  %v9442_v47 = vpop.f32.mrf.mxu1  ;;  %v8875_v25 = vld [vmem:[#allocation6 + $0x3a0] sm:$0xf0]  ;;  %v7098_v13 = vor.u32 %v8787_v54, %v7097_v34  ;;  %v8282_v54 = vor.u32 %v9078_v51, %v8279_v52 }
 0x1b5   :  { %v2649_v44 = vadd.f32 %v2648_v11, %v2636_v29  ;;  %v7450_v10 = vor.u32 %v8875_v25, %v7449_v37  ;;  %v8925_v29 = vld [vmem:[#allocation6 + $0x534] sm:$0xf]  ;;  %v7845_v11 = vld [vmem:[#allocation6 + $0x690] sm:$0xf]  ;;  %v8963_v34 = vld [vmem:[#allocation6 + $0x660] sm:$0xf0]  ;;  %v7278_v37 = vor.u32 %v8826_v45, %v7275_v46 }
 0x1b6   :  { %5086 = vmatpush.bf16.msra.mxu2 %v7710_v32  ;;  %v7405_v32 = vld [vmem:[#allocation6 + $0x320] sm:$0xf]  ;;  %v7451_v45 = vld [vmem:[#allocation6 + $0x3a4] sm:$0xf0]  ;;  %v9034_v46 = vld [vmem:[#allocation6 + $0x89c] sm:$0xf] }
 0x1b7   :  { %5061 = vmatmul.bf16.vlgmr.msra.gmra.mxu0 %v9413_v31  ;;  %5074 = vmatmul.bf16.vlgmr.msra.gmra.mxu1 %v9415_v41  ;;  %v9444_v16 = vpack.c.bf16 %v2649_v44, %v2649_v44  ;;  %v7322_v44 = vor.u32 %v8837_v33, %v7319_v60  ;;  %v7495_v60 = vld [vmem:[#allocation6 + $0x3fc] sm:$0xf0] }
 0x1b8   :  { %5105 = vmatpush.bf16.msrb.mxu0 %v7318_v58  ;;  %5118 = vmatpush.bf16.msrb.mxu1 %v7670_v59  ;;  %v7053_v58 = vld [vmem:[#allocation6 + $0x60] sm:$0xf] }
 0x1b9   :  { %5045 = vmatpush.bf16.msrb.mxu3 %v8146_v40  ;;  %5035 = vmatmul.bf16.vlgmr.msrb.gmra.mxu2 %v9444_v16  ;;  %v7933_v59 = vld [vmem:[#allocation6 + $0x740] sm:$0xf]  ;;  %v7054_v14 = vor.u32 %v8776_v63, %v7053_v58  ;;  %v9067_v58 = vld [vmem:[#allocation6 + $0x9a4] sm:$0xf] }
 0x1ba   :  { %5131 = vmatpush.bf16.msrb.mxu2 %v8022_v7  ;;  %v7934_v27 = vor.u32 %v8996_v5, %v7933_v59  ;;  %v8914_v7 = vld [vmem:[#allocation6 + $0x4dc] sm:$0xf]  ;;  %v8235_v59 = vld [vmem:[#allocation6 + $0x9cc] sm:$0xf0]  ;;  %v7757_v5 = vld [vmem:[#allocation6 + $0x5e0] sm:$0xf] }
 0x1bb   :  { %v8238_v63 = vor.u32 %v9067_v58, %v8235_v59 }
 0x1bc   :  { %5106 = vmatpush.bf16.msrb.mxu0 %v7274_v50  ;;  %5119 = vmatpush.bf16.msrb.mxu1 %v7626_v3  ;;  %v9449_v62 = vpop.f32.mrf.mxu3  ;;  %v2650_v1 = vpop.f32.mrf.mxu0  ;;  %v9028_v50 = vld [vmem:[#allocation6 + $0x868] sm:$0xf0] }
 0x1bd   :  { %v9447_v61 = vpop.f32.mrf.mxu2  ;;  %5046 = vmatpush.bf16.msrb.mxu3 %v8102_v9  ;;  %v9100_v3 = vld [vmem:[#allocation6 + $0xaac] sm:$0xf]  ;;  %v2663_v4 = vpop.f32.mrf.mxu1  ;;  %v8058_v6 = vor.u32 %v9028_v50, %v8057_v2  ;;  %v7187_v2 = vld [vmem:[#allocation6 + $0x194] sm:$0xf0] }
 0x1be   :  { %5132 = vmatpush.bf16.msrb.mxu2 %v7978_v48  ;;  %v8903_v48 = vld [vmem:[#allocation6 + $0x484] sm:$0xf]  ;;  %v8804_v1 = vld [vmem:[#allocation6 + $0x16c] sm:$0xf]  ;;  %v8191_v4 = vld [vmem:[#allocation6 + $0x974] sm:$0xf0] }
 0x1bf   :  { %v8892_v50 = vld [vmem:[#allocation6 + $0x42c] sm:$0xf]  ;;  %v7190_v18 = vor.u32 %v8804_v1, %v7187_v2 }
 0x1c0   :  { %5107 = vmatpush.bf16.msrb.mxu0 %v7230_v20  ;;  %5120 = vmatpush.bf16.msrb.mxu1 %v7582_v23  ;;  %v8370_v20 = vor.u32 %v9100_v3, %v8367_v8  ;;  %v7406_v23 = vor.u32 %v8864_v0, %v7405_v32  ;;  %v7234_v32 = vor.u32 %v8815_v56, %v7231_v57  ;;  %v8941_v8 = vld [vmem:[#allocation6 + $0x5b0] sm:$0xf0]  ;;  %v7055_v56 = vld [vmem:[#allocation6 + $0x8c] sm:$0xf0]  ;;  %v8859_v57 = vld [vmem:[#allocation6 + $0x324] sm:$0xf] }
 0x1c1   :  { %5047 = vmatpush.bf16.msrb.mxu3 %v8058_v6  ;;  %v7713_v6 = vld [vmem:[#allocation6 + $0x588] sm:$0xf]  ;;  %v8760_v2 = vld [vmem:[#allocation6 + $0xc] sm:$0xf] }
 0x1c2   :  { %5133 = vmatpush.bf16.msrb.mxu2 %v7934_v27  ;;  %v7539_v27 = vld [vmem:[#allocation6 + $0x454] sm:$0xf0]  ;;  %v7714_v33 = vor.u32 %v8941_v8, %v7713_v6 }
 0x1c3   :  { %v7677_v8 = vld [vmem:[#allocation6 + $0x538] sm:$0xf] }
 0x1c4   :  { %5108 = vmatpush.bf16.msrb.mxu0 %v7186_v21  ;;  %5121 = vmatpush.bf16.msrb.mxu1 %v7538_v39  ;;  %v7671_v21 = vld [vmem:[#allocation6 + $0x55c] sm:$0xf0]  ;;  %v8974_v39 = vld [vmem:[#allocation6 + $0x6b8] sm:$0xf0]  ;;  %v2689_v42 = vpop.f32.mrf.mxu3 }
 0x1c5   :  { %5092 = vmatpush.bf16.msra.mxu3 %v8370_v20  ;;  %v2676_v28 = vpop.f32.mrf.mxu2  ;;  %v7674_v36 = vor.u32 %v8925_v29, %v7671_v21  ;;  %v7846_v40 = vor.u32 %v8974_v39, %v7845_v11  ;;  %v7542_v20 = vor.u32 %v8892_v50, %v7539_v27  ;;  %v8026_v29 = vor.u32 %v9013_v19, %v8023_v38  ;;  %v9002_v39 = vld [vmem:[#allocation6 + $0x79c] sm:$0xf]  ;;  %v7011_v50 = vld [vmem:[#allocation6 + $0x34] sm:$0xf0]  ;;  %v8969_v38 = vld [vmem:[#allocation6 + $0x694] sm:$0xf] }
 0x1c6   :  { %5134 = vmatpush.bf16.msrb.mxu2 %v7890_v22  ;;  %v458_v22 = vperm.slane %v9417_v55, 3  ;;  %v7979_v28 = vld [vmem:[#allocation6 + $0x7c4] sm:$0xf0]  ;;  %v7498_v42 = vor.u32 %v8881_v24, %v7495_v60  ;;  %v7363_v27 = vld [vmem:[#allocation6 + $0x2f4] sm:$0xf0] }
 0x1c7   :  { %v8103_v55 = vld [vmem:[#allocation6 + $0x8c4] sm:$0xf0]  ;;  %v7281_v60 = vld [vmem:[#allocation6 + $0x220] sm:$0xf] }
 0x1c8   :  { %5109 = vmatpush.bf16.msrb.mxu0 %v7142_v49  ;;  %5122 = vmatpush.bf16.msrb.mxu1 %v7494_v15  ;;  %v7627_v49 = vld [vmem:[#allocation6 + $0x504] sm:$0xf0]  ;;  %v7801_v15 = vld [vmem:[#allocation6 + $0x638] sm:$0xf] }
 0x1c9   :  { %5093 = vmatpush.bf16.msra.mxu3 %v8326_v30  ;;  %5087 = vmatmul.bf16.vlgmr.msra.gmra.mxu2 %v9444_v16  ;;  %v7630_v25 = vor.u32 %v8914_v7, %v7627_v49  ;;  %v7802_v9 = vor.u32 %v8963_v34, %v7801_v15  ;;  %v8150_v30 = vor.u32 %v9045_v53, %v8147_v17  ;;  %v8991_v15 = vld [vmem:[#allocation6 + $0x744] sm:$0xf]  ;;  %v7935_v34 = vld [vmem:[#allocation6 + $0x76c] sm:$0xf0]  ;;  %v8832_v53 = vld [vmem:[#allocation6 + $0x248] sm:$0xf0] }
 0x1ca   :  { %5135 = vmatpush.bf16.msrb.mxu2 %v7846_v40  ;;  %v2662_v7 = vadd.f32 %v9442_v47, %v458_v22  ;;  %v7982_v40 = vor.u32 %v9002_v39, %v7979_v28  ;;  %v8106_v49 = vor.u32 %v9034_v46, %v8103_v55  ;;  %v7407_v47 = vld [vmem:[#allocation6 + $0x34c] sm:$0xf0]  ;;  %v7938_v58 = vor.u32 %v8991_v15, %v7935_v34  ;;  %v7633_v22 = vld [vmem:[#allocation6 + $0x4e0] sm:$0xf]  ;;  %v8947_v46 = vld [vmem:[#allocation6 + $0x5e4] sm:$0xf] }
 0x1cb   :  { %v7410_v1 = vor.u32 %v8859_v57, %v7407_v47  ;;  %v7282_v39 = vor.u32 %v8832_v53, %v7281_v60  ;;  %v7759_v55 = vld [vmem:[#allocation6 + $0x60c] sm:$0xf0]  ;;  %v8029_v47 = vld [vmem:[#allocation6 + $0x7f8] sm:$0xf] }
 0x1cc   :  { %5110 = vmatpush.bf16.msrb.mxu0 %v7098_v13  ;;  %5123 = vmatpush.bf16.msrb.mxu1 %v7450_v10  ;;  %v7583_v13 = vld [vmem:[#allocation6 + $0x4ac] sm:$0xf0]  ;;  %v8952_v10 = vld [vmem:[#allocation6 + $0x608] sm:$0xf0] }
 0x1cd   :  { %5094 = vmatpush.bf16.msra.mxu3 %v8282_v54  ;;  %v7586_v0 = vor.u32 %v8903_v48, %v7583_v13  ;;  %v7758_v3 = vor.u32 %v8952_v10, %v7757_v5  ;;  %v9023_v48 = vld [vmem:[#allocation6 + $0x844] sm:$0xf]  ;;  %v2675_v13 = vadd.f32 %v9447_v61, %v2662_v7  ;;  %v7545_v34 = vld [vmem:[#allocation6 + $0x430] sm:$0xf] }
 0x1ce   :  { %5136 = vmatpush.bf16.msrb.mxu2 %v7802_v9  ;;  %v8059_v9 = vld [vmem:[#allocation6 + $0x86c] sm:$0xf0] }
 0x1cf   :  { %v8062_v5 = vor.u32 %v9023_v48, %v8059_v9  ;;  %v2688_v61 = vadd.f32 %v9449_v62, %v2675_v13  ;;  %v9019_v48 = vld [vmem:[#allocation6 + $0x820] sm:$0xf0]  ;;  %v7149_v13 = vld [vmem:[#allocation6 + $0x118] sm:$0xf] }
 0x1d0   :  { %5111 = vmatpush.bf16.msrb.mxu0 %v7054_v14  ;;  %5124 = vmatpush.bf16.msrb.mxu1 %v7406_v23  ;;  %v8194_v14 = vor.u32 %v9056_v12, %v8191_v4  ;;  %v8793_v23 = vld [vmem:[#allocation6 + $0x114] sm:$0xf]  ;;  %v7325_v12 = vld [vmem:[#allocation6 + $0x278] sm:$0xf]  ;;  %v8843_v4 = vld [vmem:[#allocation6 + $0x2a0] sm:$0xf0] }
 0x1d1   :  { %5095 = vmatpush.bf16.msra.mxu3 %v8238_v63 }
 0x1d2   :  { %5137 = vmatpush.bf16.msrb.mxu2 %v7758_v3  ;;  %v8848_v3 = vld [vmem:[#allocation6 + $0x2cc] sm:$0xf] }
 0x1d4   :  { %5112 = vmatpush.bf16.msrb.mxu0 %v7010_v35  ;;  %5125 = vmatpush.bf16.msrb.mxu1 %v7362_v43  ;;  %v9455_v21 = vpop.f32.mrf.mxu0  ;;  %v7146_v35 = vor.u32 %v8793_v23, %v7143_v26  ;;  %v9457_v11 = vpop.f32.mrf.mxu1  ;;  %v8782_v43 = vld [vmem:[#allocation6 + $0xbc] sm:$0xf]  ;;  %v7366_v23 = vor.u32 %v8848_v3, %v7363_v27  ;;  %v7326_v26 = vor.u32 %v8843_v4, %v7325_v12  ;;  %v9008_v3 = vld [vmem:[#allocation6 + $0x7c8] sm:$0xf0]  ;;  %v7105_v12 = vld [vmem:[#allocation6 + $0xc0] sm:$0xf] }
 0x1d5   :  { %5096 = vmatpush.bf16.msra.mxu3 %v8194_v14  ;;  %v8931_v14 = vld [vmem:[#allocation6 + $0x560] sm:$0xf0]  ;;  %v2701_v17 = vadd.f32 %v9455_v21, %v2688_v61  ;;  %v8788_v4 = vld [vmem:[#allocation6 + $0xe8] sm:$0xf0]  ;;  %v7457_v61 = vld [vmem:[#allocation6 + $0x380] sm:$0xf] }
 0x1d6   :  { %5138 = vmatpush.bf16.msrb.mxu2 %v7714_v33  ;;  %v7678_v33 = vor.u32 %v8931_v14, %v7677_v8  ;;  %v7106_v14 = vor.u32 %v8788_v4, %v7105_v12  ;;  %v8241_v12 = vld [vmem:[#allocation6 + $0x9a8] sm:$0xf]  ;;  %v9073_v4 = vld [vmem:[#allocation6 + $0x9d0] sm:$0xf0] }
 0x1d7   :  { %5113 = vmatmul.bf16.vlgmr.msrb.gmra.mxu0 %v9413_v31  ;;  %5126 = vmatmul.bf16.vlgmr.msrb.gmra.mxu1 %v9415_v41 }
 0x1d8   :  { %5157 = vmatpush.bf16.msra.mxu0 %v7322_v44  ;;  %5170 = vmatpush.bf16.msra.mxu1 %v7674_v36  ;;  %v7099_v44 = vld [vmem:[#allocation6 + $0xe4] sm:$0xf0]  ;;  %v8870_v36 = vld [vmem:[#allocation6 + $0x37c] sm:$0xf] }
 0x1d9   :  { %5097 = vmatpush.bf16.msra.mxu3 %v8150_v30  ;;  %v7102_v51 = vor.u32 %v8782_v43, %v7099_v44  ;;  %5139 = vmatmul.bf16.vlgmr.msrb.gmra.mxu2 %v9444_v16  ;;  %v7454_v54 = vor.u32 %v8870_v36, %v7451_v45  ;;  %v8958_v30 = vld [vmem:[#allocation6 + $0x63c] sm:$0xf]  ;;  %v8821_v43 = vld [vmem:[#allocation6 + $0x1f0] sm:$0xf0]  ;;  %v2714_v44 = vadd.f32 %v9457_v11, %v2701_v17  ;;  %v7589_v36 = vld [vmem:[#allocation6 + $0x488] sm:$0xf] }
 0x1da   :  { %5183 = vmatpush.bf16.msra.mxu2 %v8026_v29  ;;  %v8920_v29 = vld [vmem:[#allocation6 + $0x508] sm:$0xf0]  ;;  %v8909_v45 = vld [vmem:[#allocation6 + $0x4b0] sm:$0xf0]  ;;  %v7762_v11 = vor.u32 %v8947_v46, %v7759_v55  ;;  %v9106_v17 = vld [vmem:[#allocation6 + $0xad8] sm:$0xf0] }
 0x1db   :  { %v7634_v28 = vor.u32 %v8920_v29, %v7633_v22  ;;  %v8865_v22 = vld [vmem:[#allocation6 + $0x350] sm:$0xf0]  ;;  %v8766_v46 = vld [vmem:[#allocation6 + $0x38] sm:$0xf0] }
 0x1dc   :  { %5158 = vmatpush.bf16.msra.mxu0 %v7278_v37  ;;  %5171 = vmatpush.bf16.msra.mxu1 %v7630_v25  ;;  %v9463_v37 = vpop.f32.mrf.mxu3  ;;  %v8771_v25 = vld [vmem:[#allocation6 + $0x64] sm:$0xf]  ;;  %v2702_v59 = vpop.f32.mrf.mxu0 }
 0x1dd   :  { %v9460_v52 = vpop.f32.mrf.mxu2  ;;  %5098 = vmatpush.bf16.msra.mxu3 %v8106_v49  ;;  %v7058_v10 = vor.u32 %v8771_v25, %v7055_v56  ;;  %v2715_v63 = vpop.f32.mrf.mxu1  ;;  %v7193_v49 = vld [vmem:[#allocation6 + $0x170] sm:$0xf]  ;;  %v8936_v25 = vld [vmem:[#allocation6 + $0x58c] sm:$0xf]  ;;  %v7715_v56 = vld [vmem:[#allocation6 + $0x5b4] sm:$0xf0] }
 0x1de   :  { %5184 = vmatpush.bf16.msra.mxu2 %v7982_v40  ;;  %v7590_v40 = vor.u32 %v8909_v45, %v7589_v36  ;;  %v2727_v15 = vadd.f32 %v9460_v52, %v2714_v44  ;;  %v7501_v52 = vld [vmem:[#allocation6 + $0x3d8] sm:$0xf]  ;;  %v8887_v63 = vld [vmem:[#allocation6 + $0x400] sm:$0xf0]  ;;  %v7017_v45 = vld [vmem:[#allocation6 + $0x10] sm:$0xf] }
 0x1df   :  { %v7502_v27 = vor.u32 %v8887_v63, %v7501_v52  ;;  %v9095_v36 = vld [vmem:[#allocation6 + $0xa80] sm:$0xf0]  ;;  %v7283_v63 = vld [vmem:[#allocation6 + $0x24c] sm:$0xf0] }
 0x1e0   :  { %5159 = vmatpush.bf16.msra.mxu0 %v7234_v32  ;;  %5172 = vmatpush.bf16.msra.mxu1 %v7586_v0  ;;  %v8980_v32 = vld [vmem:[#allocation6 + $0x6ec] sm:$0xf]  ;;  %v7891_v0 = vld [vmem:[#allocation6 + $0x714] sm:$0xf0]  ;;  %v2740_v59 = vadd.f32 %v9463_v37, %v2727_v15  ;;  %v7327_v15 = vld [vmem:[#allocation6 + $0x2a4] sm:$0xf0] }
 0x1e1   :  { %v7894_v6 = vor.u32 %v8980_v32, %v7891_v0  ;;  %5099 = vmatpush.bf16.msra.mxu3 %v8062_v5  ;;  %v8030_v0 = vor.u32 %v9019_v48, %v8029_v47 }
 0x1e2   :  { %5185 = vmatpush.bf16.msra.mxu2 %v7938_v58  ;;  %v8799_v58 = vld [vmem:[#allocation6 + $0x140] sm:$0xf0] }
 0x1e4   :  { %5160 = vmatpush.bf16.msra.mxu0 %v7190_v18  ;;  %5173 = vmatpush.bf16.msra.mxu1 %v7542_v20  ;;  %v7014_v18 = vor.u32 %v8760_v2, %v7011_v50  ;;  %v7847_v20 = vld [vmem:[#allocation6 + $0x6bc] sm:$0xf0]  ;;  %v2741_v24 = vpop.f32.mrf.mxu3  ;;  %v7150_v2 = vor.u32 %v8799_v58, %v7149_v13 }
 0x1e5   :  { %v2728_v19 = vpop.f32.mrf.mxu2  ;;  %v7850_v62 = vor.u32 %v8969_v38, %v7847_v20  ;;  %v7985_v50 = vld [vmem:[#allocation6 + $0x7a0] sm:$0xf]  ;;  %v8777_v24 = vld [vmem:[#allocation6 + $0x90] sm:$0xf0] }
 0x1e6   :  { %5186 = vmatpush.bf16.msra.mxu2 %v7894_v6  ;;  %v8876_v6 = vld [vmem:[#allocation6 + $0x3a8] sm:$0xf0]  ;;  %v7986_v37 = vor.u32 %v9008_v3, %v7985_v50  ;;  %v8997_v19 = vld [vmem:[#allocation6 + $0x770] sm:$0xf0] }
 0x1e7   :  { %v7458_v20 = vor.u32 %v8876_v6, %v7457_v61  ;;  %v8816_v61 = vld [vmem:[#allocation6 + $0x1cc] sm:$0xf] }
 0x1e8   :  { %5161 = vmatpush.bf16.msra.mxu0 %v7146_v35  ;;  %5174 = vmatpush.bf16.msra.mxu1 %v7498_v42  ;;  %v7803_v35 = vld [vmem:[#allocation6 + $0x664] sm:$0xf0] }
 0x1e9   :  { %v7237_v42 = vld [vmem:[#allocation6 + $0x1c8] sm:$0xf]  ;;  %v7806_v21 = vor.u32 %v8958_v30, %v7803_v35 }
 0x1ea   :  { %5187 = vmatpush.bf16.msra.mxu2 %v7850_v62  ;;  %v7238_v7 = vor.u32 %v8821_v43, %v7237_v42  ;;  %v7413_v62 = vld [vmem:[#allocation6 + $0x328] sm:$0xf]  ;;  %v7897_v42 = vld [vmem:[#allocation6 + $0x6f0] sm:$0xf]  ;;  %v8986_v43 = vld [vmem:[#allocation6 + $0x718] sm:$0xf0] }
 0x1ec   :  { %5162 = vmatpush.bf16.msra.mxu0 %v7102_v51  ;;  %5175 = vmatpush.bf16.msra.mxu1 %v7454_v54  ;;  %v8810_v51 = vld [vmem:[#allocation6 + $0x198] sm:$0xf0] }
 0x1ed   :  { %v8898_v54 = vld [vmem:[#allocation6 + $0x458] sm:$0xf0]  ;;  %v7194_v57 = vor.u32 %v8810_v51, %v7193_v49  ;;  %v7898_v51 = vor.u32 %v8986_v43, %v7897_v42  ;;  %v8031_v42 = vld [vmem:[#allocation6 + $0x824] sm:$0xf0] }
 0x1ee   :  { %5188 = vmatpush.bf16.msra.mxu2 %v7806_v21  ;;  %v7546_v9 = vor.u32 %v8898_v54, %v7545_v34  ;;  %v7414_v21 = vor.u32 %v8865_v22, %v7413_v62  ;;  %v8838_v49 = vld [vmem:[#allocation6 + $0x27c] sm:$0xf]  ;;  %v7679_v34 = vld [vmem:[#allocation6 + $0x564] sm:$0xf0]  ;;  %v7018_v54 = vor.u32 %v8766_v46, %v7017_v45  ;;  %v8893_v62 = vld [vmem:[#allocation6 + $0x434] sm:$0xf] }
 0x1ef   :  { %v7330_v13 = vor.u32 %v8838_v49, %v7327_v15  ;;  %v7547_v22 = vld [vmem:[#allocation6 + $0x45c] sm:$0xf0]  ;;  %v8794_v45 = vld [vmem:[#allocation6 + $0x11c] sm:$0xf]  ;;  %v7503_v49 = vld [vmem:[#allocation6 + $0x404] sm:$0xf0] }
 0x1f0   :  { %5163 = vmatpush.bf16.msra.mxu0 %v7058_v10  ;;  %5176 = vmatpush.bf16.msra.mxu1 %v7410_v1  ;;  %v7718_v10 = vor.u32 %v8936_v25, %v7715_v56  ;;  %v7853_v25 = vld [vmem:[#allocation6 + $0x698] sm:$0xf]  ;;  %v8975_v56 = vld [vmem:[#allocation6 + $0x6c0] sm:$0xf0] }
 0x1f1   :  { %v7854_v52 = vor.u32 %v8975_v56, %v7853_v25  ;;  %v9003_v25 = vld [vmem:[#allocation6 + $0x7a4] sm:$0xf]  ;;  %v7987_v56 = vld [vmem:[#allocation6 + $0x7cc] sm:$0xf0] }
 0x1f2   :  { %5189 = vmatpush.bf16.msra.mxu2 %v7762_v11  ;;  %v8926_v11 = vld [vmem:[#allocation6 + $0x53c] sm:$0xf] }
 0x1f3   :  { %v7682_v58 = vor.u32 %v8926_v11, %v7679_v34 }
 0x1f4   :  { %5164 = vmatpush.bf16.msra.mxu0 %v7014_v18  ;;  %5177 = vmatpush.bf16.msra.mxu1 %v7366_v23  ;;  %v2752_v5 = vpop.f32.mrf.mxu0  ;;  %v2765_v32 = vpop.f32.mrf.mxu1  ;;  %v7941_v18 = vld [vmem:[#allocation6 + $0x748] sm:$0xf]  ;;  %v8373_v23 = vld [vmem:[#allocation6 + $0xab0] sm:$0xf] }
 0x1f5   :  { %v2753_v1 = vadd.f32 %v2752_v5, %v2740_v59  ;;  %v7942_v30 = vor.u32 %v8997_v19, %v7941_v18  ;;  %v8374_v44 = vor.u32 %v9106_v17, %v8373_v23  ;;  %v8285_v59 = vld [vmem:[#allocation6 + $0xa00] sm:$0xf]  ;;  %v9084_v5 = vld [vmem:[#allocation6 + $0xa28] sm:$0xf0]  ;;  %v7765_v18 = vld [vmem:[#allocation6 + $0x5e8] sm:$0xf] }
 0x1f6   :  { %5190 = vmatpush.bf16.msra.mxu2 %v7718_v10  ;;  %v8827_v10 = vld [vmem:[#allocation6 + $0x224] sm:$0xf]  ;;  %v8286_v50 = vor.u32 %v9084_v5, %v8285_v59  ;;  %v8953_v19 = vld [vmem:[#allocation6 + $0x610] sm:$0xf0]  ;;  %v7195_v17 = vld [vmem:[#allocation6 + $0x19c] sm:$0xf0] }
 0x1f7   :  { %5165 = vmatmul.bf16.vlgmr.msra.gmra.mxu0 %v9413_v31  ;;  %5178 = vmatmul.bf16.vlgmr.msra.gmra.mxu1 %v9415_v41  ;;  %v2766_v8 = vadd.f32 %v2765_v32, %v2753_v1  ;;  %v8915_v32 = vld [vmem:[#allocation6 + $0x4e4] sm:$0xf]  ;;  %v7809_v1 = vld [vmem:[#allocation6 + $0x640] sm:$0xf]  ;;  %v7286_v3 = vor.u32 %v8827_v10, %v7283_v63  ;;  %v7107_v59 = vld [vmem:[#allocation6 + $0xec] sm:$0xf0] }
 0x1f8   :  { %5209 = vmatpush.bf16.msrb.mxu0 %v7326_v26  ;;  %5222 = vmatpush.bf16.msrb.mxu1 %v7678_v33  ;;  %v7061_v26 = vld [vmem:[#allocation6 + $0x68] sm:$0xf]  ;;  %v8871_v5 = vld [vmem:[#allocation6 + $0x384] sm:$0xf]  ;;  %v7459_v10 = vld [vmem:[#allocation6 + $0x3ac] sm:$0xf0] }
 0x1f9   :  { %5191 = vmatmul.bf16.vlgmr.msra.gmra.mxu2 %v9444_v16 }
 0x1fa   :  { %5235 = vmatpush.bf16.msrb.mxu2 %v8030_v0  ;;  %v7635_v0 = vld [vmem:[#allocation6 + $0x50c] sm:$0xf0] }
 0x1fc   :  { %5210 = vmatpush.bf16.msrb.mxu0 %v7282_v39  ;;  %5223 = vmatpush.bf16.msrb.mxu1 %v7634_v28  ;;  %v2778_v38 = vpop.f32.mrf.mxu2  ;;  %v2791_v60 = vpop.f32.mrf.mxu3  ;;  %v7062_v39 = vor.u32 %v8777_v24, %v7061_v26  ;;  %v8329_v28 = vld [vmem:[#allocation6 + $0xa58] sm:$0xf]  ;;  %v8197_v24 = vld [vmem:[#allocation6 + $0x950] sm:$0xf] }
 0x1fd   :  { %v2779_v33 = vadd.f32 %v2778_v38, %v2766_v8  ;;  %v2754_v53 = vpop.f32.mrf.mxu0  ;;  %v2767_v29 = vpop.f32.mrf.mxu1  ;;  %v8330_v47 = vor.u32 %v9095_v36, %v8329_v28  ;;  %v8904_v8 = vld [vmem:[#allocation6 + $0x48c] sm:$0xf]  ;;  %v8242_v38 = vor.u32 %v9073_v4, %v8241_v12  ;;  %v9014_v28 = vld [vmem:[#allocation6 + $0x7fc] sm:$0xf]  ;;  %v9051_v36 = vld [vmem:[#allocation6 + $0x920] sm:$0xf0] }
 0x1fe   :  { %5236 = vmatpush.bf16.msrb.mxu2 %v7986_v37  ;;  %v7239_v37 = vld [vmem:[#allocation6 + $0x1f4] sm:$0xf0]  ;;  %v7766_v53 = vor.u32 %v8953_v19, %v7765_v18  ;;  %v7721_v29 = vld [vmem:[#allocation6 + $0x590] sm:$0xf]  ;;  %v8034_v15 = vor.u32 %v9014_v28, %v8031_v42  ;;  %v8375_v12 = vld [vmem:[#allocation6 + $0xadc] sm:$0xf0] }
 0x1ff   :  { %v2792_v35 = vadd.f32 %v2791_v60, %v2779_v33  ;;  %v7242_v23 = vor.u32 %v8816_v61, %v7239_v37  ;;  %v9062_v33 = vld [vmem:[#allocation6 + $0x978] sm:$0xf0]  ;;  %v8805_v60 = vld [vmem:[#allocation6 + $0x174] sm:$0xf]  ;;  %v8772_v4 = vld [vmem:[#allocation6 + $0x6c] sm:$0xf] }
 0x200   :  { %5211 = vmatpush.bf16.msrb.mxu0 %v7238_v7  ;;  %5224 = vmatpush.bf16.msrb.mxu1 %v7590_v40  ;;  %v7369_v7 = vld [vmem:[#allocation6 + $0x2d0] sm:$0xf]  ;;  %v8854_v40 = vld [vmem:[#allocation6 + $0x2f8] sm:$0xf0]  ;;  %v7198_v43 = vor.u32 %v8805_v60, %v7195_v17  ;;  %v7063_v61 = vld [vmem:[#allocation6 + $0x94] sm:$0xf0] }
 0x201   :  { %v9474_v55 = vpack.c.bf16 %v2792_v35, %v2792_v35  ;;  %v7370_v48 = vor.u32 %v8854_v40, %v7369_v7  ;;  %v7151_v7 = vld [vmem:[#allocation6 + $0x144] sm:$0xf0]  ;;  %v8882_v40 = vld [vmem:[#allocation6 + $0x3dc] sm:$0xf]  ;;  %v8860_v37 = vld [vmem:[#allocation6 + $0x32c] sm:$0xf] }
 0x202   :  { %5237 = vmatpush.bf16.msrb.mxu2 %v7942_v30  ;;  %v8942_v30 = vld [vmem:[#allocation6 + $0x5b8] sm:$0xf0]  ;;  %v8331_v60 = vld [vmem:[#allocation6 + $0xa84] sm:$0xf0]  ;;  %v7685_v28 = vld [vmem:[#allocation6 + $0x540] sm:$0xf] }
 0x203   :  { %5048 = vmatmul.bf16.vlgmr.msrb.gmra.mxu3 %v9474_v55  ;;  %v7722_v46 = vor.u32 %v8942_v30, %v7721_v29  ;;  %v7371_v29 = vld [vmem:[#allocation6 + $0x2fc] sm:$0xf0]  ;;  %v8932_v42 = vld [vmem:[#allocation6 + $0x568] sm:$0xf0] }
 0x204   :  { %5212 = vmatpush.bf16.msrb.mxu0 %v7194_v57  ;;  %5225 = vmatpush.bf16.msrb.mxu1 %v7546_v9  ;;  %v2780_v57 = vpop.f32.mrf.mxu2  ;;  %v2793_v9 = vpop.f32.mrf.mxu3 }
 0x205   :  { %5144 = vmatpush.bf16.msrb.mxu3 %v8374_v44  ;;  %v7550_v44 = vor.u32 %v8893_v62, %v7547_v22  ;;  %v7154_v57 = vor.u32 %v8794_v45, %v7151_v7  ;;  %v9040_v9 = vld [vmem:[#allocation6 + $0x8c8] sm:$0xf0]  ;;  %v7019_v62 = vld [vmem:[#allocation6 + $0x3c] sm:$0xf0]  ;;  %v8849_v22 = vld [vmem:[#allocation6 + $0x2d4] sm:$0xf] }
 0x206   :  { %5238 = vmatpush.bf16.msrb.mxu2 %v7898_v51  ;;  %v7374_v45 = vor.u32 %v8849_v22, %v7371_v29  ;;  %v9079_v7 = vld [vmem:[#allocation6 + $0xa04] sm:$0xf]  ;;  %v7509_v29 = vld [vmem:[#allocation6 + $0x3e0] sm:$0xf] }
 0x208   :  { %5213 = vmatpush.bf16.msrb.mxu0 %v7150_v2  ;;  %5226 = vmatpush.bf16.msrb.mxu1 %v7502_v27  ;;  %v8964_v2 = vld [vmem:[#allocation6 + $0x668] sm:$0xf0]  ;;  %v7638_v27 = vor.u32 %v8915_v32, %v7635_v0  ;;  %v7943_v0 = vld [vmem:[#allocation6 + $0x774] sm:$0xf0] }
 0x209   :  { %5145 = vmatpush.bf16.msrb.mxu3 %v8330_v47  ;;  %v7810_v6 = vor.u32 %v8964_v2, %v7809_v1  ;;  %v7506_v47 = vor.u32 %v8882_v40, %v7503_v49  ;;  %v8992_v32 = vld [vmem:[#allocation6 + $0x74c] sm:$0xf]  ;;  %v7462_v2 = vor.u32 %v8871_v5, %v7459_v10  ;;  %v8287_v40 = vld [vmem:[#allocation6 + $0xa2c] sm:$0xf0]  ;;  %v7686_v49 = vor.u32 %v8932_v42, %v7685_v28  ;;  %v8822_v10 = vld [vmem:[#allocation6 + $0x1f8] sm:$0xf0] }
 0x20a   :  { %5239 = vmatpush.bf16.msrb.mxu2 %v7854_v52  ;;  %v7990_v52 = vor.u32 %v9003_v25, %v7987_v56  ;;  %v8959_v25 = vld [vmem:[#allocation6 + $0x644] sm:$0xf]  ;;  %v7811_v56 = vld [vmem:[#allocation6 + $0x66c] sm:$0xf0] }
 0x20b   :  { %v7245_v5 = vld [vmem:[#allocation6 + $0x1d0] sm:$0xf] }
 0x20c   :  { %5214 = vmatpush.bf16.msrb.mxu0 %v7106_v14  ;;  %5227 = vmatpush.bf16.msrb.mxu1 %v7458_v20  ;;  %v7591_v14 = vld [vmem:[#allocation6 + $0x4b4] sm:$0xf0]  ;;  %v9479_v20 = vld [vmem:[#allocation7] sm:$0xff] }
 0x20d   :  { %5146 = vmatpush.bf16.msrb.mxu3 %v8286_v50  ;;  %v7594_v26 = vor.u32 %v8904_v8, %v7591_v14  ;;  %v3187_v35 = vperm.slane %v9479_v20, 0  ;;  %v8065_v50 = vld [vmem:[#allocation6 + $0x848] sm:$0xf]  ;;  %v7415_v8 = vld [vmem:[#allocation6 + $0x354] sm:$0xf0]  ;;  %v7946_v14 = vor.u32 %v8992_v32, %v7943_v0 }
 0x20e   :  { %5240 = vmatpush.bf16.msrb.mxu2 %v7810_v6  ;;  %v7418_v17 = vor.u32 %v8860_v37, %v7415_v8  ;;  %v8948_v32 = vld [vmem:[#allocation6 + $0x5ec] sm:$0xf]  ;;  %v7767_v0 = vld [vmem:[#allocation6 + $0x614] sm:$0xf0]  ;;  %v8899_v37 = vld [vmem:[#allocation6 + $0x460] sm:$0xf0] }
 0x20f   :  { %v8937_v8 = vld [vmem:[#allocation6 + $0x594] sm:$0xf] }
 0x210   :  { %5215 = vmatpush.bf16.msrb.mxu0 %v7062_v39  ;;  %5228 = vmatpush.bf16.msrb.mxu1 %v7414_v21  ;;  %v8198_v39 = vor.u32 %v9062_v33, %v8197_v24  ;;  %v8153_v21 = vld [vmem:[#allocation6 + $0x8f8] sm:$0xf]  ;;  %v7066_v24 = vor.u32 %v8772_v4, %v7063_v61  ;;  %v9090_v33 = vld [vmem:[#allocation6 + $0xa5c] sm:$0xf]  ;;  %v8811_v61 = vld [vmem:[#allocation6 + $0x1a0] sm:$0xf0] }
 0x211   :  { %5147 = vmatpush.bf16.msrb.mxu3 %v8242_v38  ;;  %v8981_v38 = vld [vmem:[#allocation6 + $0x6f4] sm:$0xf]  ;;  %v7201_v4 = vld [vmem:[#allocation6 + $0x178] sm:$0xf] }
 0x212   :  { %5241 = vmatpush.bf16.msrb.mxu2 %v7766_v53  ;;  %v8761_v53 = vld [vmem:[#allocation6 + $0x14] sm:$0xf] }
 0x213   :  { %5100 = vmatmul.bf16.vlgmr.msra.gmra.mxu3 %v9474_v55 }
 0x214   :  { %5216 = vmatpush.bf16.msrb.mxu0 %v7018_v54  ;;  %5229 = vmatpush.bf16.msrb.mxu1 %v7370_v48  ;;  %v5010_v51 = vpop.f32.mrf.mxu0  ;;  %v5023_v34 = vpop.f32.mrf.mxu1  ;;  %v8154_v54 = vor.u32 %v9051_v36, %v8153_v21  ;;  %v8109_v48 = vld [vmem:[#allocation6 + $0x8a0] sm:$0xf]  ;;  %v8334_v21 = vor.u32 %v9090_v33, %v8331_v60  ;;  %v7022_v36 = vor.u32 %v8761_v53, %v7019_v62  ;;  %v8155_v33 = vld [vmem:[#allocation6 + $0x924] sm:$0xf0]  ;;  %v8800_v62 = vld [vmem:[#allocation6 + $0x148] sm:$0xf0] }
 0x215   :  { %v5011_v11 = vadd.f32 %v5010_v51, %v3187_v35  ;;  %5148 = vmatpush.bf16.msrb.mxu3 %v8198_v39  ;;  %v8110_v63 = vor.u32 %v9040_v9, %v8109_v48  ;;  %v7333_v35 = vld [vmem:[#allocation6 + $0x280] sm:$0xf]  ;;  %v8844_v39 = vld [vmem:[#allocation6 + $0x2a8] sm:$0xf0]  ;;  %v8243_v9 = vld [vmem:[#allocation6 + $0x9d4] sm:$0xf0] }
 0x216   :  { %5242 = vmatpush.bf16.msrb.mxu2 %v7722_v46  ;;  %v7334_v46 = vor.u32 %v8844_v39, %v7333_v35  ;;  %v9068_v48 = vld [vmem:[#allocation6 + $0x9ac] sm:$0xf] }
 0x217   :  { %5217 = vmatmul.bf16.vlgmr.msrb.gmra.mxu0 %v9413_v31  ;;  %5230 = vmatmul.bf16.vlgmr.msrb.gmra.mxu1 %v9415_v41 }
 0x218   :  { %5261 = vmatpush.bf16.msra.mxu0 %v7330_v13  ;;  %5274 = vmatpush.bf16.msra.mxu1 %v7682_v58  ;;  %v8783_v13 = vld [vmem:[#allocation6 + $0xc4] sm:$0xf]  ;;  %v9483_v58 = vadd.f32 %v5023_v34, %v5011_v11  ;;  %v8833_v11 = vld [vmem:[#allocation6 + $0x250] sm:$0xf0]  ;;  %v7641_v34 = vld [vmem:[#allocation6 + $0x4e8] sm:$0xf] }
 0x219   :  { %5149 = vmatpush.bf16.msrb.mxu3 %v8154_v54  ;;  %v7110_v1 = vor.u32 %v8783_v13, %v7107_v59  ;;  %5243 = vmatmul.bf16.vlgmr.msrb.gmra.mxu2 %v9444_v16  ;;  %v8921_v54 = vld [vmem:[#allocation6 + $0x510] sm:$0xf0]  ;;  %v7814_v59 = vor.u32 %v8959_v25, %v7811_v56  ;;  %v8998_v25 = vld [vmem:[#allocation6 + $0x778] sm:$0xf0] }
 0x21a   :  { %5287 = vmatpush.bf16.msra.mxu2 %v8034_v15  ;;  %v7289_v15 = vld [vmem:[#allocation6 + $0x228] sm:$0xf]  ;;  %v7642_v13 = vor.u32 %v8921_v54, %v7641_v34  ;;  %v7949_v54 = vld [vmem:[#allocation6 + $0x750] sm:$0xf] }
 0x21c   :  { %5262 = vmatpush.bf16.msra.mxu0 %v7286_v3  ;;  %5275 = vmatpush.bf16.msra.mxu1 %v7638_v27  ;;  %v9029_v3 = vld [vmem:[#allocation6 + $0x870] sm:$0xf0]  ;;  %v5012_v6 = vpop.f32.mrf.mxu0  ;;  %v5025_v18 = vpop.f32.mrf.mxu1 }
 0x21d   :  { %v9101_v27 = vld [vmem:[#allocation6 + $0xab4] sm:$0xf]  ;;  %5150 = vmatpush.bf16.msrb.mxu3 %v8110_v63  ;;  %v8066_v19 = vor.u32 %v9029_v3, %v8065_v50  ;;  %v8910_v63 = vld [vmem:[#allocation6 + $0x4b8] sm:$0xf0]  ;;  %v8199_v3 = vld [vmem:[#allocation6 + $0x97c] sm:$0xf0] }
 0x21e   :  { %5288 = vmatpush.bf16.msra.mxu2 %v7990_v52  ;;  %v7597_v52 = vld [vmem:[#allocation6 + $0x490] sm:$0xf]  ;;  %v9057_v50 = vld [vmem:[#allocation6 + $0x954] sm:$0xf]  ;;  %v7553_v6 = vld [vmem:[#allocation6 + $0x438] sm:$0xf] }
 0x21f   :  { %v3188_v18 = vperm.slane %v9479_v20, 1  ;;  %v7554_v60 = vor.u32 %v8899_v37, %v7553_v6  ;;  %v8767_v37 = vld [vmem:[#allocation6 + $0x40] sm:$0xf0] }
 0x220   :  { %5263 = vmatpush.bf16.msra.mxu0 %v7242_v23  ;;  %5276 = vmatpush.bf16.msra.mxu1 %v7594_v26  ;;  %v7899_v23 = vld [vmem:[#allocation6 + $0x71c] sm:$0xf0]  ;;  %v8378_v26 = vor.u32 %v9101_v27, %v8375_v12  ;;  %v7598_v27 = vor.u32 %v8910_v63, %v7597_v52  ;;  %v7770_v12 = vor.u32 %v8948_v32, %v7767_v0  ;;  %v7421_v52 = vld [vmem:[#allocation6 + $0x330] sm:$0xf]  ;;  %v8866_v63 = vld [vmem:[#allocation6 + $0x358] sm:$0xf0] }
 0x221   :  { %v7902_v30 = vor.u32 %v8981_v38, %v7899_v23  ;;  %5151 = vmatpush.bf16.msrb.mxu3 %v8066_v19  ;;  %v8202_v19 = vor.u32 %v9057_v50, %v8199_v3  ;;  %v8037_v38 = vld [vmem:[#allocation6 + $0x800] sm:$0xf]  ;;  %v9020_v23 = vld [vmem:[#allocation6 + $0x828] sm:$0xf0]  ;;  %v7950_v32 = vor.u32 %v8998_v25, %v7949_v54  ;;  %v8987_v50 = vld [vmem:[#allocation6 + $0x720] sm:$0xf0]  ;;  %v7422_v6 = vor.u32 %v8866_v63, %v7421_v52 }
 0x222   :  { %5289 = vmatpush.bf16.msra.mxu2 %v7946_v14  ;;  %v7723_v14 = vld [vmem:[#allocation6 + $0x5bc] sm:$0xf0]  ;;  %v8038_v35 = vor.u32 %v9020_v23, %v8037_v38  ;;  %v7335_v38 = vld [vmem:[#allocation6 + $0x2ac] sm:$0xf0]  ;;  %v8927_v23 = vld [vmem:[#allocation6 + $0x544] sm:$0xf] }
 0x223   :  { %v7726_v53 = vor.u32 %v8937_v8, %v7723_v14  ;;  %v7377_v8 = vld [vmem:[#allocation6 + $0x2d8] sm:$0xf]  ;;  %v8855_v14 = vld [vmem:[#allocation6 + $0x300] sm:$0xf0]  ;;  %v7247_v54 = vld [vmem:[#allocation6 + $0x1fc] sm:$0xf0] }
 0x224   :  { %5264 = vmatpush.bf16.msra.mxu0 %v7198_v43  ;;  %5277 = vmatpush.bf16.msra.mxu1 %v7550_v44  ;;  %v8970_v43 = vld [vmem:[#allocation6 + $0x69c] sm:$0xf]  ;;  %v7855_v44 = vld [vmem:[#allocation6 + $0x6c4] sm:$0xf0]  ;;  %v8905_v25 = vld [vmem:[#allocation6 + $0x494] sm:$0xf] }
 0x225   :  { %5196 = vmatpush.bf16.msra.mxu3 %v8378_v26  ;;  %v7858_v51 = vor.u32 %v8970_v43, %v7855_v44  ;;  %v7202_v26 = vor.u32 %v8811_v61, %v7201_v4  ;;  %v7993_v43 = vld [vmem:[#allocation6 + $0x7a8] sm:$0xf]  ;;  %v9009_v44 = vld [vmem:[#allocation6 + $0x7d0] sm:$0xf0]  ;;  %v9096_v4 = vld [vmem:[#allocation6 + $0xa88] sm:$0xf0] }
 0x226   :  { %5152 = vmatmul.bf16.vlgmr.msrb.gmra.mxu3 %v9474_v55  ;;  %5290 = vmatpush.bf16.msra.mxu2 %v7902_v30  ;;  %v8888_v30 = vld [vmem:[#allocation6 + $0x408] sm:$0xf0]  ;;  %v7025_v61 = vld [vmem:[#allocation6 + $0x18] sm:$0xf]  ;;  %v7203_v52 = vld [vmem:[#allocation6 + $0x1a4] sm:$0xf0] }
 0x227   :  { %v8894_v63 = vld [vmem:[#allocation6 + $0x43c] sm:$0xf] }
 0x228   :  { %5265 = vmatpush.bf16.msra.mxu0 %v7154_v57  ;;  %5278 = vmatpush.bf16.msra.mxu1 %v7506_v47  ;;  %v8290_v57 = vor.u32 %v9079_v7, %v8287_v40  ;;  %v7290_v47 = vor.u32 %v8833_v11, %v7289_v15  ;;  %v7510_v7 = vor.u32 %v8888_v30, %v7509_v29  ;;  %v7113_v40 = vld [vmem:[#allocation6 + $0xc8] sm:$0xf]  ;;  %v8877_v15 = vld [vmem:[#allocation6 + $0x3b0] sm:$0xf0] }
 0x229   :  { %5197 = vmatpush.bf16.msra.mxu3 %v8334_v21  ;;  %v7994_v11 = vor.u32 %v9009_v44, %v7993_v43  ;;  %v9085_v29 = vld [vmem:[#allocation6 + $0xa30] sm:$0xf0]  ;;  %v7643_v43 = vld [vmem:[#allocation6 + $0x514] sm:$0xf0]  ;;  %v7817_v44 = vld [vmem:[#allocation6 + $0x648] sm:$0xf] }
 0x22a   :  { %5291 = vmatpush.bf16.msra.mxu2 %v7858_v51  ;;  %v7465_v51 = vld [vmem:[#allocation6 + $0x388] sm:$0xf] }
 0x22c   :  { %5266 = vmatpush.bf16.msra.mxu0 %v7110_v1  ;;  %5279 = vmatpush.bf16.msra.mxu1 %v7462_v2  ;;  %v8246_v1 = vor.u32 %v9068_v48, %v8243_v9  ;;  %v7246_v2 = vor.u32 %v8822_v10, %v7245_v5  ;;  %v8381_v48 = vld [vmem:[#allocation6 + $0xab8] sm:$0xf]  ;;  %v7466_v9 = vor.u32 %v8877_v15, %v7465_v51  ;;  %v8778_v5 = vld [vmem:[#allocation6 + $0x98] sm:$0xf0] }
 0x22d   :  { %5198 = vmatpush.bf16.msra.mxu3 %v8290_v57  ;;  %v9024_v57 = vld [vmem:[#allocation6 + $0x84c] sm:$0xf]  ;;  %v9074_v51 = vld [vmem:[#allocation6 + $0x9d8] sm:$0xf0] }
 0x22e   :  { %5292 = vmatpush.bf16.msra.mxu2 %v7814_v59  ;;  %v7069_v59 = vld [vmem:[#allocation6 + $0x70] sm:$0xf] }
 0x230   :  { %5267 = vmatpush.bf16.msra.mxu0 %v7066_v24  ;;  %5280 = vmatpush.bf16.msra.mxu1 %v7418_v17  ;;  %v9046_v24 = vld [vmem:[#allocation6 + $0x8fc] sm:$0xf]  ;;  %v7157_v17 = vld [vmem:[#allocation6 + $0x120] sm:$0xf] }
 0x231   :  { %5199 = vmatpush.bf16.msra.mxu3 %v8246_v1  ;;  %v8158_v42 = vor.u32 %v9046_v24, %v8155_v33  ;;  %v7158_v21 = vor.u32 %v8800_v62, %v7157_v17  ;;  %v7861_v24 = vld [vmem:[#allocation6 + $0x6a0] sm:$0xf]  ;;  %v8976_v33 = vld [vmem:[#allocation6 + $0x6c8] sm:$0xf0]  ;;  %v7378_v17 = vor.u32 %v8855_v14, %v7377_v8  ;;  %v8795_v14 = vld [vmem:[#allocation6 + $0x124] sm:$0xf] }
 0x232   :  { %5293 = vmatpush.bf16.msra.mxu2 %v7770_v12  ;;  %v8337_v12 = vld [vmem:[#allocation6 + $0xa60] sm:$0xf] }
 0x234   :  { %5268 = vmatpush.bf16.msra.mxu0 %v7022_v36  ;;  %5281 = vmatpush.bf16.msra.mxu1 %v7374_v45  ;;  %v5062_v22 = vpop.f32.mrf.mxu0  ;;  %v5075_v28 = vpop.f32.mrf.mxu1  ;;  %v9035_v36 = vld [vmem:[#allocation6 + $0x8a4] sm:$0xf]  ;;  %v8111_v45 = vld [vmem:[#allocation6 + $0x8cc] sm:$0xf0] }
 0x235   :  { %v5063_v39 = vadd.f32 %v5062_v22, %v3188_v18  ;;  %5200 = vmatpush.bf16.msra.mxu3 %v8202_v19  ;;  %v8114_v34 = vor.u32 %v9035_v36, %v8111_v45  ;;  %v8839_v19 = vld [vmem:[#allocation6 + $0x284] sm:$0xf]  ;;  %v8293_v22 = vld [vmem:[#allocation6 + $0xa08] sm:$0xf] }
 0x236   :  { %5294 = vmatpush.bf16.msra.mxu2 %v7726_v53  ;;  %v7026_v53 = vor.u32 %v8767_v37, %v7025_v61  ;;  %v7338_v62 = vor.u32 %v8839_v19, %v7335_v38  ;;  %v8294_v45 = vor.u32 %v9085_v29, %v8293_v22  ;;  %v8161_v61 = vld [vmem:[#allocation6 + $0x900] sm:$0xf]  ;;  %v8883_v38 = vld [vmem:[#allocation6 + $0x3e4] sm:$0xf]  ;;  %v8117_v22 = vld [vmem:[#allocation6 + $0x8a8] sm:$0xf] }
 0x237   :  { %5269 = vmatmul.bf16.vlgmr.msra.gmra.mxu0 %v9413_v31  ;;  %5282 = vmatmul.bf16.vlgmr.msra.gmra.mxu1 %v9415_v41  ;;  %v9041_v29 = vld [vmem:[#allocation6 + $0x8d0] sm:$0xf0] }
 0x238   :  { %5313 = vmatpush.bf16.msrb.mxu0 %v7334_v46  ;;  %5326 = vmatpush.bf16.msrb.mxu1 %v7686_v49  ;;  %v9490_v46 = vadd.f32 %v5075_v28, %v5063_v39  ;;  %v8789_v49 = vld [vmem:[#allocation6 + $0xf0] sm:$0xf0]  ;;  %v8828_v39 = vld [vmem:[#allocation6 + $0x22c] sm:$0xf]  ;;  %v7291_v28 = vld [vmem:[#allocation6 + $0x254] sm:$0xf0] }
 0x239   :  { %5201 = vmatpush.bf16.msra.mxu3 %v8158_v42  ;;  %5295 = vmatmul.bf16.vlgmr.msra.gmra.mxu2 %v9444_v16  ;;  %v7114_v56 = vor.u32 %v8789_v49, %v7113_v40  ;;  %v8916_v42 = vld [vmem:[#allocation6 + $0x4ec] sm:$0xf]  ;;  %v7294_v40 = vor.u32 %v8828_v39, %v7291_v28  ;;  %v8249_v49 = vld [vmem:[#allocation6 + $0x9b0] sm:$0xf]  ;;  %v7115_v28 = vld [vmem:[#allocation6 + $0xf4] sm:$0xf0] }
 0x23a   :  { %5339 = vmatpush.bf16.msrb.mxu2 %v8038_v35  ;;  %v7862_v35 = vor.u32 %v8976_v33, %v7861_v24  ;;  %v7646_v15 = vor.u32 %v8916_v42, %v7643_v43  ;;  %v8784_v39 = vld [vmem:[#allocation6 + $0xcc] sm:$0xf]  ;;  %v7467_v43 = vld [vmem:[#allocation6 + $0x3b4] sm:$0xf0] }
 0x23b   :  { %v8872_v42 = vld [vmem:[#allocation6 + $0x38c] sm:$0xf] }
 0x23c   :  { %5314 = vmatpush.bf16.msrb.mxu0 %v7290_v47  ;;  %5327 = vmatpush.bf16.msrb.mxu1 %v7642_v13  ;;  %v8067_v47 = vld [vmem:[#allocation6 + $0x874] sm:$0xf0]  ;;  %v9107_v13 = vld [vmem:[#allocation6 + $0xae0] sm:$0xf0]  ;;  %v5064_v10 = vpop.f32.mrf.mxu0  ;;  %v5077_v0 = vpop.f32.mrf.mxu1 }
 0x23d   :  { %5202 = vmatpush.bf16.msra.mxu3 %v8114_v34  ;;  %v8070_v1 = vor.u32 %v9024_v57, %v8067_v47  ;;  %v8382_v3 = vor.u32 %v9107_v13, %v8381_v48  ;;  %v5036_v36 = vpop.f32.mrf.mxu2  ;;  %v8817_v34 = vld [vmem:[#allocation6 + $0x1d4] sm:$0xf]  ;;  %v7773_v57 = vld [vmem:[#allocation6 + $0x5f0] sm:$0xf]  ;;  %v8954_v47 = vld [vmem:[#allocation6 + $0x618] sm:$0xf0] }
 0x23e   :  { %5340 = vmatpush.bf16.msrb.mxu2 %v7994_v11  ;;  %v7250_v48 = vor.u32 %v8817_v34, %v7247_v54  ;;  %v9063_v13 = vld [vmem:[#allocation6 + $0x980] sm:$0xf0]  ;;  %v8806_v10 = vld [vmem:[#allocation6 + $0x17c] sm:$0xf]  ;;  %v7729_v0 = vld [vmem:[#allocation6 + $0x598] sm:$0xf]  ;;  %v7470_v54 = vor.u32 %v8872_v42, %v7467_v43 }
 0x23f   :  { %v9102_v34 = vld [vmem:[#allocation6 + $0xabc] sm:$0xf]  ;;  %v9069_v42 = vld [vmem:[#allocation6 + $0x9b4] sm:$0xf]  ;;  %v8251_v43 = vld [vmem:[#allocation6 + $0x9dc] sm:$0xf0] }
 0x240   :  { %5315 = vmatpush.bf16.msrb.mxu0 %v7246_v2  ;;  %5328 = vmatpush.bf16.msrb.mxu1 %v7598_v27  ;;  %v7905_v2 = vld [vmem:[#allocation6 + $0x6f8] sm:$0xf]  ;;  %v7070_v27 = vor.u32 %v8778_v5, %v7069_v59  ;;  %v7774_v5 = vor.u32 %v8954_v47, %v7773_v57  ;;  %v7071_v57 = vld [vmem:[#allocation6 + $0x9c] sm:$0xf0] }
 0x241   :  { %v7906_v18 = vor.u32 %v8987_v50, %v7905_v2  ;;  %5203 = vmatpush.bf16.msra.mxu3 %v8070_v1  ;;  %v8943_v1 = vld [vmem:[#allocation6 + $0x5c0] sm:$0xf0]  ;;  %v3189_v50 = vperm.slane %v9479_v20, 2 }
 0x242   :  { %5341 = vmatpush.bf16.msrb.mxu2 %v7950_v32  ;;  %v7555_v32 = vld [vmem:[#allocation6 + $0x464] sm:$0xf0]  ;;  %v7730_v8 = vor.u32 %v8943_v1, %v7729_v0  ;;  %v8762_v0 = vld [vmem:[#allocation6 + $0x1c] sm:$0xf] }
 0x243   :  { %v7558_v37 = vor.u32 %v8894_v63, %v7555_v32  ;;  %v9091_v63 = vld [vmem:[#allocation6 + $0xa64] sm:$0xf]  ;;  %v8339_v32 = vld [vmem:[#allocation6 + $0xa8c] sm:$0xf0] }
 0x244   :  { %5316 = vmatpush.bf16.msrb.mxu0 %v7202_v26  ;;  %5329 = vmatpush.bf16.msrb.mxu1 %v7554_v60  ;;  %v7687_v26 = vld [vmem:[#allocation6 + $0x56c] sm:$0xf0]  ;;  %v8338_v60 = vor.u32 %v9096_v4, %v8337_v12  ;;  %v7206_v4 = vor.u32 %v8806_v10, %v7203_v52 }
 0x245   :  { %5248 = vmatpush.bf16.msrb.mxu3 %v8382_v3  ;;  %v7690_v30 = vor.u32 %v8927_v23, %v7687_v26  ;;  %v5038_v2 = vpop.f32.mrf.mxu2  ;;  %v8039_v12 = vld [vmem:[#allocation6 + $0x82c] sm:$0xf0] }
 0x246   :  { %5204 = vmatmul.bf16.vlgmr.msra.gmra.mxu3 %v9474_v55  ;;  %5342 = vmatpush.bf16.msrb.mxu2 %v7906_v18  ;;  %v7159_v18 = vld [vmem:[#allocation6 + $0x14c] sm:$0xf0]  ;;  %v7027_v2 = vld [vmem:[#allocation6 + $0x44] sm:$0xf0] }
 0x247   :  { %v7511_v23 = vld [vmem:[#allocation6 + $0x40c] sm:$0xf0] }
 0x248   :  { %5317 = vmatpush.bf16.msrb.mxu0 %v7158_v21  ;;  %5330 = vmatpush.bf16.msrb.mxu1 %v7510_v7  ;;  %v8965_v21 = vld [vmem:[#allocation6 + $0x670] sm:$0xf0]  ;;  %v9495_v7 = vadd.f32 %v5036_v36, %v9483_v58  ;;  %v8250_v58 = vor.u32 %v9074_v51, %v8249_v49  ;;  %v8118_v36 = vor.u32 %v9041_v29, %v8117_v22  ;;  %v8922_v22 = vld [vmem:[#allocation6 + $0x518] sm:$0xf0]  ;;  %v8960_v29 = vld [vmem:[#allocation6 + $0x64c] sm:$0xf] }
 0x249   :  { %5249 = vmatpush.bf16.msrb.mxu3 %v8338_v60  ;;  %v7818_v11 = vor.u32 %v8965_v21, %v7817_v44  ;;  %v7118_v51 = vor.u32 %v8784_v39, %v7115_v28 }
 0x24a   :  { %5343 = vmatpush.bf16.msrb.mxu2 %v7862_v35  ;;  %v7514_v35 = vor.u32 %v8883_v38, %v7511_v23 }
 0x24c   :  { %5318 = vmatpush.bf16.msrb.mxu0 %v7114_v56  ;;  %5331 = vmatpush.bf16.msrb.mxu1 %v7466_v9  ;;  %v7599_v56 = vld [vmem:[#allocation6 + $0x4bc] sm:$0xf0]  ;;  %v8205_v9 = vld [vmem:[#allocation6 + $0x958] sm:$0xf] }
 0x24d   :  { %5250 = vmatpush.bf16.msrb.mxu3 %v8294_v45  ;;  %v7602_v59 = vor.u32 %v8905_v25, %v7599_v56  ;;  %v8206_v3 = vor.u32 %v9063_v13, %v8205_v9  ;;  %v5088_v21 = vpop.f32.mrf.mxu2  ;;  %v8993_v45 = vld [vmem:[#allocation6 + $0x754] sm:$0xf]  ;;  %v8383_v25 = vld [vmem:[#allocation6 + $0xae4] sm:$0xf0] }
 0x24e   :  { %5344 = vmatpush.bf16.msrb.mxu2 %v7818_v11  ;;  %v9503_v49 = vadd.f32 %v5088_v21, %v9490_v46  ;;  %v9030_v11 = vld [vmem:[#allocation6 + $0x878] sm:$0xf0]  ;;  %v8773_v56 = vld [vmem:[#allocation6 + $0x74] sm:$0xf]  ;;  %v8386_v10 = vor.u32 %v9102_v34, %v8383_v25  ;;  %v7775_v34 = vld [vmem:[#allocation6 + $0x61c] sm:$0xf0]  ;;  %v8254_v25 = vor.u32 %v9069_v42, %v8251_v43 }
 0x24f   :  { %v7074_v52 = vor.u32 %v8773_v56, %v7071_v57  ;;  %v9058_v57 = vld [vmem:[#allocation6 + $0x95c] sm:$0xf]  ;;  %v9025_v43 = vld [vmem:[#allocation6 + $0x854] sm:$0xf] }
 0x250   :  { %5319 = vmatpush.bf16.msrb.mxu0 %v7070_v27  ;;  %5332 = vmatpush.bf16.msrb.mxu1 %v7422_v6  ;;  %v9015_v27 = vld [vmem:[#allocation6 + $0x804] sm:$0xf]  ;;  %v9052_v6 = vld [vmem:[#allocation6 + $0x928] sm:$0xf0] }
 0x251   :  { %5251 = vmatpush.bf16.msrb.mxu3 %v8250_v58  ;;  %v8042_v26 = vor.u32 %v9015_v27, %v8039_v12  ;;  %v8162_v60 = vor.u32 %v9052_v6, %v8161_v61  ;;  %v8861_v58 = vld [vmem:[#allocation6 + $0x334] sm:$0xf]  ;;  %v7341_v12 = vld [vmem:[#allocation6 + $0x288] sm:$0xf] }
 0x252   :  { %5345 = vmatpush.bf16.msrb.mxu2 %v7774_v5  ;;  %v7907_v5 = vld [vmem:[#allocation6 + $0x724] sm:$0xf0] }
 0x253   :  { %v7693_v61 = vld [vmem:[#allocation6 + $0x548] sm:$0xf] }
 0x254   :  { %5320 = vmatpush.bf16.msrb.mxu0 %v7026_v53  ;;  %5333 = vmatpush.bf16.msrb.mxu1 %v7378_v17  ;;  %v5114_v19 = vpop.f32.mrf.mxu0  ;;  %v5127_v33 = vpop.f32.mrf.mxu1  ;;  %v9004_v53 = vld [vmem:[#allocation6 + $0x7ac] sm:$0xf]  ;;  %v7995_v17 = vld [vmem:[#allocation6 + $0x7d4] sm:$0xf0] }
 0x255   :  { %v5115_v24 = vadd.f32 %v5114_v19, %v3189_v50  ;;  %5252 = vmatpush.bf16.msrb.mxu3 %v8206_v3  ;;  %v7998_v44 = vor.u32 %v9004_v53, %v7995_v17  ;;  %v8850_v50 = vld [vmem:[#allocation6 + $0x2dc] sm:$0xf]  ;;  %v7379_v3 = vld [vmem:[#allocation6 + $0x304] sm:$0xf0]  ;;  %v5090_v6 = vpop.f32.mrf.mxu2  ;;  %v7030_v19 = vor.u32 %v8762_v0, %v7027_v2  ;;  %v7297_v53 = vld [vmem:[#allocation6 + $0x230] sm:$0xf] }
 0x256   :  { %5346 = vmatpush.bf16.msrb.mxu2 %v7730_v8  ;;  %v8971_v8 = vld [vmem:[#allocation6 + $0x6a4] sm:$0xf]  ;;  %v7382_v38 = vor.u32 %v8850_v50, %v7379_v3  ;;  %v8834_v17 = vld [vmem:[#allocation6 + $0x258] sm:$0xf0]  ;;  %v8163_v2 = vld [vmem:[#allocation6 + $0x92c] sm:$0xf0] }
 0x257   :  { %5321 = vmatmul.bf16.vlgmr.msrb.gmra.mxu0 %v9413_v31  ;;  %5334 = vmatmul.bf16.vlgmr.msrb.gmra.mxu1 %v9415_v41  ;;  %v7298_v28 = vor.u32 %v8834_v17, %v7297_v53  ;;  %v7517_v6 = vld [vmem:[#allocation6 + $0x3e8] sm:$0xf]  ;;  %v7121_v53 = vld [vmem:[#allocation6 + $0xd0] sm:$0xf]  ;;  %v8790_v17 = vld [vmem:[#allocation6 + $0xf8] sm:$0xf0] }
 0x258   :  { %5365 = vmatpush.bf16.msra.mxu0 %v7338_v62  ;;  %5378 = vmatpush.bf16.msra.mxu1 %v7690_v30  ;;  %v7162_v62 = vor.u32 %v8795_v14, %v7159_v18  ;;  %v9500_v30 = vadd.f32 %v5127_v33, %v5115_v24  ;;  %v7863_v14 = vld [vmem:[#allocation6 + $0x6cc] sm:$0xf0]  ;;  %v8342_v18 = vor.u32 %v9091_v63, %v8339_v32  ;;  %v8295_v24 = vld [vmem:[#allocation6 + $0xa34] sm:$0xf0]  ;;  %v8045_v63 = vld [vmem:[#allocation6 + $0x808] sm:$0xf] }
 0x259   :  { %5253 = vmatpush.bf16.msrb.mxu3 %v8162_v60  ;;  %5347 = vmatmul.bf16.vlgmr.msrb.gmra.mxu2 %v9444_v16  ;;  %v7866_v60 = vor.u32 %v8971_v8, %v7863_v14  ;;  %v9021_v32 = vld [vmem:[#allocation6 + $0x830] sm:$0xf0]  ;;  %v7122_v42 = vor.u32 %v8790_v17, %v7121_v53  ;;  %v8257_v53 = vld [vmem:[#allocation6 + $0x9b8] sm:$0xf]  ;;  %v9075_v17 = vld [vmem:[#allocation6 + $0x9e0] sm:$0xf0] }
 0x25a   :  { %5391 = vmatpush.bf16.msra.mxu2 %v8042_v26  ;;  %v9080_v26 = vld [vmem:[#allocation6 + $0xa0c] sm:$0xf]  ;;  %v8046_v8 = vor.u32 %v9021_v32, %v8045_v63 }
 0x25b   :  { %v8298_v39 = vor.u32 %v9080_v26, %v8295_v24  ;;  %v9036_v26 = vld [vmem:[#allocation6 + $0x8ac] sm:$0xf]  ;;  %v8119_v24 = vld [vmem:[#allocation6 + $0x8d4] sm:$0xf0] }
 0x25c   :  { %5366 = vmatpush.bf16.msra.mxu0 %v7294_v40  ;;  %5379 = vmatpush.bf16.msra.mxu1 %v7646_v15  ;;  %v7951_v40 = vld [vmem:[#allocation6 + $0x77c] sm:$0xf0]  ;;  %v8073_v15 = vld [vmem:[#allocation6 + $0x850] sm:$0xf]  ;;  %v5116_v47 = vpop.f32.mrf.mxu0  ;;  %v5129_v13 = vpop.f32.mrf.mxu1  ;;  %v8840_v32 = vld [vmem:[#allocation6 + $0x28c] sm:$0xf] }
 0x25d   :  { %v7954_v9 = vor.u32 %v8993_v45, %v7951_v40  ;;  %5254 = vmatpush.bf16.msrb.mxu3 %v8118_v36  ;;  %v8074_v46 = vor.u32 %v9030_v11, %v8073_v15  ;;  %v7253_v36 = vld [vmem:[#allocation6 + $0x1d8] sm:$0xf]  ;;  %v8823_v45 = vld [vmem:[#allocation6 + $0x200] sm:$0xf0]  ;;  %v8949_v11 = vld [vmem:[#allocation6 + $0x5f4] sm:$0xf] }
 0x25e   :  { %5392 = vmatpush.bf16.msra.mxu2 %v7998_v44  ;;  %v7605_v40 = vld [vmem:[#allocation6 + $0x498] sm:$0xf]  ;;  %v8911_v15 = vld [vmem:[#allocation6 + $0x4c0] sm:$0xf0]  ;;  %v7254_v56 = vor.u32 %v8823_v45, %v7253_v36  ;;  %v8207_v47 = vld [vmem:[#allocation6 + $0x984] sm:$0xf0] }
 0x25f   :  { %v8812_v13 = vld [vmem:[#allocation6 + $0x1a8] sm:$0xf0] }
 0x260   :  { %5367 = vmatpush.bf16.msra.mxu0 %v7250_v48  ;;  %5380 = vmatpush.bf16.msra.mxu1 %v7602_v59  ;;  %v7423_v48 = vld [vmem:[#allocation6 + $0x35c] sm:$0xf0]  ;;  %v8982_v59 = vld [vmem:[#allocation6 + $0x6fc] sm:$0xf]  ;;  %v9108_v45 = vld [vmem:[#allocation6 + $0xae8] sm:$0xf0] }
 0x261   :  { %v7426_v1 = vor.u32 %v8861_v58, %v7423_v48  ;;  %v7910_v27 = vor.u32 %v8982_v59, %v7907_v5  ;;  %5255 = vmatpush.bf16.msrb.mxu3 %v8074_v46  ;;  %v7606_v58 = vor.u32 %v8911_v15, %v7605_v40  ;;  %v7778_v48 = vor.u32 %v8949_v11, %v7775_v34  ;;  %v7561_v46 = vld [vmem:[#allocation6 + $0x440] sm:$0xf]  ;;  %v8900_v59 = vld [vmem:[#allocation6 + $0x468] sm:$0xf0]  ;;  %v8938_v5 = vld [vmem:[#allocation6 + $0x59c] sm:$0xf] }
 0x262   :  { %5393 = vmatpush.bf16.msra.mxu2 %v7954_v9  ;;  %v7209_v9 = vld [vmem:[#allocation6 + $0x180] sm:$0xf]  ;;  %v7562_v50 = vor.u32 %v8900_v59, %v7561_v46  ;;  %v7077_v40 = vld [vmem:[#allocation6 + $0x78] sm:$0xf]  ;;  %v8867_v34 = vld [vmem:[#allocation6 + $0x360] sm:$0xf0] }
 0x263   :  { %v7210_v0 = vor.u32 %v8812_v13, %v7209_v9  ;;  %v7429_v11 = vld [vmem:[#allocation6 + $0x338] sm:$0xf]  ;;  %v8345_v13 = vld [vmem:[#allocation6 + $0xa68] sm:$0xf]  ;;  %v9097_v46 = vld [vmem:[#allocation6 + $0xa90] sm:$0xf0] }
 0x264   :  { %5368 = vmatpush.bf16.msra.mxu0 %v7206_v4  ;;  %5381 = vmatpush.bf16.msra.mxu1 %v7558_v37  ;;  %v8845_v4 = vld [vmem:[#allocation6 + $0x2b0] sm:$0xf0]  ;;  %v7033_v59 = vld [vmem:[#allocation6 + $0x20] sm:$0xf] }
 0x265   :  { %v8933_v37 = vld [vmem:[#allocation6 + $0x570] sm:$0xf0]  ;;  %5300 = vmatpush.bf16.msra.mxu3 %v8386_v10  ;;  %v7342_v23 = vor.u32 %v8845_v4, %v7341_v12  ;;  %v7731_v10 = vld [vmem:[#allocation6 + $0x5c4] sm:$0xf0] }
 0x266   :  { %5256 = vmatmul.bf16.vlgmr.msrb.gmra.mxu3 %v9474_v55  ;;  %5394 = vmatpush.bf16.msra.mxu2 %v7910_v27  ;;  %v7694_v33 = vor.u32 %v8933_v37, %v7693_v61  ;;  %v7734_v3 = vor.u32 %v8938_v5, %v7731_v10  ;;  %v7165_v27 = vld [vmem:[#allocation6 + $0x128] sm:$0xf]  ;;  %v8801_v12 = vld [vmem:[#allocation6 + $0x150] sm:$0xf0]  ;;  %v7430_v5 = vor.u32 %v8867_v34, %v7429_v11  ;;  %v8768_v10 = vld [vmem:[#allocation6 + $0x48] sm:$0xf0] }
 0x267   :  { %v8889_v37 = vld [vmem:[#allocation6 + $0x410] sm:$0xf0]  ;;  %v8807_v34 = vld [vmem:[#allocation6 + $0x184] sm:$0xf] }
 0x268   :  { %5369 = vmatpush.bf16.msra.mxu0 %v7162_v62  ;;  %5382 = vmatpush.bf16.msra.mxu1 %v7514_v35  ;;  %v7649_v62 = vld [vmem:[#allocation6 + $0x4f0] sm:$0xf]  ;;  %v7819_v35 = vld [vmem:[#allocation6 + $0x674] sm:$0xf0] }
 0x269   :  { %5301 = vmatpush.bf16.msra.mxu3 %v8342_v18  ;;  %v7650_v44 = vor.u32 %v8922_v22, %v7649_v62  ;;  %v7822_v21 = vor.u32 %v8960_v29, %v7819_v35  ;;  %v7473_v62 = vld [vmem:[#allocation6 + $0x390] sm:$0xf]  ;;  %v8878_v22 = vld [vmem:[#allocation6 + $0x3b8] sm:$0xf0]  ;;  %v8122_v35 = vor.u32 %v9036_v26, %v8119_v24 }
 0x26a   :  { %5395 = vmatpush.bf16.msra.mxu2 %v7866_v60  ;;  %v7518_v60 = vor.u32 %v8889_v37, %v7517_v6  ;;  %v7474_v36 = vor.u32 %v8878_v22, %v7473_v62  ;;  %v8301_v6 = vld [vmem:[#allocation6 + $0xa10] sm:$0xf]  ;;  %v9086_v37 = vld [vmem:[#allocation6 + $0xa38] sm:$0xf0] }
 0x26b   :  { %v8966_v26 = vld [vmem:[#allocation6 + $0x678] sm:$0xf0]  ;;  %v8302_v24 = vor.u32 %v9086_v37, %v8301_v6  ;;  %v9005_v37 = vld [vmem:[#allocation6 + $0x7b4] sm:$0xf] }
 0x26c   :  { %5370 = vmatpush.bf16.msra.mxu0 %v7118_v51  ;;  %5383 = vmatpush.bf16.msra.mxu1 %v7470_v54  ;;  %v5140_v51 = vpop.f32.mrf.mxu2 }
 0x26d   :  { %5302 = vmatpush.bf16.msra.mxu3 %v8298_v39  ;;  %v9510_v54 = vadd.f32 %v5140_v51, %v9500_v30  ;;  %v8210_v30 = vor.u32 %v9058_v57, %v8207_v47  ;;  %v7957_v39 = vld [vmem:[#allocation6 + $0x758] sm:$0xf]  ;;  %v8779_v51 = vld [vmem:[#allocation6 + $0xa0] sm:$0xf0]  ;;  %v7913_v47 = vld [vmem:[#allocation6 + $0x700] sm:$0xf] }
 0x26e   :  { %5396 = vmatpush.bf16.msra.mxu2 %v7822_v21  ;;  %v8389_v21 = vld [vmem:[#allocation6 + $0xac0] sm:$0xf]  ;;  %v7078_v9 = vor.u32 %v8779_v51, %v7077_v40  ;;  %v9064_v51 = vld [vmem:[#allocation6 + $0x988] sm:$0xf0] }
 0x26f   :  { %v8213_v40 = vld [vmem:[#allocation6 + $0x960] sm:$0xf] }
 0x270   :  { %5371 = vmatpush.bf16.msra.mxu0 %v7074_v52  ;;  %5384 = vmatpush.bf16.msra.mxu1 %v7426_v1  ;;  %v3190_v52 = vperm.slane %v9479_v20, 3  ;;  %v9047_v1 = vld [vmem:[#allocation6 + $0x904] sm:$0xf] }
 0x271   :  { %5303 = vmatpush.bf16.msra.mxu3 %v8254_v25  ;;  %v8166_v18 = vor.u32 %v9047_v1, %v8163_v2  ;;  %v8928_v1 = vld [vmem:[#allocation6 + $0x54c] sm:$0xf]  ;;  %v7695_v2 = vld [vmem:[#allocation6 + $0x574] sm:$0xf0] }
 0x272   :  { %5397 = vmatpush.bf16.msra.mxu2 %v7778_v48  ;;  %v8390_v48 = vor.u32 %v9108_v45, %v8389_v21 }
 0x274   :  { %5372 = vmatpush.bf16.msra.mxu0 %v7030_v19  ;;  %5385 = vmatpush.bf16.msra.mxu1 %v7382_v38  ;;  %v5166_v4 = vpop.f32.mrf.mxu0  ;;  %v5142_v61 = vpop.f32.mrf.mxu2  ;;  %v8001_v19 = vld [vmem:[#allocation6 + $0x7b0] sm:$0xf]  ;;  %v9010_v38 = vld [vmem:[#allocation6 + $0x7d8] sm:$0xf0] }
 0x275   :  { %v5167_v14 = vadd.f32 %v5166_v4, %v3190_v52  ;;  %v5179_v20 = vpop.f32.mrf.mxu1  ;;  %5304 = vmatpush.bf16.msra.mxu3 %v8210_v30  ;;  %v8002_v29 = vor.u32 %v9010_v38, %v8001_v19  ;;  %v7385_v52 = vld [vmem:[#allocation6 + $0x2e0] sm:$0xf]  ;;  %v8856_v30 = vld [vmem:[#allocation6 + $0x308] sm:$0xf0]  ;;  %v8917_v19 = vld [vmem:[#allocation6 + $0x4f4] sm:$0xf] }
 0x276   :  { %5398 = vmatpush.bf16.msra.mxu2 %v7734_v3  ;;  %v8977_v3 = vld [vmem:[#allocation6 + $0x6d0] sm:$0xf0]  ;;  %v7386_v4 = vor.u32 %v8856_v30, %v7385_v52  ;;  %v7651_v38 = vld [vmem:[#allocation6 + $0x51c] sm:$0xf0] }
 0x277   :  { %5373 = vmatmul.bf16.vlgmr.msra.gmra.mxu0 %v9413_v31  ;;  %5386 = vmatmul.bf16.vlgmr.msra.gmra.mxu1 %v9415_v41  ;;  %v7654_v62 = vor.u32 %v8917_v19, %v7651_v38  ;;  %v8785_v38 = vld [vmem:[#allocation6 + $0xd4] sm:$0xf] }
 0x278   :  { %5417 = vmatpush.bf16.msrb.mxu0 %v7342_v23  ;;  %5430 = vmatpush.bf16.msrb.mxu1 %v7694_v33  ;;  %v7166_v23 = vor.u32 %v8801_v12, %v7165_v27  ;;  %v9513_v33 = vadd.f32 %v5179_v20, %v5167_v14  ;;  %v8346_v27 = vor.u32 %v9097_v46, %v8345_v13  ;;  %v8829_v20 = vld [vmem:[#allocation6 + $0x234] sm:$0xf]  ;;  %v9016_v13 = vld [vmem:[#allocation6 + $0x80c] sm:$0xf]  ;;  %v8047_v46 = vld [vmem:[#allocation6 + $0x834] sm:$0xf0] }
 0x279   :  { %5305 = vmatpush.bf16.msra.mxu3 %v8166_v18  ;;  %5399 = vmatmul.bf16.vlgmr.msra.gmra.mxu2 %v9444_v16  ;;  %v7034_v12 = vor.u32 %v8768_v10, %v7033_v59  ;;  %v7299_v18 = vld [vmem:[#allocation6 + $0x25c] sm:$0xf0]  ;;  %v9053_v10 = vld [vmem:[#allocation6 + $0x930] sm:$0xf0] }
 0x27a   :  { %5443 = vmatpush.bf16.msrb.mxu2 %v8046_v8  ;;  %v7698_v8 = vor.u32 %v8928_v1, %v7695_v2 }
 0x27c   :  { %5418 = vmatpush.bf16.msrb.mxu0 %v7298_v28  ;;  %5431 = vmatpush.bf16.msrb.mxu1 %v7650_v44  ;;  %v8999_v28 = vld [vmem:[#allocation6 + $0x780] sm:$0xf0]  ;;  %v8075_v44 = vld [vmem:[#allocation6 + $0x87c] sm:$0xf0]  ;;  %v5168_v15 = vpop.f32.mrf.mxu0 }
 0x27d   :  { %v7958_v25 = vor.u32 %v8999_v28, %v7957_v39  ;;  %5306 = vmatpush.bf16.msra.mxu3 %v8122_v35  ;;  %v8078_v57 = vor.u32 %v9025_v43, %v8075_v44  ;;  %v7255_v35 = vld [vmem:[#allocation6 + $0x204] sm:$0xf0]  ;;  %v8906_v39 = vld [vmem:[#allocation6 + $0x49c] sm:$0xf]  ;;  %v5192_v28 = vpop.f32.mrf.mxu2  ;;  %v7781_v43 = vld [vmem:[#allocation6 + $0x5f8] sm:$0xf] }
 0x27e   :  { %5444 = vmatpush.bf16.msrb.mxu2 %v8002_v29  ;;  %v8818_v29 = vld [vmem:[#allocation6 + $0x1dc] sm:$0xf]  ;;  %v8955_v44 = vld [vmem:[#allocation6 + $0x620] sm:$0xf0]  ;;  %v9520_v21 = vadd.f32 %v5192_v28, %v9513_v33 }
 0x27f   :  { %v7258_v45 = vor.u32 %v8818_v29, %v7255_v35  ;;  %v7782_v11 = vor.u32 %v8955_v44, %v7781_v43  ;;  %v8081_v29 = vld [vmem:[#allocation6 + $0x858] sm:$0xf]  ;;  %v9031_v35 = vld [vmem:[#allocation6 + $0x880] sm:$0xf0]  ;;  %v8391_v43 = vld [vmem:[#allocation6 + $0xaec] sm:$0xf0] }
 0x280   :  { %5419 = vmatpush.bf16.msrb.mxu0 %v7254_v56  ;;  %5432 = vmatpush.bf16.msrb.mxu1 %v7606_v58  ;;  %v5181_v56 = vpop.f32.mrf.mxu1  ;;  %v8988_v58 = vld [vmem:[#allocation6 + $0x728] sm:$0xf0]  ;;  %v8774_v44 = vld [vmem:[#allocation6 + $0x7c] sm:$0xf] }
 0x281   :  { %v7914_v63 = vor.u32 %v8988_v58, %v7913_v47  ;;  %5307 = vmatpush.bf16.msra.mxu3 %v8078_v57  ;;  %v8895_v56 = vld [vmem:[#allocation6 + $0x444] sm:$0xf]  ;;  %v7563_v57 = vld [vmem:[#allocation6 + $0x46c] sm:$0xf0]  ;;  %v7737_v47 = vld [vmem:[#allocation6 + $0x5a0] sm:$0xf] }
 0x282   :  { %5445 = vmatpush.bf16.msrb.mxu2 %v7958_v25  ;;  %v7211_v25 = vld [vmem:[#allocation6 + $0x1ac] sm:$0xf0]  ;;  %v8944_v58 = vld [vmem:[#allocation6 + $0x5c8] sm:$0xf0]  ;;  %v7566_v30 = vor.u32 %v8895_v56, %v7563_v57 }
 0x283   :  { %v7214_v59 = vor.u32 %v8807_v34, %v7211_v25  ;;  %v8082_v34 = vor.u32 %v9031_v35, %v8081_v29  ;;  %v8983_v25 = vld [vmem:[#allocation6 + $0x704] sm:$0xf]  ;;  %v7915_v56 = vld [vmem:[#allocation6 + $0x72c] sm:$0xf0]  ;;  %v7613_v29 = vld [vmem:[#allocation6 + $0x4a0] sm:$0xf] }
 0x284   :  { %5420 = vmatpush.bf16.msrb.mxu0 %v7210_v0  ;;  %5433 = vmatpush.bf16.msrb.mxu1 %v7562_v50  ;;  %v7343_v0 = vld [vmem:[#allocation6 + $0x2b4] sm:$0xf0]  ;;  %v7869_v50 = vld [vmem:[#allocation6 + $0x6a8] sm:$0xf]  ;;  %v8912_v35 = vld [vmem:[#allocation6 + $0x4c8] sm:$0xf0] }
 0x285   :  { %5352 = vmatpush.bf16.msrb.mxu3 %v8390_v48  ;;  %v7346_v61 = vor.u32 %v8840_v32, %v7343_v0  ;;  %v7870_v14 = vor.u32 %v8977_v3, %v7869_v50  ;;  %v9522_v48 = vld [vmem:[#allocation7] sm:$0xff]  ;;  %v8796_v32 = vld [vmem:[#allocation6 + $0x12c] sm:$0xf]  ;;  %v7167_v0 = vld [vmem:[#allocation6 + $0x154] sm:$0xf0]  ;;  %v5194_v50 = vpop.f32.mrf.mxu2 }
 0x286   :  { %5308 = vmatmul.bf16.vlgmr.msra.gmra.mxu3 %v9474_v55  ;;  %5446 = vmatpush.bf16.msrb.mxu2 %v7914_v63  ;;  %v3191_v33 = vperm.slane %v9522_v48, 4  ;;  %v5049_v52 = vpop.f32.mrf.mxu3  ;;  %v7738_v63 = vor.u32 %v8944_v58, %v7737_v47  ;;  %v8884_v3 = vld [vmem:[#allocation6 + $0x3ec] sm:$0xf] }
 0x287   :  { %v5050_v1 = vadd.f32 %v5049_v52, %v9495_v7  ;;  %v9092_v58 = vld [vmem:[#allocation6 + $0xa6c] sm:$0xf]  ;;  %v7349_v52 = vld [vmem:[#allocation6 + $0x290] sm:$0xf] }
 0x288   :  { %5421 = vmatpush.bf16.msrb.mxu0 %v7166_v23  ;;  %5434 = vmatpush.bf16.msrb.mxu1 %v7518_v60  ;;  %v7825_v23 = vld [vmem:[#allocation6 + $0x650] sm:$0xf]  ;;  %v7302_v60 = vor.u32 %v8829_v20, %v7299_v18  ;;  %v9042_v18 = vld [vmem:[#allocation6 + $0x8d8] sm:$0xf0] }
 0x289   :  { %5353 = vmatpush.bf16.msrb.mxu3 %v8346_v27  ;;  %v7826_v22 = vor.u32 %v8966_v26, %v7825_v23  ;;  %v7519_v27 = vld [vmem:[#allocation6 + $0x414] sm:$0xf0]  ;;  %5573 = vst [vmem:[%s9597_s5] sm:$0xff] %v5050_v1  ;;  %v8125_v20 = vld [vmem:[#allocation6 + $0x8b0] sm:$0xf]  ;;  %v7123_v23 = vld [vmem:[#allocation6 + $0xfc] sm:$0xf0] }
 0x28a   :  { %5447 = vmatpush.bf16.msrb.mxu2 %v7870_v14  ;;  %v7170_v14 = vor.u32 %v8796_v32, %v7167_v0  ;;  %v7522_v19 = vor.u32 %v8884_v3, %v7519_v27  ;;  %v8873_v26 = vld [vmem:[#allocation6 + $0x394] sm:$0xf]  ;;  %v8934_v32 = vld [vmem:[#allocation6 + $0x578] sm:$0xf0]  ;;  %v8972_v0 = vld [vmem:[#allocation6 + $0x6ac] sm:$0xf] }
 0x28b   :  { %v7871_v1 = vld [vmem:[#allocation6 + $0x6d4] sm:$0xf0] }
 0x28c   :  { %5422 = vmatpush.bf16.msrb.mxu0 %v7122_v42  ;;  %5435 = vmatpush.bf16.msrb.mxu1 %v7474_v36  ;;  %v7607_v42 = vld [vmem:[#allocation6 + $0x4c4] sm:$0xf0]  ;;  %v8258_v36 = vor.u32 %v9075_v17, %v8257_v53  ;;  %v8126_v53 = vor.u32 %v9042_v18, %v8125_v20  ;;  %v8994_v17 = vld [vmem:[#allocation6 + $0x75c] sm:$0xf]  ;;  %v8835_v20 = vld [vmem:[#allocation6 + $0x260] sm:$0xf0] }
 0x28d   :  { %5354 = vmatpush.bf16.msrb.mxu3 %v8302_v24  ;;  %v7610_v15 = vor.u32 %v8906_v39, %v7607_v42  ;;  %v7475_v24 = vld [vmem:[#allocation6 + $0x3bc] sm:$0xf0]  ;;  %v9103_v39 = vld [vmem:[#allocation6 + $0xac4] sm:$0xf]  ;;  %v7657_v18 = vld [vmem:[#allocation6 + $0x4f8] sm:$0xf] }
 0x28e   :  { %5448 = vmatpush.bf16.msrb.mxu2 %v7826_v22  ;;  %v7126_v22 = vor.u32 %v8785_v38, %v7123_v23  ;;  %v5051_v28 = vpop.f32.mrf.mxu3  ;;  %v7478_v42 = vor.u32 %v8873_v26, %v7475_v24  ;;  %v8394_v57 = vor.u32 %v9103_v39, %v8391_v43  ;;  %v8961_v38 = vld [vmem:[#allocation6 + $0x654] sm:$0xf]  ;;  %v7827_v23 = vld [vmem:[#allocation6 + $0x67c] sm:$0xf0]  ;;  %v9070_v24 = vld [vmem:[#allocation6 + $0x9bc] sm:$0xf] }
 0x28f   :  { %v8950_v39 = vld [vmem:[#allocation6 + $0x5fc] sm:$0xf]  ;;  %v7783_v28 = vld [vmem:[#allocation6 + $0x624] sm:$0xf0] }
 0x290   :  { %5423 = vmatpush.bf16.msrb.mxu0 %v7078_v9  ;;  %5436 = vmatpush.bf16.msrb.mxu1 %v7430_v5  ;;  %v8214_v9 = vor.u32 %v9064_v51, %v8213_v40  ;;  %v8169_v5 = vld [vmem:[#allocation6 + $0x908] sm:$0xf]  ;;  %v8862_v40 = vld [vmem:[#allocation6 + $0x33c] sm:$0xf] }
 0x291   :  { %5355 = vmatpush.bf16.msrb.mxu3 %v8258_v36  ;;  %v8170_v6 = vor.u32 %v9053_v10, %v8169_v5  ;;  %v7079_v36 = vld [vmem:[#allocation6 + $0xa4] sm:$0xf0]  ;;  %v7387_v5 = vld [vmem:[#allocation6 + $0x30c] sm:$0xf0]  ;;  %v7918_v10 = vor.u32 %v8983_v25, %v7915_v56  ;;  %v8813_v25 = vld [vmem:[#allocation6 + $0x1b0] sm:$0xf0] }
 0x292   :  { %5449 = vmatpush.bf16.msrb.mxu2 %v7782_v11  ;;  %v7431_v51 = vld [vmem:[#allocation6 + $0x364] sm:$0xf0]  ;;  %v7082_v47 = vor.u32 %v8774_v44, %v7079_v36 }
 0x293   :  { %v7569_v56 = vld [vmem:[#allocation6 + $0x448] sm:$0xf] }
 0x294   :  { %5424 = vmatpush.bf16.msrb.mxu0 %v7034_v12  ;;  %5437 = vmatpush.bf16.msrb.mxu1 %v7386_v4  ;;  %v5218_v2 = vpop.f32.mrf.mxu0  ;;  %v8050_v12 = vor.u32 %v9016_v13, %v8047_v46  ;;  %v7434_v13 = vor.u32 %v8862_v40, %v7431_v51  ;;  %v7035_v46 = vld [vmem:[#allocation6 + $0x4c] sm:$0xf0]  ;;  %v9059_v40 = vld [vmem:[#allocation6 + $0x964] sm:$0xf] }
 0x295   :  { %v5219_v4 = vadd.f32 %v5218_v2, %v3191_v33  ;;  %5356 = vmatpush.bf16.msrb.mxu3 %v8214_v9  ;;  %v8347_v33 = vld [vmem:[#allocation6 + $0xa94] sm:$0xf0]  ;;  %v8763_v9 = vld [vmem:[#allocation6 + $0x24] sm:$0xf]  ;;  %v8215_v51 = vld [vmem:[#allocation6 + $0x98c] sm:$0xf0] }
 0x296   :  { %5450 = vmatpush.bf16.msrb.mxu2 %v7738_v63  ;;  %v7701_v63 = vld [vmem:[#allocation6 + $0x550] sm:$0xf]  ;;  %v8350_v2 = vor.u32 %v9092_v58, %v8347_v33  ;;  %v7038_v50 = vor.u32 %v8763_v9, %v7035_v46  ;;  %v5101_v3 = vpop.f32.mrf.mxu3  ;;  %v8218_v33 = vor.u32 %v9059_v40, %v8215_v51 }
 0x297   :  { %5425 = vmatmul.bf16.vlgmr.msrb.gmra.mxu0 %v9413_v31  ;;  %5438 = vmatmul.bf16.vlgmr.msrb.gmra.mxu1 %v9415_v41  ;;  %v7739_v58 = vld [vmem:[#allocation6 + $0x5cc] sm:$0xf0] }
 0x298   :  { %5469 = vmatpush.bf16.msra.mxu0 %v7346_v61  ;;  %5482 = vmatpush.bf16.msra.mxu1 %v7698_v8  ;;  %v5231_v61 = vpop.f32.mrf.mxu1  ;;  %v8003_v8 = vld [vmem:[#allocation6 + $0x7dc] sm:$0xf0]  ;;  %v8053_v9 = vld [vmem:[#allocation6 + $0x810] sm:$0xf] }
 0x299   :  { %v9529_v7 = vadd.f32 %v5231_v61, %v5219_v4  ;;  %5357 = vmatpush.bf16.msrb.mxu3 %v8170_v6  ;;  %5451 = vmatmul.bf16.vlgmr.msrb.gmra.mxu2 %v9444_v16  ;;  %v9081_v4 = vld [vmem:[#allocation6 + $0xa14] sm:$0xf]  ;;  %v8303_v61 = vld [vmem:[#allocation6 + $0xa3c] sm:$0xf0]  ;;  %v5102_v6 = vadd.f32 %v5101_v3, %v9503_v49 }
 0x29a   :  { %5495 = vmatpush.bf16.msra.mxu2 %v8050_v12  ;;  %v8306_v26 = vor.u32 %v9081_v4, %v8303_v61 }
 0x29b   :  { %5574 = vst [vmem:[%s9597_s5 + $0x8] sm:$0xff] %v5102_v6 }
 0x29c   :  { %5470 = vmatpush.bf16.msra.mxu0 %v7302_v60  ;;  %5483 = vmatpush.bf16.msra.mxu1 %v7654_v62  ;;  %v8006_v60 = vor.u32 %v9005_v37, %v8003_v8  ;;  %v7959_v62 = vld [vmem:[#allocation6 + $0x784] sm:$0xf0]  ;;  %v7702_v37 = vor.u32 %v8934_v32, %v7701_v63  ;;  %v7874_v8 = vor.u32 %v8972_v0, %v7871_v1  ;;  %v8802_v63 = vld [vmem:[#allocation6 + $0x158] sm:$0xf0]  ;;  %v7525_v32 = vld [vmem:[#allocation6 + $0x3f0] sm:$0xf] }
 0x29d   :  { %5358 = vmatpush.bf16.msrb.mxu3 %v8126_v53  ;;  %v8890_v0 = vld [vmem:[#allocation6 + $0x418] sm:$0xf0] }
 0x29e   :  { %5496 = vmatpush.bf16.msra.mxu2 %v8006_v60  ;;  %v8259_v60 = vld [vmem:[#allocation6 + $0x9e4] sm:$0xf0]  ;;  %v5103_v36 = vpop.f32.mrf.mxu3 }
 0x29f   :  { %v8262_v43 = vor.u32 %v9070_v24, %v8259_v60  ;;  %v8868_v36 = vld [vmem:[#allocation6 + $0x368] sm:$0xf0] }
 0x2a0   :  { %5471 = vmatpush.bf16.msra.mxu0 %v7258_v45  ;;  %5484 = vmatpush.bf16.msra.mxu1 %v7610_v15  ;;  %v5220_v45 = vpop.f32.mrf.mxu0  ;;  %v7962_v15 = vor.u32 %v8994_v17, %v7959_v62  ;;  %v5233_v11 = vpop.f32.mrf.mxu1  ;;  %v7830_v17 = vor.u32 %v8961_v38, %v7827_v23  ;;  %v7261_v62 = vld [vmem:[#allocation6 + $0x1e0] sm:$0xf]  ;;  %v8791_v38 = vld [vmem:[#allocation6 + $0x100] sm:$0xf0] }
 0x2a1   :  { %5359 = vmatpush.bf16.msrb.mxu3 %v8082_v34  ;;  %v7786_v11 = vor.u32 %v8950_v39, %v7783_v28  ;;  %v7217_v34 = vld [vmem:[#allocation6 + $0x188] sm:$0xf]  ;;  %v9109_v39 = vld [vmem:[#allocation6 + $0xaf0] sm:$0xf0]  ;;  %v7085_v28 = vld [vmem:[#allocation6 + $0x80] sm:$0xf] }
 0x2a2   :  { %5497 = vmatpush.bf16.msra.mxu2 %v7962_v15  ;;  %v7614_v15 = vor.u32 %v8912_v35, %v7613_v29  ;;  %v7218_v46 = vor.u32 %v8813_v25, %v7217_v34  ;;  %v8397_v29 = vld [vmem:[#allocation6 + $0xac8] sm:$0xf] }
 0x2a4   :  { %5472 = vmatpush.bf16.msra.mxu0 %v7214_v59  ;;  %5485 = vmatpush.bf16.msra.mxu1 %v7566_v30  ;;  %v8851_v59 = vld [vmem:[#allocation6 + $0x2e4] sm:$0xf]  ;;  %v8846_v30 = vld [vmem:[#allocation6 + $0x2b8] sm:$0xf0] }
 0x2a5   :  { %5404 = vmatpush.bf16.msra.mxu3 %v8394_v57  ;;  %v7390_v27 = vor.u32 %v8851_v59, %v7387_v5  ;;  %v7350_v12 = vor.u32 %v8846_v30, %v7349_v52  ;;  %v8901_v57 = vld [vmem:[#allocation6 + $0x470] sm:$0xf0]  ;;  %v9048_v59 = vld [vmem:[#allocation6 + $0x90c] sm:$0xf]  ;;  %v8171_v5 = vld [vmem:[#allocation6 + $0x934] sm:$0xf0] }
 0x2a6   :  { %5360 = vmatmul.bf16.vlgmr.msrb.gmra.mxu3 %v9474_v55  ;;  %5498 = vmatpush.bf16.msra.mxu2 %v7918_v10  ;;  %v7570_v10 = vor.u32 %v8901_v57, %v7569_v56  ;;  %v7173_v30 = vld [vmem:[#allocation6 + $0x130] sm:$0xf]  ;;  %v8174_v3 = vor.u32 %v9048_v59, %v8171_v5  ;;  %v8398_v56 = vor.u32 %v9109_v39, %v8397_v29  ;;  %v8133_v29 = vld [vmem:[#allocation6 + $0x8b8] sm:$0xf] }
 0x2a7   :  { %v7877_v5 = vld [vmem:[#allocation6 + $0x6b0] sm:$0xf] }
 0x2a8   :  { %5473 = vmatpush.bf16.msra.mxu0 %v7170_v14  ;;  %5486 = vmatpush.bf16.msra.mxu1 %v7522_v19  ;;  %v7305_v14 = vld [vmem:[#allocation6 + $0x238] sm:$0xf]  ;;  %v8923_v19 = vld [vmem:[#allocation6 + $0x520] sm:$0xf0] }
 0x2a9   :  { %5405 = vmatpush.bf16.msra.mxu3 %v8350_v2  ;;  %v7306_v49 = vor.u32 %v8835_v20, %v7305_v14  ;;  %v7658_v53 = vor.u32 %v8923_v19, %v7657_v18  ;;  %v5153_v6 = vpop.f32.mrf.mxu3  ;;  %v8127_v14 = vld [vmem:[#allocation6 + $0x8dc] sm:$0xf0]  ;;  %v7526_v18 = vor.u32 %v8890_v0, %v7525_v32  ;;  %v7129_v19 = vld [vmem:[#allocation6 + $0xd8] sm:$0xf]  ;;  %v9087_v0 = vld [vmem:[#allocation6 + $0xa40] sm:$0xf0] }
 0x2aa   :  { %5499 = vmatpush.bf16.msra.mxu2 %v7874_v8  ;;  %v9037_v8 = vld [vmem:[#allocation6 + $0x8b4] sm:$0xf]  ;;  %v5154_v20 = vadd.f32 %v5153_v6, %v9510_v54  ;;  %v7130_v54 = vor.u32 %v8791_v38, %v7129_v19  ;;  %v8309_v32 = vld [vmem:[#allocation6 + $0xa18] sm:$0xf]  ;;  %v7789_v6 = vld [vmem:[#allocation6 + $0x600] sm:$0xf] }
 0x2ab   :  { %v8130_v60 = vor.u32 %v9037_v8, %v8127_v14  ;;  %v7745_v38 = vld [vmem:[#allocation6 + $0x5a8] sm:$0xf] }
 0x2ac   :  { %5474 = vmatpush.bf16.msra.mxu0 %v7126_v22  ;;  %5487 = vmatpush.bf16.msra.mxu1 %v7478_v42  ;;  %v8824_v22 = vld [vmem:[#allocation6 + $0x208] sm:$0xf0]  ;;  %v5244_v42 = vpop.f32.mrf.mxu2  ;;  %5575 = vst [vmem:[%s9597_s5 + $0x10] sm:$0xff] %v5154_v20  ;;  %v8221_v20 = vld [vmem:[#allocation6 + $0x968] sm:$0xf] }
 0x2ad   :  { %5406 = vmatpush.bf16.msra.mxu3 %v8306_v26  ;;  %v9540_v44 = vadd.f32 %v5244_v42, %v9529_v7  ;;  %v7262_v45 = vor.u32 %v8824_v22, %v7261_v62  ;;  %v9022_v7 = vld [vmem:[#allocation6 + $0x838] sm:$0xf0]  ;;  %v7481_v26 = vld [vmem:[#allocation6 + $0x398] sm:$0xf]  ;;  %v8083_v22 = vld [vmem:[#allocation6 + $0x884] sm:$0xf0] }
 0x2ae   :  { %5500 = vmatpush.bf16.msra.mxu2 %v7830_v17  ;;  %v8054_v1 = vor.u32 %v9022_v7, %v8053_v9  ;;  %v9000_v17 = vld [vmem:[#allocation6 + $0x788] sm:$0xf0]  ;;  %v9026_v62 = vld [vmem:[#allocation6 + $0x85c] sm:$0xf]  ;;  %v7041_v9 = vld [vmem:[#allocation6 + $0x28] sm:$0xf] }
 0x2af   :  { %v8780_v42 = vld [vmem:[#allocation6 + $0xa8] sm:$0xf0]  ;;  %v8086_v51 = vor.u32 %v9026_v62, %v8083_v22  ;;  %v8769_v7 = vld [vmem:[#allocation6 + $0x50] sm:$0xf0] }
 0x2b0   :  { %5475 = vmatpush.bf16.msra.mxu0 %v7082_v47  ;;  %5488 = vmatpush.bf16.msra.mxu1 %v7434_v13  ;;  %v8939_v47 = vld [vmem:[#allocation6 + $0x5a4] sm:$0xf]  ;;  %v3192_v13 = vperm.slane %v9522_v48, 5  ;;  %v7086_v57 = vor.u32 %v8780_v42, %v7085_v28 }
 0x2b1   :  { %5407 = vmatpush.bf16.msra.mxu3 %v8262_v43  ;;  %v7742_v52 = vor.u32 %v8939_v47, %v7739_v58  ;;  %v7437_v43 = vld [vmem:[#allocation6 + $0x340] sm:$0xf]  ;;  %v5155_v25 = vpop.f32.mrf.mxu3  ;;  %v8353_v47 = vld [vmem:[#allocation6 + $0xa70] sm:$0xf] }
 0x2b2   :  { %5501 = vmatpush.bf16.msra.mxu2 %v7786_v11  ;;  %v8989_v11 = vld [vmem:[#allocation6 + $0x730] sm:$0xf0]  ;;  %v7438_v58 = vor.u32 %v8868_v36, %v7437_v43  ;;  %v8089_v43 = vld [vmem:[#allocation6 + $0x860] sm:$0xf]  ;;  %v9032_v36 = vld [vmem:[#allocation6 + $0x888] sm:$0xf0] }
 0x2b3   :  { %v9093_v25 = vld [vmem:[#allocation6 + $0xa74] sm:$0xf] }
 0x2b4   :  { %5476 = vmatpush.bf16.msra.mxu0 %v7038_v50  ;;  %5489 = vmatpush.bf16.msra.mxu1 %v7390_v27  ;;  %v5270_v2 = vpop.f32.mrf.mxu0  ;;  %v5246_v50 = vpop.f32.mrf.mxu2  ;;  %v8009_v27 = vld [vmem:[#allocation6 + $0x7b8] sm:$0xf] }
 0x2b5   :  { %5408 = vmatpush.bf16.msra.mxu3 %v8218_v33  ;;  %v5271_v4 = vadd.f32 %v5270_v2, %v3192_v13  ;;  %v5283_v61 = vpop.f32.mrf.mxu1  ;;  %v9098_v33 = vld [vmem:[#allocation6 + $0xa98] sm:$0xf0]  ;;  %v7393_v13 = vld [vmem:[#allocation6 + $0x2e8] sm:$0xf]  ;;  %v7833_v2 = vld [vmem:[#allocation6 + $0x658] sm:$0xf] }
 0x2b6   :  { %5502 = vmatpush.bf16.msra.mxu2 %v7742_v52  ;;  %v8354_v52 = vor.u32 %v9098_v33, %v8353_v47  ;;  %v8967_v50 = vld [vmem:[#allocation6 + $0x680] sm:$0xf0]  ;;  %v9082_v47 = vld [vmem:[#allocation6 + $0xa1c] sm:$0xf] }
 0x2b7   :  { %5477 = vmatmul.bf16.vlgmr.msra.gmra.mxu0 %v9413_v31  ;;  %5490 = vmatmul.bf16.vlgmr.msra.gmra.mxu1 %v9415_v41  ;;  %v9544_v23 = vadd.f32 %v5283_v61, %v5271_v4  ;;  %v7834_v4 = vor.u32 %v8967_v50, %v7833_v2  ;;  %v9071_v33 = vld [vmem:[#allocation6 + $0x9c4] sm:$0xf] }
 0x2b8   :  { %5521 = vmatpush.bf16.msrb.mxu0 %v7350_v12  ;;  %5534 = vmatpush.bf16.msrb.mxu1 %v7702_v37  ;;  %v9011_v12 = vld [vmem:[#allocation6 + $0x7e0] sm:$0xf0]  ;;  %v7174_v37 = vor.u32 %v8802_v63, %v7173_v30  ;;  %v7042_v30 = vor.u32 %v8769_v7, %v7041_v9  ;;  %v8267_v9 = vld [vmem:[#allocation6 + $0x9ec] sm:$0xf0] }
 0x2b9   :  { %v8010_v24 = vor.u32 %v9011_v12, %v8009_v27  ;;  %5409 = vmatpush.bf16.msra.mxu3 %v8174_v3  ;;  %5503 = vmatmul.bf16.vlgmr.msra.gmra.mxu2 %v9444_v16  ;;  %v8310_v3 = vor.u32 %v9087_v0, %v8309_v32  ;;  %v8265_v27 = vld [vmem:[#allocation6 + $0x9c0] sm:$0xf]  ;;  %v9076_v12 = vld [vmem:[#allocation6 + $0x9e8] sm:$0xf0] }
 0x2ba   :  { %5547 = vmatpush.bf16.msrb.mxu2 %v8054_v1  ;;  %v8266_v14 = vor.u32 %v9076_v12, %v8265_v27  ;;  %v9038_v27 = vld [vmem:[#allocation6 + $0x8bc] sm:$0xf]  ;;  %v8135_v12 = vld [vmem:[#allocation6 + $0x8e4] sm:$0xf0] }
 0x2bc   :  { %5522 = vmatpush.bf16.msrb.mxu0 %v7306_v49  ;;  %5535 = vmatpush.bf16.msrb.mxu1 %v7658_v53  ;;  %v8879_v49 = vld [vmem:[#allocation6 + $0x3c0] sm:$0xf0]  ;;  %v7965_v53 = vld [vmem:[#allocation6 + $0x760] sm:$0xf]  ;;  %v5272_v40 = vpop.f32.mrf.mxu0  ;;  %v5296_v61 = vpop.f32.mrf.mxu2 }
 0x2bd   :  { %v7482_v35 = vor.u32 %v8879_v49, %v7481_v26  ;;  %5410 = vmatpush.bf16.msra.mxu3 %v8130_v60  ;;  %v5285_v34 = vpop.f32.mrf.mxu1  ;;  %v9554_v8 = vadd.f32 %v5296_v61, %v9544_v23  ;;  %v8945_v26 = vld [vmem:[#allocation6 + $0x5d0] sm:$0xf0]  ;;  %v9054_v60 = vld [vmem:[#allocation6 + $0x938] sm:$0xf0]  ;;  %v8399_v40 = vld [vmem:[#allocation6 + $0xaf4] sm:$0xf0] }
 0x2be   :  { %5548 = vmatpush.bf16.msrb.mxu2 %v8010_v24  ;;  %v8177_v24 = vld [vmem:[#allocation6 + $0x910] sm:$0xf] }
 0x2bf   :  { %v8178_v23 = vor.u32 %v9054_v60, %v8177_v24  ;;  %v9099_v24 = vld [vmem:[#allocation6 + $0xaa0] sm:$0xf0]  ;;  %v8317_v60 = vld [vmem:[#allocation6 + $0xa20] sm:$0xf] }
 0x2c0   :  { %5523 = vmatpush.bf16.msrb.mxu0 %v7262_v45  ;;  %5536 = vmatpush.bf16.msrb.mxu1 %v7614_v15  ;;  %v7966_v45 = vor.u32 %v9000_v17, %v7965_v53  ;;  %v7921_v15 = vld [vmem:[#allocation6 + $0x708] sm:$0xf]  ;;  %v7746_v53 = vor.u32 %v8945_v26, %v7745_v38 }
 0x2c1   :  { %v7922_v59 = vor.u32 %v8989_v11, %v7921_v15  ;;  %5411 = vmatpush.bf16.msra.mxu3 %v8086_v51  ;;  %v8090_v15 = vor.u32 %v9032_v36, %v8089_v43  ;;  %v8185_v43 = vld [vmem:[#allocation6 + $0x918] sm:$0xf]  ;;  %v9055_v36 = vld [vmem:[#allocation6 + $0x940] sm:$0xf0] }
 0x2c2   :  { %5549 = vmatpush.bf16.msrb.mxu2 %v7966_v45  ;;  %v9104_v45 = vld [vmem:[#allocation6 + $0xacc] sm:$0xf] }
 0x2c4   :  { %5524 = vmatpush.bf16.msrb.mxu0 %v7218_v46  ;;  %5537 = vmatpush.bf16.msrb.mxu1 %v7570_v10  ;;  %v8857_v46 = vld [vmem:[#allocation6 + $0x310] sm:$0xf0]  ;;  %v8978_v10 = vld [vmem:[#allocation6 + $0x6d8] sm:$0xf0] }
 0x2c5   :  { %5456 = vmatpush.bf16.msrb.mxu3 %v8398_v56  ;;  %v7394_v63 = vor.u32 %v8857_v46, %v7393_v13  ;;  %v7878_v1 = vor.u32 %v8978_v10, %v7877_v5  ;;  %v8355_v56 = vld [vmem:[#allocation6 + $0xa9c] sm:$0xf0]  ;;  %v8270_v46 = vor.u32 %v9071_v33, %v8267_v9  ;;  %v8223_v5 = vld [vmem:[#allocation6 + $0x994] sm:$0xf0] }
 0x2c6   :  { %5412 = vmatmul.bf16.vlgmr.msra.gmra.mxu3 %v9474_v55  ;;  %5550 = vmatpush.bf16.msrb.mxu2 %v7922_v59  ;;  %v9060_v59 = vld [vmem:[#allocation6 + $0x96c] sm:$0xf] }
 0x2c7   :  { %v8226_v10 = vor.u32 %v9060_v59, %v8223_v5 }
 0x2c8   :  { %5525 = vmatpush.bf16.msrb.mxu0 %v7174_v37  ;;  %5538 = vmatpush.bf16.msrb.mxu1 %v7526_v18  ;;  %v8956_v37 = vld [vmem:[#allocation6 + $0x628] sm:$0xf0]  ;;  %v9065_v18 = vld [vmem:[#allocation6 + $0x990] sm:$0xf0] }
 0x2c9   :  { %5457 = vmatpush.bf16.msrb.mxu3 %v8354_v52  ;;  %v7790_v19 = vor.u32 %v8956_v37, %v7789_v6  ;;  %v8222_v49 = vor.u32 %v9065_v18, %v8221_v20  ;;  %v5205_v22 = vpop.f32.mrf.mxu3  ;;  %v3194_v52 = vperm.slane %v9522_v48, 7  ;;  %v9027_v6 = vld [vmem:[#allocation6 + $0x864] sm:$0xf]  ;;  %v8091_v37 = vld [vmem:[#allocation6 + $0x88c] sm:$0xf0] }
 0x2ca   :  { %5551 = vmatpush.bf16.msrb.mxu2 %v7878_v1  ;;  %v5206_v39 = vadd.f32 %v5205_v22, %v9520_v21  ;;  %v8402_v21 = vor.u32 %v9104_v45, %v8399_v40  ;;  %v9110_v20 = vld [vmem:[#allocation6 + $0xaf8] sm:$0xf0] }
 0x2cc   :  { %5526 = vmatpush.bf16.msrb.mxu0 %v7130_v54  ;;  %5539 = vmatpush.bf16.msrb.mxu1 %v7482_v35  ;;  %v9043_v35 = vld [vmem:[#allocation6 + $0x8e0] sm:$0xf0]  ;;  %5576 = vst [vmem:[%s9597_s5 + $0x18] sm:$0xff] %v5206_v39  ;;  %v3184_v39 = vld [vmem:[#allocation7 + $0x8] sm:$0x7] }
 0x2cd   :  { %5458 = vmatpush.bf16.msrb.mxu3 %v8310_v3  ;;  %v8134_v42 = vor.u32 %v9043_v35, %v8133_v29  ;;  %v8229_v29 = vld [vmem:[#allocation6 + $0x970] sm:$0xf]  ;;  %v9066_v35 = vld [vmem:[#allocation6 + $0x998] sm:$0xf0] }
 0x2ce   :  { %5552 = vmatpush.bf16.msrb.mxu2 %v7834_v4 }
 0x2d0   :  { %5527 = vmatpush.bf16.msrb.mxu0 %v7086_v57  ;;  %5540 = vmatpush.bf16.msrb.mxu1 %v7438_v58  ;;  %v8358_v57 = vor.u32 %v9093_v25, %v8355_v56  ;;  %v8311_v58 = vld [vmem:[#allocation6 + $0xa44] sm:$0xf0]  ;;  %v9044_v25 = vld [vmem:[#allocation6 + $0x8e8] sm:$0xf0] }
 0x2d1   :  { %5459 = vmatpush.bf16.msrb.mxu3 %v8266_v14  ;;  %v5207_v34 = vpop.f32.mrf.mxu3  ;;  %v8405_v14 = vld [vmem:[#allocation6 + $0xad0] sm:$0xf] }
 0x2d2   :  { %5553 = vmatpush.bf16.msrb.mxu2 %v7790_v19  ;;  %v8094_v19 = vor.u32 %v9027_v6, %v8091_v37 }
 0x2d4   :  { %5528 = vmatpush.bf16.msrb.mxu0 %v7042_v30  ;;  %5541 = vmatpush.bf16.msrb.mxu1 %v7394_v63  ;;  %v5322_v17 = vpop.f32.mrf.mxu0  ;;  %v5335_v62 = vpop.f32.mrf.mxu1  ;;  %v9049_v30 = vld [vmem:[#allocation6 + $0x914] sm:$0xf]  ;;  %v8179_v63 = vld [vmem:[#allocation6 + $0x93c] sm:$0xf0] }
 0x2d5   :  { %5460 = vmatpush.bf16.msrb.mxu3 %v8222_v49  ;;  %v8182_v1 = vor.u32 %v9049_v30, %v8179_v63  ;;  %v8406_v49 = vor.u32 %v9110_v20, %v8405_v14 }
 0x2d6   :  { %5554 = vmatpush.bf16.msrb.mxu2 %v7746_v53  ;;  %v9088_v53 = vld [vmem:[#allocation6 + $0xa48] sm:$0xf0] }
 0x2d7   :  { %5529 = vmatmul.bf16.vlgmr.msrb.gmra.mxu0 %v9413_v31  ;;  %5542 = vmatmul.bf16.vlgmr.msrb.gmra.mxu1 %v9415_v41  ;;  %v3193_v31 = vperm.slane %v9522_v48, 6  ;;  %v5298_v41 = vpop.f32.mrf.mxu2  ;;  %v8138_v48 = vor.u32 %v9038_v27, %v8135_v12  ;;  %v3197_v12 = vperm.slane %v3184_v39, 2 }
 0x2d8   :  { %v8318_v41 = vor.u32 %v9088_v53, %v8317_v60 }
 0x2d9   :  { %v5323_v54 = vadd.f32 %v5322_v17, %v3193_v31  ;;  %5461 = vmatpush.bf16.msrb.mxu3 %v8178_v23  ;;  %5555 = vmatmul.bf16.vlgmr.msrb.gmra.mxu2 %v9444_v16  ;;  %v8314_v16 = vor.u32 %v9082_v47, %v8311_v58  ;;  %v8361_v31 = vld [vmem:[#allocation6 + $0xa78] sm:$0xf]  ;;  %v8273_v17 = vld [vmem:[#allocation6 + $0x9c8] sm:$0xf]  ;;  %v9077_v23 = vld [vmem:[#allocation6 + $0x9f0] sm:$0xf0] }
 0x2da   :  { %v8274_v22 = vor.u32 %v9077_v23, %v8273_v17  ;;  %v8097_v58 = vld [vmem:[#allocation6 + $0x868] sm:$0xf] }
 0x2db   :  { %v5336_v28 = vadd.f32 %v5335_v62, %v5323_v54 }
 0x2dc   :  { %v5324_v51 = vpop.f32.mrf.mxu0  ;;  %v5337_v11 = vpop.f32.mrf.mxu1 }
 0x2dd   :  { %5462 = vmatpush.bf16.msrb.mxu3 %v8134_v42  ;;  %v3195_v42 = vperm.slane %v3184_v39, 0  ;;  %v8186_v51 = vor.u32 %v9055_v36, %v8185_v43 }
 0x2df   :  { %v5348_v7 = vpop.f32.mrf.mxu2 }
 0x2e0   :  { %v9563_v13 = vadd.f32 %v5348_v7, %v5336_v28  ;;  %v8230_v28 = vor.u32 %v9066_v35, %v8229_v29 }
 0x2e1   :  { %5463 = vmatpush.bf16.msrb.mxu3 %v8090_v15 }
 0x2e4   :  { %5464 = vmatmul.bf16.vlgmr.msrb.gmra.mxu3 %v9474_v55 }
 0x2e5   :  { %5508 = vmatpush.bf16.msra.mxu3 %v8402_v21  ;;  %v8141_v21 = vld [vmem:[#allocation6 + $0x8c0] sm:$0xf] }
 0x2e6   :  { %v8142_v47 = vor.u32 %v9044_v25, %v8141_v21 }
 0x2e7   :  { %v5350_v32 = vpop.f32.mrf.mxu2 }
 0x2e9   :  { %5509 = vmatpush.bf16.msra.mxu3 %v8358_v57  ;;  %v5257_v3 = vpop.f32.mrf.mxu3 }
 0x2ea   :  { %v5258_v4 = vadd.f32 %v5257_v3, %v9540_v44  ;;  %v8362_v44 = vor.u32 %v9099_v24, %v8361_v31 }
 0x2ec   :  { %5577 = vst [vmem:[%s9597_s5 + $0x20] sm:$0xff] %v5258_v4 }
 0x2ed   :  { %5510 = vmatpush.bf16.msra.mxu3 %v8314_v16  ;;  %v9033_v16 = vld [vmem:[#allocation6 + $0x890] sm:$0xf0] }
 0x2ee   :  { %v8098_v9 = vor.u32 %v9033_v16, %v8097_v58 }
 0x2f1   :  { %5511 = vmatpush.bf16.msra.mxu3 %v8270_v46  ;;  %v5259_v26 = vpop.f32.mrf.mxu3 }
 0x2f4   :  { %v5374_v0 = vpop.f32.mrf.mxu0  ;;  %v5387_v50 = vpop.f32.mrf.mxu1 }
 0x2f5   :  { %5512 = vmatpush.bf16.msra.mxu3 %v8226_v10  ;;  %v5375_v2 = vadd.f32 %v5374_v0, %v3194_v52 }
 0x2f7   :  { %v5388_v61 = vadd.f32 %v5387_v50, %v5375_v2 }
 0x2f9   :  { %5513 = vmatpush.bf16.msra.mxu3 %v8182_v1 }
 0x2fc   :  { %v5376_v18 = vpop.f32.mrf.mxu0  ;;  %v5389_v38 = vpop.f32.mrf.mxu1 }
 0x2fd   :  { %5514 = vmatpush.bf16.msra.mxu3 %v8138_v48  ;;  %v5400_v54 = vpop.f32.mrf.mxu2 }
 0x2fe   :  { %v5401_v62 = vadd.f32 %v5400_v54, %v5388_v61 }
 0x301   :  { %5515 = vmatpush.bf16.msra.mxu3 %v8094_v19 }
 0x304   :  { %5516 = vmatmul.bf16.vlgmr.msra.gmra.mxu3 %v9474_v55 }
 0x305   :  { %5560 = vmatpush.bf16.msrb.mxu3 %v8406_v49  ;;  %v5402_v45 = vpop.f32.mrf.mxu2 }
 0x309   :  { %5561 = vmatpush.bf16.msrb.mxu3 %v8362_v44  ;;  %v5309_v34 = vpop.f32.mrf.mxu3 }
 0x30a   :  { %v5310_v56 = vadd.f32 %v5309_v34, %v9554_v8  ;;  %v3196_v8 = vperm.slane %v3184_v39, 1 }
 0x30c   :  { %5578 = vst [vmem:[%s9597_s5 + $0x28] sm:$0xff] %v5310_v56 }
 0x30d   :  { %5562 = vmatpush.bf16.msrb.mxu3 %v8318_v41 }
 0x311   :  { %5563 = vmatpush.bf16.msrb.mxu3 %v8274_v22  ;;  %v5311_v46 = vpop.f32.mrf.mxu3 }
 0x314   :  { %v5426_v40 = vpop.f32.mrf.mxu0  ;;  %v5439_v11 = vpop.f32.mrf.mxu1 }
 0x315   :  { %5564 = vmatpush.bf16.msrb.mxu3 %v8230_v28  ;;  %v5427_v15 = vadd.f32 %v5426_v40, %v3195_v42 }
 0x317   :  { %v5440_v57 = vadd.f32 %v5439_v11, %v5427_v15 }
 0x319   :  { %5565 = vmatpush.bf16.msrb.mxu3 %v8186_v51 }
 0x31c   :  { %v5428_v33 = vpop.f32.mrf.mxu0  ;;  %v5441_v7 = vpop.f32.mrf.mxu1 }
 0x31d   :  { %5566 = vmatpush.bf16.msrb.mxu3 %v8142_v47  ;;  %v5452_v59 = vpop.f32.mrf.mxu2 }
 0x31e   :  { %v5453_v5 = vadd.f32 %v5452_v59, %v5440_v57 }
 0x321   :  { %5567 = vmatpush.bf16.msrb.mxu3 %v8098_v9 }
 0x324   :  { %5568 = vmatmul.bf16.vlgmr.msrb.gmra.mxu3 %v9474_v55 }
 0x325   :  { %v5454_v10 = vpop.f32.mrf.mxu2 }
 0x329   :  { %v5361_v32 = vpop.f32.mrf.mxu3 }
 0x32a   :  { %v5362_v0 = vadd.f32 %v5361_v32, %v9563_v13 }
 0x32c   :  { %5579 = vst [vmem:[%s9597_s5 + $0x30] sm:$0xff] %v5362_v0 }
 0x331   :  { %v5363_v3 = vpop.f32.mrf.mxu3 }
 0x334   :  { %v5478_v52 = vpop.f32.mrf.mxu0  ;;  %v5491_v63 = vpop.f32.mrf.mxu1 }
 0x335   :  { %v5479_v30 = vadd.f32 %v5478_v52, %v3196_v8 }
 0x337   :  { %v5492_v1 = vadd.f32 %v5491_v63, %v5479_v30 }
 0x33c   :  { %v5480_v2 = vpop.f32.mrf.mxu0  ;;  %v5493_v50 = vpop.f32.mrf.mxu1 }
 0x33d   :  { %v5504_v27 = vpop.f32.mrf.mxu2 }
 0x33e   :  { %v5505_v55 = vadd.f32 %v5504_v27, %v5492_v1 }
 0x345   :  { %v5506_v4 = vpop.f32.mrf.mxu2 }
 0x349   :  { %v5413_v37 = vpop.f32.mrf.mxu3 }
 0x34a   :  { %v5414_v14 = vadd.f32 %v5413_v37, %v5401_v62 }
 0x34c   :  { %5580 = vst [vmem:[%s9597_s5 + $0x38] sm:$0xff] %v5414_v14 }
 0x351   :  { %v5415_v19 = vpop.f32.mrf.mxu3 }
 0x354   :  { %v5530_v61 = vpop.f32.mrf.mxu0  ;;  %v5543_v6 = vpop.f32.mrf.mxu1 }
 0x355   :  { %v5531_v48 = vadd.f32 %v5530_v61, %v3197_v12 }
 0x357   :  { %v5544_v20 = vadd.f32 %v5543_v6, %v5531_v48 }
 0x35c   :  { %v5532_v13 = vpop.f32.mrf.mxu0  ;;  %v5545_v18 = vpop.f32.mrf.mxu1 }
 0x35d   :  { %v5556_v38 = vpop.f32.mrf.mxu2 }
 0x35e   :  { %v5557_v26 = vadd.f32 %v5556_v38, %v5544_v20 }
 0x365   :  { %v5558_v49 = vpop.f32.mrf.mxu2 }
 0x367   :  { %v5465_v31 = vpop.f32.mrf.mxu3 }
 0x368   :  { %v5466_v24 = vadd.f32 %v5465_v31, %v5453_v5 }
 0x36a   :  { %5581 = vst [vmem:[%s9597_s5 + $0x40] sm:$0xff] %v5466_v24 }
 0x36f   :  { %v5467_v44 = vpop.f32.mrf.mxu3 }
 0x387   :  { %v5517_v60 = vpop.f32.mrf.mxu3 }
 0x388   :  { %v5518_v53 = vadd.f32 %v5517_v60, %v5505_v55 }
 0x38a   :  { %5582 = vst [vmem:[%s9597_s5 + $0x48] sm:$0xff] %v5518_v53 }
 0x38f   :  { %v5519_v41 = vpop.f32.mrf.mxu3 }
 0x3a7   :  { %v5569_v17 = vpop.f32.mrf.mxu3 }
 0x3a8   :  { %v5570_v23 = vadd.f32 %v5569_v17, %v5557_v26 }
 0x3aa   :  { %5583 = vst [vmem:[%s9597_s5 + $0x50] sm:$0xff] %v5570_v23 }
 0x3af   :  { %v5571_v54 = vpop.f32.mrf.mxu3 }
 0x3b0   :  { %5588 = vsyncpa [#allocation3], 1 }
 0x3b1   :  { %5589 = vsyncpa [#allocation5], 1 }
 0x3b2   :  { %5590 = vsyncpa [#allocation8], 1 }

</bundles_post_ra>
